<compile_context>
chip_gen: v6e
topology: v6e:2x2x1
jax: 0.10.0
libtpu: 0.0.40
codegen_flags: <defaults>
</compile_context>

<pallas_src>
import functools
import math

import jax
import jax.numpy as jnp
from jax import lax
from jax.experimental import pallas as pl
from jax.experimental.pallas import tpu as pltpu

# --- model hyper-parameters (scaled-down, consistent with the module) -------
VOCAB = 20           # len('ACDEFGHIKLMNPQRSTVWY')
VOCAB_PAD = 32       # one-hot / embedding rows padded for an aligned MXU matmul
VOUT_PAD = 128       # logits padded to a full lane group for dense stores
D = 32               # hidden_dim
H = 4                # num_heads
DH = D // H
FF = 4 * D           # dim_feedforward (scaled down from PyTorch default 2048)
NUM_LAYERS = 2
MAX_LEN = 16
EPS = 1e-5
EXACT_SOFTMAX = False  # set True for exact-division softmax (tight parity tests)


# ---------------------------- fused Pallas kernel ----------------------------
def fused_transformer_kernel(
        onehot_ref,                 # (BB*L, VOCAB_PAD) bf16
        t_ref,                      # (B,) f32 in SMEM
        pos_ref,                    # (BB*L, D) f32  (pos[:L] + bt, tiled over BB)
        emb_ref,                    # (VOCAB_PAD, D) bf16
        wt_ref,                     # (1, D) f32  time_embed weight
        wqkv_ref,                   # (NL, 3H, D, DH) bf16  per-head Wq/Wk/Wv
        bqkv_ref,                   # (NL, 3H, 1, DH) f32   per-head bq/bk/bv
        wo_ref,                     # (NL, H, DH, D) bf16   per-head rows of Wo^T
        vecs_ref,                   # (NL, 6, 1, D) f32     [bo, g1, be1, b2, g2, be2]
        w1_ref, b1_ref, w2_ref,     # (NL, D, FF) bf16, (NL, 1, FF) f32, (NL, FF, D) bf16
        wout_ref, bout_ref,         # (D, VOUT_PAD) bf16, (1, VOUT_PAD) f32
        o_ref,                      # (BB*L, VOUT_PAD) f32
        *, bb, seq_len):
    L = seq_len
    scale = 1.0 / math.sqrt(DH)
    b0 = pl.program_id(0) * bb                                # first batch element of step

    # ---- embedding (one-hot matmul) + positional encoding (bt already folded in)
    x = jnp.dot(onehot_ref[...], emb_ref[...],
                preferred_element_type=jnp.float32)           # (M, D)
    x = x + pos_ref[...]

    # ---- time embedding: rows of batch element i get t[b0+i] * wt ----------
    if bb == 1:
        x = x + t_ref[b0] * wt_ref[...]
    else:
        x = jnp.concatenate(
            [x[i * L:(i + 1) * L] + t_ref[b0 + i] * wt_ref[...] for i in range(bb)],
            axis=0)

    # ---- NUM_LAYERS post-norm encoder layers, activation resident on-chip ---
    for layer in range(NUM_LAYERS):
        x_bf = x.astype(jnp.bfloat16)

        # per-head Q/K/V for the whole slab (no lane slices: weights are per head)
        qh, kh, vh = [], [], []
        for h in range(H):
            qh.append(jnp.dot(x_bf, wqkv_ref[layer, 0 * H + h],
                              preferred_element_type=jnp.float32) + bqkv_ref[layer, 0 * H + h])
            kh.append(jnp.dot(x_bf, wqkv_ref[layer, 1 * H + h],
                              preferred_element_type=jnp.float32) + bqkv_ref[layer, 1 * H + h])
            vh.append(jnp.dot(x_bf, wqkv_ref[layer, 2 * H + h],
                              preferred_element_type=jnp.float32) + bqkv_ref[layer, 2 * H + h])

        bo = vecs_ref[layer, 0]
        attn_rows = []
        for i in range(bb):                                   # per batch element
            rs = slice(i * L, (i + 1) * L)                    # aligned sublane slice
            acc = jnp.zeros((L, D), jnp.float32)
            for h in range(H):
                qb = qh[h][rs].astype(jnp.bfloat16)
                kb = kh[h][rs].astype(jnp.bfloat16)
                vb = vh[h][rs].astype(jnp.bfloat16)
                s = lax.dot_general(qb, kb, (((1,), (1,)), ((), ())),
                                    preferred_element_type=jnp.float32) * scale
                s = s - jnp.max(s, axis=-1, keepdims=True)
                p = jnp.exp(s)
                denom = jnp.sum(p, axis=-1, keepdims=True)
                if EXACT_SOFTMAX:
                    p = p / denom
                else:
                    p = p * pl.reciprocal(denom, approx=True)
                ho = jnp.dot(p.astype(jnp.bfloat16), vb,
                             preferred_element_type=jnp.float32)           # (L, DH)
                acc = acc + jnp.dot(ho.astype(jnp.bfloat16), wo_ref[layer, h],
                                    preferred_element_type=jnp.float32)    # (L, D)
            attn_rows.append(acc + bo)
        attn = attn_rows[0] if bb == 1 else jnp.concatenate(attn_rows, axis=0)

        # residual + LayerNorm 1 (independent E[y], E[y^2] reductions, f32)
        y = x + attn
        mu = jnp.mean(y, axis=-1, keepdims=True)
        ms = jnp.mean(y * y, axis=-1, keepdims=True)
        y = (y - mu) * lax.rsqrt(ms - mu * mu + EPS) * vecs_ref[layer, 1] + vecs_ref[layer, 2]

        # feed-forward (Linear -> ReLU -> Linear)
        h1 = jnp.dot(y.astype(jnp.bfloat16), w1_ref[layer],
                     preferred_element_type=jnp.float32) + b1_ref[layer]
        h1 = jnp.maximum(h1, 0.0)
        f = jnp.dot(h1.astype(jnp.bfloat16), w2_ref[layer],
                    preferred_element_type=jnp.float32) + vecs_ref[layer, 3]

        # residual + LayerNorm 2
        z = y + f
        mu2 = jnp.mean(z, axis=-1, keepdims=True)
        ms2 = jnp.mean(z * z, axis=-1, keepdims=True)
        x = (z - mu2) * lax.rsqrt(ms2 - mu2 * mu2 + EPS) * vecs_ref[layer, 4] + vecs_ref[layer, 5]

    # ---- output projection: lane-dense padded logits (M, VOUT_PAD), f32 vst --
    logits = jnp.dot(x.astype(jnp.bfloat16), wout_ref[...],
                     preferred_element_type=jnp.float32) + bout_ref[...]
    o_ref[...] = logits


# ---------------------------- wrapper -----------------------------------------
_WEIGHT_NAMES = ("emb", "wt", "wqkv", "bqkv", "wo", "vecs", "w1", "b1", "w2",
                 "wout", "bout")


def _full_spec(shape):
    n = len(shape)
    return pl.BlockSpec(shape, lambda i, _n=n: (0,) * _n)


def _default_grid_steps(B):
    """2 parallel steps on 2-TC chips (v7x) when B splits evenly, else 1."""
    try:
        kind = jax.devices()[0].device_kind.lower()
    except Exception:
        kind = ""
    if "v7" in kind and B % 2 == 0:
        return 2
    return 1


def transformer_forward(prep, tokens, t, grid_steps=1):
    B, L = tokens.shape
    assert B % grid_steps == 0
    BB = B // grid_steps
    M = BB * L

    onehot = jax.nn.one_hot(tokens.reshape(B * L).astype(jnp.int32), VOCAB_PAD,
                            dtype=jnp.bfloat16)               # (B*L, VOCAB_PAD)
    pos_tiled = jnp.tile(prep["pos"][:L], (BB, 1))            # (M, D), bt folded in
    weights = [prep[name] for name in _WEIGHT_NAMES]
    kernel = functools.partial(fused_transformer_kernel, bb=BB, seq_len=L)

    out_pad = pl.pallas_call(
        kernel,
        out_shape=jax.ShapeDtypeStruct((B * L, VOUT_PAD), jnp.float32),
        grid=(grid_steps,),
        in_specs=[pl.BlockSpec((M, VOCAB_PAD), lambda i: (i, 0)),
                  pl.BlockSpec(memory_space=pltpu.MemorySpace.SMEM),
                  pl.BlockSpec((M, D), lambda i: (0, 0))]
                 + [_full_spec(w.shape) for w in weights],
        out_specs=pl.BlockSpec((M, VOUT_PAD), lambda i: (i, 0)),
        compiler_params=pltpu.CompilerParams(
            dimension_semantics=("parallel",)),
    )(onehot, t.astype(jnp.float32), pos_tiled, *weights)

    return out_pad.reshape(B, L, VOUT_PAD)[:, :, :VOCAB]


forward = jax.jit(transformer_forward, static_argnames=("grid_steps",))


# ---------------------------- parameters --------------------------------------
def init_params(key):
    """Parameters in PyTorch layout (nn.Linear weight is [out, in])."""
    def nrm(k, shape, scale=0.02):
        return (scale * jax.random.normal(k, shape)).astype(jnp.float32)

    keys = iter(jax.random.split(key, 8 + NUM_LAYERS * 8))
    params = {
        "emb": nrm(next(keys), (VOCAB, D)),
        "pos": jax.random.normal(next(keys), (1, MAX_LEN, D)).astype(jnp.float32),
        "wt": nrm(next(keys), (D, 1)),        # time_embed: Linear(1, D)
        "bt": jnp.zeros((D,), jnp.float32),
        "wout": nrm(next(keys), (VOCAB, D)),  # output_layer: Linear(D, VOCAB)
        "bout": jnp.zeros((VOCAB,), jnp.float32),
        "layers": [],
    }
    for _ in range(NUM_LAYERS):
        wq, wk, wv = (nrm(next(keys), (D, D)) for _ in range(3))
        bq = jnp.zeros((D,), jnp.float32)
        bk = jnp.zeros((D,), jnp.float32)
        bv = jnp.zeros((D,), jnp.float32)
        wo = nrm(next(keys), (D, D))
        bo = jnp.zeros((D,), jnp.float32)
        g1 = jnp.ones((D,), jnp.float32)
        be1 = jnp.zeros((D,), jnp.float32)
        w1 = nrm(next(keys), (FF, D))
        b1 = jnp.zeros((FF,), jnp.float32)
        w2 = nrm(next(keys), (D, FF))
        b2 = jnp.zeros((D,), jnp.float32)
        g2 = jnp.ones((D,), jnp.float32)
        be2 = jnp.zeros((D,), jnp.float32)
        params["layers"].append((wq, wk, wv, bq, bk, bv, wo, bo,
                                 g1, be1, w1, b1, w2, b2, g2, be2))
    return params


def prepare_params(params):
    """One-time repack into kernel layout: weights pre-transposed to [in, out],
    Q/K/V split per head, per-layer tensors stacked on a leading NUM_LAYERS
    axis, biases/LayerNorm params packed into two f32 arrays, matmul operands
    cast to bf16, embedding rows / output projection padded for aligned MXU and
    dense lane stores.  bf16 deviation from the f32 PyTorch model is ~1e-2."""
    bf = jnp.bfloat16

    emb_pad = jnp.zeros((VOCAB_PAD, D), jnp.float32).at[:VOCAB].set(params["emb"])
    wout_pad = jnp.zeros((D, VOUT_PAD), jnp.float32).at[:, :VOCAB].set(params["wout"].T)
    bout_pad = jnp.zeros((1, VOUT_PAD), jnp.float32).at[:, :VOCAB].set(params["bout"][None, :])

    wqkv, bqkv, wo, vecs, w1, b1, w2 = [], [], [], [], [], [], []
    for (wq, wk, wv, bq, bk, bv, wo_l, bo, g1, be1,
         w1_l, b1_l, w2_l, b2, g2, be2) in params["layers"]:
        mats, bias = [], []
        for w, b in ((wq, bq), (wk, bk), (wv, bv)):
            wT = w.T                                        # (D_in, D_out)  -> x @ W
            for h in range(H):
                mats.append(wT[:, h * DH:(h + 1) * DH])     # (D, DH)
                bias.append(b[h * DH:(h + 1) * DH][None, :])  # (1, DH)
        wqkv.append(jnp.stack(mats))                        # (3H, D, DH)
        bqkv.append(jnp.stack(bias))                        # (3H, 1, DH)
        wo.append(wo_l.T.reshape(H, DH, D))                 # head h = rows of Wo^T
        vecs.append(jnp.stack([bo, g1, be1, b2, g2, be2])[:, None, :])  # (6, 1, D)
        w1.append(w1_l.T)                                   # (D, FF)
        b1.append(b1_l[None, :])                            # (1, FF)
        w2.append(w2_l.T)                                   # (FF, D)

    return {
        "emb": emb_pad.astype(bf),                              # (VOCAB_PAD, D)
        "pos": params["pos"][0] + params["bt"][None, :],        # (MAX_LEN, D), bt folded
        "wt": params["wt"].T,                                   # (1, D) f32
        "wqkv": jnp.stack(wqkv).astype(bf),                     # (NL, 3H, D, DH)
        "bqkv": jnp.stack(bqkv),                                # (NL, 3H, 1, DH) f32
        "wo": jnp.stack(wo).astype(bf),                         # (NL, H, DH, D)
        "vecs": jnp.stack(vecs),                                # (NL, 6, 1, D) f32
        "w1": jnp.stack(w1).astype(bf),                         # (NL, D, FF)
        "b1": jnp.stack(b1),                                    # (NL, 1, FF) f32
        "w2": jnp.stack(w2).astype(bf),                         # (NL, FF, D)
        "wout": wout_pad.astype(bf),                            # (D, VOUT_PAD)
        "bout": bout_pad,                                       # (1, VOUT_PAD) f32
    }


# ---------------------------- main ---------------------------------------------
if __name__ == "__main__":
    key = jax.random.PRNGKey(0)
    k_tok, k_t, k_par = jax.random.split(key, 3)

    B, L = 2, 8
    tokens = jax.random.randint(k_tok, (B, L), 0, VOCAB, dtype=jnp.int32)
    t = jax.random.uniform(k_t, (B,), jnp.float32)

    params = init_params(k_par)
    prep = prepare_params(params)            # one-time, outside the hot path

    grid_steps = _default_grid_steps(B)      # 1 on v5e/v6e, 2 on 2-TC v7x
    out = forward(prep, tokens, t, grid_steps=grid_steps)
    out = jax.block_until_ready(out)
    assert out.shape == (B, L, VOCAB), out.shape
    assert out.dtype == jnp.float32
    print("KERNEL_OK")
</pallas_src>

<mosaic_0001>
module attributes {stable_mosaic.version = 11 : i64} {
  func.func @fused_transformer_kernel(%arg0: i32, %arg1: memref<16x32xbf16, #tpu.memory_space<vmem>>, %arg2: memref<2xf32, #tpu.memory_space<smem>>, %arg3: memref<16x32xf32, #tpu.memory_space<vmem>>, %arg4: memref<32x32xbf16, #tpu.memory_space<vmem>>, %arg5: memref<1x32xf32, #tpu.memory_space<vmem>>, %arg6: memref<2x12x32x8xbf16, #tpu.memory_space<vmem>>, %arg7: memref<2x12x1x8xf32, #tpu.memory_space<vmem>>, %arg8: memref<2x4x8x32xbf16, #tpu.memory_space<vmem>>, %arg9: memref<2x6x1x32xf32, #tpu.memory_space<vmem>>, %arg10: memref<2x32x128xbf16, #tpu.memory_space<vmem>>, %arg11: memref<2x1x128xf32, #tpu.memory_space<vmem>>, %arg12: memref<2x128x32xbf16, #tpu.memory_space<vmem>>, %arg13: memref<32x128xbf16, #tpu.memory_space<vmem>>, %arg14: memref<1x128xf32, #tpu.memory_space<vmem>>, %arg15: memref<16x128xf32, #tpu.memory_space<vmem>>) attributes {dimension_semantics = [#tpu.dimension_semantics<parallel>], iteration_bounds = array<i64: 1>, scalar_prefetch = 0 : i64, scratch_operands = 0 : i64, tpu.core_type = #tpu.core_type<tc>, window_params = [{transform_indices = @transform_0, window_bounds = array<i64: 16, 32>}, {transform_indices = @transform_1, window_bounds = array<i64: 2>}, {pipeline_mode = #tpu.pipeline_mode<synchronous>, transform_indices = @transform_2, window_bounds = array<i64: 16, 32>}, {pipeline_mode = #tpu.pipeline_mode<synchronous>, transform_indices = @transform_3, window_bounds = array<i64: 32, 32>}, {pipeline_mode = #tpu.pipeline_mode<synchronous>, transform_indices = @transform_4, window_bounds = array<i64: 1, 32>}, {pipeline_mode = #tpu.pipeline_mode<synchronous>, transform_indices = @transform_5, window_bounds = array<i64: 2, 12, 32, 8>}, {pipeline_mode = #tpu.pipeline_mode<synchronous>, transform_indices = @transform_6, window_bounds = array<i64: 2, 12, 1, 8>}, {pipeline_mode = #tpu.pipeline_mode<synchronous>, transform_indices = @transform_7, window_bounds = array<i64: 2, 4, 8, 32>}, {pipeline_mode = #tpu.pipeline_mode<synchronous>, transform_indices = @transform_8, window_bounds = array<i64: 2, 6, 1, 32>}, {pipeline_mode = #tpu.pipeline_mode<synchronous>, transform_indices = @transform_9, window_bounds = array<i64: 2, 32, 128>}, {pipeline_mode = #tpu.pipeline_mode<synchronous>, transform_indices = @transform_10, window_bounds = array<i64: 2, 1, 128>}, {pipeline_mode = #tpu.pipeline_mode<synchronous>, transform_indices = @transform_11, window_bounds = array<i64: 2, 128, 32>}, {pipeline_mode = #tpu.pipeline_mode<synchronous>, transform_indices = @transform_12, window_bounds = array<i64: 32, 128>}, {pipeline_mode = #tpu.pipeline_mode<synchronous>, transform_indices = @transform_13, window_bounds = array<i64: 1, 128>}, {transform_indices = @transform_14, window_bounds = array<i64: 16, 128>}]} {
    %c2_i32 = arith.constant 2 : i32
    %0 = arith.muli %arg0, %c2_i32 : i32
    %c0 = arith.constant 0 : index
    %c0_0 = arith.constant 0 : index
    %1 = vector.load %arg1[%c0, %c0_0] : memref<16x32xbf16, #tpu.memory_space<vmem>>, vector<16x32xbf16>
    %c0_1 = arith.constant 0 : index
    %c0_2 = arith.constant 0 : index
    %2 = vector.load %arg4[%c0_1, %c0_2] : memref<32x32xbf16, #tpu.memory_space<vmem>>, vector<32x32xbf16>
    %cst = arith.constant dense<0.000000e+00> : vector<16x32xf32>
    %3 = tpu.matmul %1, %2, %cst {dimension_numbers = #tpu.dot_dimension_numbers<[1], [0], [0], [1], [0, 0, 1, 1], [], []>} : vector<16x32xbf16>, vector<32x32xbf16>, vector<16x32xf32> -> vector<16x32xf32>
    %c0_3 = arith.constant 0 : index
    %c0_4 = arith.constant 0 : index
    %4 = vector.load %arg3[%c0_3, %c0_4] : memref<16x32xf32, #tpu.memory_space<vmem>>, vector<16x32xf32>
    %5 = arith.addf %3, %4 : vector<16x32xf32>
    %6 = vector.extract_strided_slice %5 {offsets = [0, 0], sizes = [8, 32], strides = [1, 1]} : vector<16x32xf32> to vector<8x32xf32>
    %c0_i32 = arith.constant 0 : i32
    %7 = arith.addi %0, %c0_i32 : i32
    %8 = arith.index_cast %7 : i32 to index
    %9 = memref.load %arg2[%8] : memref<2xf32, #tpu.memory_space<smem>>
    %c0_5 = arith.constant 0 : index
    %c0_6 = arith.constant 0 : index
    %10 = vector.load %arg5[%c0_5, %c0_6] : memref<1x32xf32, #tpu.memory_space<vmem>>, vector<1x32xf32>
    %11 = vector.broadcast %9 : f32 to vector<1x32xf32>
    %12 = arith.mulf %11, %10 : vector<1x32xf32>
    %13 = vector.broadcast %12 : vector<1x32xf32> to vector<8x32xf32>
    %14 = arith.addf %6, %13 : vector<8x32xf32>
    %15 = vector.extract_strided_slice %5 {offsets = [8, 0], sizes = [8, 32], strides = [1, 1]} : vector<16x32xf32> to vector<8x32xf32>
    %c1_i32 = arith.constant 1 : i32
    %16 = arith.addi %0, %c1_i32 : i32
    %17 = arith.index_cast %16 : i32 to index
    %18 = memref.load %arg2[%17] : memref<2xf32, #tpu.memory_space<smem>>
    %c0_7 = arith.constant 0 : index
    %c0_8 = arith.constant 0 : index
    %19 = vector.load %arg5[%c0_7, %c0_8] : memref<1x32xf32, #tpu.memory_space<vmem>>, vector<1x32xf32>
    %20 = vector.broadcast %18 : f32 to vector<1x32xf32>
    %21 = arith.mulf %20, %19 : vector<1x32xf32>
    %22 = vector.broadcast %21 : vector<1x32xf32> to vector<8x32xf32>
    %23 = arith.addf %15, %22 : vector<8x32xf32>
    %24 = tpu.concatenate %14, %23 in 0 : vector<8x32xf32>, vector<8x32xf32> -> vector<16x32xf32>
    %25 = arith.truncf %24 : vector<16x32xf32> to vector<16x32xbf16>
    %c0_9 = arith.constant 0 : index
    %c0_10 = arith.constant 0 : index
    %c0_11 = arith.constant 0 : index
    %c0_12 = arith.constant 0 : index
    %26 = vector.load %arg6[%c0_9, %c0_10, %c0_11, %c0_12] : memref<2x12x32x8xbf16, #tpu.memory_space<vmem>>, vector<1x1x32x8xbf16>
    %27 = vector.shape_cast %26 : vector<1x1x32x8xbf16> to vector<32x8xbf16>
    %cst_13 = arith.constant dense<0.000000e+00> : vector<16x8xf32>
    %28 = tpu.matmul %25, %27, %cst_13 {dimension_numbers = #tpu.dot_dimension_numbers<[1], [0], [0], [1], [0, 0, 1, 1], [], []>} : vector<16x32xbf16>, vector<32x8xbf16>, vector<16x8xf32> -> vector<16x8xf32>
    %c0_14 = arith.constant 0 : index
    %c0_15 = arith.constant 0 : index
    %c0_16 = arith.constant 0 : index
    %c0_17 = arith.constant 0 : index
    %29 = vector.load %arg7[%c0_14, %c0_15, %c0_16, %c0_17] : memref<2x12x1x8xf32, #tpu.memory_space<vmem>>, vector<1x1x1x8xf32>
    %30 = vector.shape_cast %29 : vector<1x1x1x8xf32> to vector<1x8xf32>
    %31 = vector.broadcast %30 : vector<1x8xf32> to vector<16x8xf32>
    %32 = arith.addf %28, %31 : vector<16x8xf32>
    %c0_18 = arith.constant 0 : index
    %c4 = arith.constant 4 : index
    %c0_19 = arith.constant 0 : index
    %c0_20 = arith.constant 0 : index
    %33 = vector.load %arg6[%c0_18, %c4, %c0_19, %c0_20] : memref<2x12x32x8xbf16, #tpu.memory_space<vmem>>, vector<1x1x32x8xbf16>
    %34 = vector.shape_cast %33 : vector<1x1x32x8xbf16> to vector<32x8xbf16>
    %cst_21 = arith.constant dense<0.000000e+00> : vector<16x8xf32>
    %35 = tpu.matmul %25, %34, %cst_21 {dimension_numbers = #tpu.dot_dimension_numbers<[1], [0], [0], [1], [0, 0, 1, 1], [], []>} : vector<16x32xbf16>, vector<32x8xbf16>, vector<16x8xf32> -> vector<16x8xf32>
    %c0_22 = arith.constant 0 : index
    %c4_23 = arith.constant 4 : index
    %c0_24 = arith.constant 0 : index
    %c0_25 = arith.constant 0 : index
    %36 = vector.load %arg7[%c0_22, %c4_23, %c0_24, %c0_25] : memref<2x12x1x8xf32, #tpu.memory_space<vmem>>, vector<1x1x1x8xf32>
    %37 = vector.shape_cast %36 : vector<1x1x1x8xf32> to vector<1x8xf32>
    %38 = vector.broadcast %37 : vector<1x8xf32> to vector<16x8xf32>
    %39 = arith.addf %35, %38 : vector<16x8xf32>
    %c0_26 = arith.constant 0 : index
    %c8 = arith.constant 8 : index
    %c0_27 = arith.constant 0 : index
    %c0_28 = arith.constant 0 : index
    %40 = vector.load %arg6[%c0_26, %c8, %c0_27, %c0_28] : memref<2x12x32x8xbf16, #tpu.memory_space<vmem>>, vector<1x1x32x8xbf16>
    %41 = vector.shape_cast %40 : vector<1x1x32x8xbf16> to vector<32x8xbf16>
    %cst_29 = arith.constant dense<0.000000e+00> : vector<16x8xf32>
    %42 = tpu.matmul %25, %41, %cst_29 {dimension_numbers = #tpu.dot_dimension_numbers<[1], [0], [0], [1], [0, 0, 1, 1], [], []>} : vector<16x32xbf16>, vector<32x8xbf16>, vector<16x8xf32> -> vector<16x8xf32>
    %c0_30 = arith.constant 0 : index
    %c8_31 = arith.constant 8 : index
    %c0_32 = arith.constant 0 : index
    %c0_33 = arith.constant 0 : index
    %43 = vector.load %arg7[%c0_30, %c8_31, %c0_32, %c0_33] : memref<2x12x1x8xf32, #tpu.memory_space<vmem>>, vector<1x1x1x8xf32>
    %44 = vector.shape_cast %43 : vector<1x1x1x8xf32> to vector<1x8xf32>
    %45 = vector.broadcast %44 : vector<1x8xf32> to vector<16x8xf32>
    %46 = arith.addf %42, %45 : vector<16x8xf32>
    %c0_34 = arith.constant 0 : index
    %c1 = arith.constant 1 : index
    %c0_35 = arith.constant 0 : index
    %c0_36 = arith.constant 0 : index
    %47 = vector.load %arg6[%c0_34, %c1, %c0_35, %c0_36] : memref<2x12x32x8xbf16, #tpu.memory_space<vmem>>, vector<1x1x32x8xbf16>
    %48 = vector.shape_cast %47 : vector<1x1x32x8xbf16> to vector<32x8xbf16>
    %cst_37 = arith.constant dense<0.000000e+00> : vector<16x8xf32>
    %49 = tpu.matmul %25, %48, %cst_37 {dimension_numbers = #tpu.dot_dimension_numbers<[1], [0], [0], [1], [0, 0, 1, 1], [], []>} : vector<16x32xbf16>, vector<32x8xbf16>, vector<16x8xf32> -> vector<16x8xf32>
    %c0_38 = arith.constant 0 : index
    %c1_39 = arith.constant 1 : index
    %c0_40 = arith.constant 0 : index
    %c0_41 = arith.constant 0 : index
    %50 = vector.load %arg7[%c0_38, %c1_39, %c0_40, %c0_41] : memref<2x12x1x8xf32, #tpu.memory_space<vmem>>, vector<1x1x1x8xf32>
    %51 = vector.shape_cast %50 : vector<1x1x1x8xf32> to vector<1x8xf32>
    %52 = vector.broadcast %51 : vector<1x8xf32> to vector<16x8xf32>
    %53 = arith.addf %49, %52 : vector<16x8xf32>
    %c0_42 = arith.constant 0 : index
    %c5 = arith.constant 5 : index
    %c0_43 = arith.constant 0 : index
    %c0_44 = arith.constant 0 : index
    %54 = vector.load %arg6[%c0_42, %c5, %c0_43, %c0_44] : memref<2x12x32x8xbf16, #tpu.memory_space<vmem>>, vector<1x1x32x8xbf16>
    %55 = vector.shape_cast %54 : vector<1x1x32x8xbf16> to vector<32x8xbf16>
    %cst_45 = arith.constant dense<0.000000e+00> : vector<16x8xf32>
    %56 = tpu.matmul %25, %55, %cst_45 {dimension_numbers = #tpu.dot_dimension_numbers<[1], [0], [0], [1], [0, 0, 1, 1], [], []>} : vector<16x32xbf16>, vector<32x8xbf16>, vector<16x8xf32> -> vector<16x8xf32>
    %c0_46 = arith.constant 0 : index
    %c5_47 = arith.constant 5 : index
    %c0_48 = arith.constant 0 : index
    %c0_49 = arith.constant 0 : index
    %57 = vector.load %arg7[%c0_46, %c5_47, %c0_48, %c0_49] : memref<2x12x1x8xf32, #tpu.memory_space<vmem>>, vector<1x1x1x8xf32>
    %58 = vector.shape_cast %57 : vector<1x1x1x8xf32> to vector<1x8xf32>
    %59 = vector.broadcast %58 : vector<1x8xf32> to vector<16x8xf32>
    %60 = arith.addf %56, %59 : vector<16x8xf32>
    %c0_50 = arith.constant 0 : index
    %c9 = arith.constant 9 : index
    %c0_51 = arith.constant 0 : index
    %c0_52 = arith.constant 0 : index
    %61 = vector.load %arg6[%c0_50, %c9, %c0_51, %c0_52] : memref<2x12x32x8xbf16, #tpu.memory_space<vmem>>, vector<1x1x32x8xbf16>
    %62 = vector.shape_cast %61 : vector<1x1x32x8xbf16> to vector<32x8xbf16>
    %cst_53 = arith.constant dense<0.000000e+00> : vector<16x8xf32>
    %63 = tpu.matmul %25, %62, %cst_53 {dimension_numbers = #tpu.dot_dimension_numbers<[1], [0], [0], [1], [0, 0, 1, 1], [], []>} : vector<16x32xbf16>, vector<32x8xbf16>, vector<16x8xf32> -> vector<16x8xf32>
    %c0_54 = arith.constant 0 : index
    %c9_55 = arith.constant 9 : index
    %c0_56 = arith.constant 0 : index
    %c0_57 = arith.constant 0 : index
    %64 = vector.load %arg7[%c0_54, %c9_55, %c0_56, %c0_57] : memref<2x12x1x8xf32, #tpu.memory_space<vmem>>, vector<1x1x1x8xf32>
    %65 = vector.shape_cast %64 : vector<1x1x1x8xf32> to vector<1x8xf32>
    %66 = vector.broadcast %65 : vector<1x8xf32> to vector<16x8xf32>
    %67 = arith.addf %63, %66 : vector<16x8xf32>
    %c0_58 = arith.constant 0 : index
    %c2 = arith.constant 2 : index
    %c0_59 = arith.constant 0 : index
    %c0_60 = arith.constant 0 : index
    %68 = vector.load %arg6[%c0_58, %c2, %c0_59, %c0_60] : memref<2x12x32x8xbf16, #tpu.memory_space<vmem>>, vector<1x1x32x8xbf16>
    %69 = vector.shape_cast %68 : vector<1x1x32x8xbf16> to vector<32x8xbf16>
    %cst_61 = arith.constant dense<0.000000e+00> : vector<16x8xf32>
    %70 = tpu.matmul %25, %69, %cst_61 {dimension_numbers = #tpu.dot_dimension_numbers<[1], [0], [0], [1], [0, 0, 1, 1], [], []>} : vector<16x32xbf16>, vector<32x8xbf16>, vector<16x8xf32> -> vector<16x8xf32>
    %c0_62 = arith.constant 0 : index
    %c2_63 = arith.constant 2 : index
    %c0_64 = arith.constant 0 : index
    %c0_65 = arith.constant 0 : index
    %71 = vector.load %arg7[%c0_62, %c2_63, %c0_64, %c0_65] : memref<2x12x1x8xf32, #tpu.memory_space<vmem>>, vector<1x1x1x8xf32>
    %72 = vector.shape_cast %71 : vector<1x1x1x8xf32> to vector<1x8xf32>
    %73 = vector.broadcast %72 : vector<1x8xf32> to vector<16x8xf32>
    %74 = arith.addf %70, %73 : vector<16x8xf32>
    %c0_66 = arith.constant 0 : index
    %c6 = arith.constant 6 : index
    %c0_67 = arith.constant 0 : index
    %c0_68 = arith.constant 0 : index
    %75 = vector.load %arg6[%c0_66, %c6, %c0_67, %c0_68] : memref<2x12x32x8xbf16, #tpu.memory_space<vmem>>, vector<1x1x32x8xbf16>
    %76 = vector.shape_cast %75 : vector<1x1x32x8xbf16> to vector<32x8xbf16>
    %cst_69 = arith.constant dense<0.000000e+00> : vector<16x8xf32>
    %77 = tpu.matmul %25, %76, %cst_69 {dimension_numbers = #tpu.dot_dimension_numbers<[1], [0], [0], [1], [0, 0, 1, 1], [], []>} : vector<16x32xbf16>, vector<32x8xbf16>, vector<16x8xf32> -> vector<16x8xf32>
    %c0_70 = arith.constant 0 : index
    %c6_71 = arith.constant 6 : index
    %c0_72 = arith.constant 0 : index
    %c0_73 = arith.constant 0 : index
    %78 = vector.load %arg7[%c0_70, %c6_71, %c0_72, %c0_73] : memref<2x12x1x8xf32, #tpu.memory_space<vmem>>, vector<1x1x1x8xf32>
    %79 = vector.shape_cast %78 : vector<1x1x1x8xf32> to vector<1x8xf32>
    %80 = vector.broadcast %79 : vector<1x8xf32> to vector<16x8xf32>
    %81 = arith.addf %77, %80 : vector<16x8xf32>
    %c0_74 = arith.constant 0 : index
    %c10 = arith.constant 10 : index
    %c0_75 = arith.constant 0 : index
    %c0_76 = arith.constant 0 : index
    %82 = vector.load %arg6[%c0_74, %c10, %c0_75, %c0_76] : memref<2x12x32x8xbf16, #tpu.memory_space<vmem>>, vector<1x1x32x8xbf16>
    %83 = vector.shape_cast %82 : vector<1x1x32x8xbf16> to vector<32x8xbf16>
    %cst_77 = arith.constant dense<0.000000e+00> : vector<16x8xf32>
    %84 = tpu.matmul %25, %83, %cst_77 {dimension_numbers = #tpu.dot_dimension_numbers<[1], [0], [0], [1], [0, 0, 1, 1], [], []>} : vector<16x32xbf16>, vector<32x8xbf16>, vector<16x8xf32> -> vector<16x8xf32>
    %c0_78 = arith.constant 0 : index
    %c10_79 = arith.constant 10 : index
    %c0_80 = arith.constant 0 : index
    %c0_81 = arith.constant 0 : index
    %85 = vector.load %arg7[%c0_78, %c10_79, %c0_80, %c0_81] : memref<2x12x1x8xf32, #tpu.memory_space<vmem>>, vector<1x1x1x8xf32>
    %86 = vector.shape_cast %85 : vector<1x1x1x8xf32> to vector<1x8xf32>
    %87 = vector.broadcast %86 : vector<1x8xf32> to vector<16x8xf32>
    %88 = arith.addf %84, %87 : vector<16x8xf32>
    %c0_82 = arith.constant 0 : index
    %c3 = arith.constant 3 : index
    %c0_83 = arith.constant 0 : index
    %c0_84 = arith.constant 0 : index
    %89 = vector.load %arg6[%c0_82, %c3, %c0_83, %c0_84] : memref<2x12x32x8xbf16, #tpu.memory_space<vmem>>, vector<1x1x32x8xbf16>
    %90 = vector.shape_cast %89 : vector<1x1x32x8xbf16> to vector<32x8xbf16>
    %cst_85 = arith.constant dense<0.000000e+00> : vector<16x8xf32>
    %91 = tpu.matmul %25, %90, %cst_85 {dimension_numbers = #tpu.dot_dimension_numbers<[1], [0], [0], [1], [0, 0, 1, 1], [], []>} : vector<16x32xbf16>, vector<32x8xbf16>, vector<16x8xf32> -> vector<16x8xf32>
    %c0_86 = arith.constant 0 : index
    %c3_87 = arith.constant 3 : index
    %c0_88 = arith.constant 0 : index
    %c0_89 = arith.constant 0 : index
    %92 = vector.load %arg7[%c0_86, %c3_87, %c0_88, %c0_89] : memref<2x12x1x8xf32, #tpu.memory_space<vmem>>, vector<1x1x1x8xf32>
    %93 = vector.shape_cast %92 : vector<1x1x1x8xf32> to vector<1x8xf32>
    %94 = vector.broadcast %93 : vector<1x8xf32> to vector<16x8xf32>
    %95 = arith.addf %91, %94 : vector<16x8xf32>
    %c0_90 = arith.constant 0 : index
    %c7 = arith.constant 7 : index
    %c0_91 = arith.constant 0 : index
    %c0_92 = arith.constant 0 : index
    %96 = vector.load %arg6[%c0_90, %c7, %c0_91, %c0_92] : memref<2x12x32x8xbf16, #tpu.memory_space<vmem>>, vector<1x1x32x8xbf16>
    %97 = vector.shape_cast %96 : vector<1x1x32x8xbf16> to vector<32x8xbf16>
    %cst_93 = arith.constant dense<0.000000e+00> : vector<16x8xf32>
    %98 = tpu.matmul %25, %97, %cst_93 {dimension_numbers = #tpu.dot_dimension_numbers<[1], [0], [0], [1], [0, 0, 1, 1], [], []>} : vector<16x32xbf16>, vector<32x8xbf16>, vector<16x8xf32> -> vector<16x8xf32>
    %c0_94 = arith.constant 0 : index
    %c7_95 = arith.constant 7 : index
    %c0_96 = arith.constant 0 : index
    %c0_97 = arith.constant 0 : index
    %99 = vector.load %arg7[%c0_94, %c7_95, %c0_96, %c0_97] : memref<2x12x1x8xf32, #tpu.memory_space<vmem>>, vector<1x1x1x8xf32>
    %100 = vector.shape_cast %99 : vector<1x1x1x8xf32> to vector<1x8xf32>
    %101 = vector.broadcast %100 : vector<1x8xf32> to vector<16x8xf32>
    %102 = arith.addf %98, %101 : vector<16x8xf32>
    %c0_98 = arith.constant 0 : index
    %c11 = arith.constant 11 : index
    %c0_99 = arith.constant 0 : index
    %c0_100 = arith.constant 0 : index
    %103 = vector.load %arg6[%c0_98, %c11, %c0_99, %c0_100] : memref<2x12x32x8xbf16, #tpu.memory_space<vmem>>, vector<1x1x32x8xbf16>
    %104 = vector.shape_cast %103 : vector<1x1x32x8xbf16> to vector<32x8xbf16>
    %cst_101 = arith.constant dense<0.000000e+00> : vector<16x8xf32>
    %105 = tpu.matmul %25, %104, %cst_101 {dimension_numbers = #tpu.dot_dimension_numbers<[1], [0], [0], [1], [0, 0, 1, 1], [], []>} : vector<16x32xbf16>, vector<32x8xbf16>, vector<16x8xf32> -> vector<16x8xf32>
    %c0_102 = arith.constant 0 : index
    %c11_103 = arith.constant 11 : index
    %c0_104 = arith.constant 0 : index
    %c0_105 = arith.constant 0 : index
    %106 = vector.load %arg7[%c0_102, %c11_103, %c0_104, %c0_105] : memref<2x12x1x8xf32, #tpu.memory_space<vmem>>, vector<1x1x1x8xf32>
    %107 = vector.shape_cast %106 : vector<1x1x1x8xf32> to vector<1x8xf32>
    %108 = vector.broadcast %107 : vector<1x8xf32> to vector<16x8xf32>
    %109 = arith.addf %105, %108 : vector<16x8xf32>
    %c0_106 = arith.constant 0 : index
    %c0_107 = arith.constant 0 : index
    %c0_108 = arith.constant 0 : index
    %c0_109 = arith.constant 0 : index
    %110 = vector.load %arg9[%c0_106, %c0_107, %c0_108, %c0_109] : memref<2x6x1x32xf32, #tpu.memory_space<vmem>>, vector<1x1x1x32xf32>
    %111 = vector.shape_cast %110 : vector<1x1x1x32xf32> to vector<1x32xf32>
    %cst_110 = arith.constant 0.000000e+00 : f32
    %112 = vector.broadcast %cst_110 : f32 to vector<8x32xf32>
    %113 = vector.extract_strided_slice %32 {offsets = [0, 0], sizes = [8, 8], strides = [1, 1]} : vector<16x8xf32> to vector<8x8xf32>
    %114 = arith.truncf %113 : vector<8x8xf32> to vector<8x8xbf16>
    %115 = vector.extract_strided_slice %39 {offsets = [0, 0], sizes = [8, 8], strides = [1, 1]} : vector<16x8xf32> to vector<8x8xf32>
    %116 = arith.truncf %115 : vector<8x8xf32> to vector<8x8xbf16>
    %117 = vector.extract_strided_slice %46 {offsets = [0, 0], sizes = [8, 8], strides = [1, 1]} : vector<16x8xf32> to vector<8x8xf32>
    %118 = arith.truncf %117 : vector<8x8xf32> to vector<8x8xbf16>
    %cst_111 = arith.constant dense<0.000000e+00> : vector<8x8xf32>
    %119 = tpu.matmul %114, %116, %cst_111 {dimension_numbers = #tpu.dot_dimension_numbers<[1], [1], [0], [0], [0, 0, 1, 0], [], []>} : vector<8x8xbf16>, vector<8x8xbf16>, vector<8x8xf32> -> vector<8x8xf32>
    %cst_112 = arith.constant 0.353553385 : f32
    %120 = vector.broadcast %cst_112 : f32 to vector<8x8xf32>
    %121 = arith.mulf %119, %120 : vector<8x8xf32>
    %cst_113 = arith.constant dense<0xFF800000> : vector<8xf32>
    %122 = vector.multi_reduction <maximumf>, %121, %cst_113 [1] : vector<8x8xf32> to vector<8xf32>
    %123 = vector.shape_cast %122 : vector<8xf32> to vector<8x1xf32>
    %124 = vector.broadcast %123 : vector<8x1xf32> to vector<8x8xf32>
    %125 = arith.subf %121, %124 : vector<8x8xf32>
    %126 = math.exp %125 : vector<8x8xf32>
    %cst_114 = arith.constant dense<0.000000e+00> : vector<8xf32>
    %127 = vector.multi_reduction <add>, %126, %cst_114 [1] : vector<8x8xf32> to vector<8xf32>
    %128 = vector.shape_cast %127 : vector<8xf32> to vector<8x1xf32>
    %129 = tpu.reciprocal %128 {approx = true} : vector<8x1xf32> -> vector<8x1xf32>
    %130 = vector.broadcast %129 : vector<8x1xf32> to vector<8x8xf32>
    %131 = arith.mulf %126, %130 : vector<8x8xf32>
    %132 = arith.truncf %131 : vector<8x8xf32> to vector<8x8xbf16>
    %cst_115 = arith.constant dense<0.000000e+00> : vector<8x8xf32>
    %133 = tpu.matmul %132, %118, %cst_115 {dimension_numbers = #tpu.dot_dimension_numbers<[1], [0], [0], [1], [0, 0, 1, 1], [], []>} : vector<8x8xbf16>, vector<8x8xbf16>, vector<8x8xf32> -> vector<8x8xf32>
    %134 = arith.truncf %133 : vector<8x8xf32> to vector<8x8xbf16>
    %c0_116 = arith.constant 0 : index
    %c0_117 = arith.constant 0 : index
    %c0_118 = arith.constant 0 : index
    %c0_119 = arith.constant 0 : index
    %135 = vector.load %arg8[%c0_116, %c0_117, %c0_118, %c0_119] : memref<2x4x8x32xbf16, #tpu.memory_space<vmem>>, vector<1x1x8x32xbf16>
    %136 = vector.shape_cast %135 : vector<1x1x8x32xbf16> to vector<8x32xbf16>
    %cst_120 = arith.constant dense<0.000000e+00> : vector<8x32xf32>
    %137 = tpu.matmul %134, %136, %cst_120 {dimension_numbers = #tpu.dot_dimension_numbers<[1], [0], [0], [1], [0, 0, 1, 1], [], []>} : vector<8x8xbf16>, vector<8x32xbf16>, vector<8x32xf32> -> vector<8x32xf32>
    %138 = arith.addf %112, %137 : vector<8x32xf32>
    %139 = vector.extract_strided_slice %53 {offsets = [0, 0], sizes = [8, 8], strides = [1, 1]} : vector<16x8xf32> to vector<8x8xf32>
    %140 = arith.truncf %139 : vector<8x8xf32> to vector<8x8xbf16>
    %141 = vector.extract_strided_slice %60 {offsets = [0, 0], sizes = [8, 8], strides = [1, 1]} : vector<16x8xf32> to vector<8x8xf32>
    %142 = arith.truncf %141 : vector<8x8xf32> to vector<8x8xbf16>
    %143 = vector.extract_strided_slice %67 {offsets = [0, 0], sizes = [8, 8], strides = [1, 1]} : vector<16x8xf32> to vector<8x8xf32>
    %144 = arith.truncf %143 : vector<8x8xf32> to vector<8x8xbf16>
    %cst_121 = arith.constant dense<0.000000e+00> : vector<8x8xf32>
    %145 = tpu.matmul %140, %142, %cst_121 {dimension_numbers = #tpu.dot_dimension_numbers<[1], [1], [0], [0], [0, 0, 1, 0], [], []>} : vector<8x8xbf16>, vector<8x8xbf16>, vector<8x8xf32> -> vector<8x8xf32>
    %cst_122 = arith.constant 0.353553385 : f32
    %146 = vector.broadcast %cst_122 : f32 to vector<8x8xf32>
    %147 = arith.mulf %145, %146 : vector<8x8xf32>
    %cst_123 = arith.constant dense<0xFF800000> : vector<8xf32>
    %148 = vector.multi_reduction <maximumf>, %147, %cst_123 [1] : vector<8x8xf32> to vector<8xf32>
    %149 = vector.shape_cast %148 : vector<8xf32> to vector<8x1xf32>
    %150 = vector.broadcast %149 : vector<8x1xf32> to vector<8x8xf32>
    %151 = arith.subf %147, %150 : vector<8x8xf32>
    %152 = math.exp %151 : vector<8x8xf32>
    %cst_124 = arith.constant dense<0.000000e+00> : vector<8xf32>
    %153 = vector.multi_reduction <add>, %152, %cst_124 [1] : vector<8x8xf32> to vector<8xf32>
    %154 = vector.shape_cast %153 : vector<8xf32> to vector<8x1xf32>
    %155 = tpu.reciprocal %154 {approx = true} : vector<8x1xf32> -> vector<8x1xf32>
    %156 = vector.broadcast %155 : vector<8x1xf32> to vector<8x8xf32>
    %157 = arith.mulf %152, %156 : vector<8x8xf32>
    %158 = arith.truncf %157 : vector<8x8xf32> to vector<8x8xbf16>
    %cst_125 = arith.constant dense<0.000000e+00> : vector<8x8xf32>
    %159 = tpu.matmul %158, %144, %cst_125 {dimension_numbers = #tpu.dot_dimension_numbers<[1], [0], [0], [1], [0, 0, 1, 1], [], []>} : vector<8x8xbf16>, vector<8x8xbf16>, vector<8x8xf32> -> vector<8x8xf32>
    %160 = arith.truncf %159 : vector<8x8xf32> to vector<8x8xbf16>
    %c0_126 = arith.constant 0 : index
    %c1_127 = arith.constant 1 : index
    %c0_128 = arith.constant 0 : index
    %c0_129 = arith.constant 0 : index
    %161 = vector.load %arg8[%c0_126, %c1_127, %c0_128, %c0_129] : memref<2x4x8x32xbf16, #tpu.memory_space<vmem>>, vector<1x1x8x32xbf16>
    %162 = vector.shape_cast %161 : vector<1x1x8x32xbf16> to vector<8x32xbf16>
    %cst_130 = arith.constant dense<0.000000e+00> : vector<8x32xf32>
    %163 = tpu.matmul %160, %162, %cst_130 {dimension_numbers = #tpu.dot_dimension_numbers<[1], [0], [0], [1], [0, 0, 1, 1], [], []>} : vector<8x8xbf16>, vector<8x32xbf16>, vector<8x32xf32> -> vector<8x32xf32>
    %164 = arith.addf %138, %163 : vector<8x32xf32>
    %165 = vector.extract_strided_slice %74 {offsets = [0, 0], sizes = [8, 8], strides = [1, 1]} : vector<16x8xf32> to vector<8x8xf32>
    %166 = arith.truncf %165 : vector<8x8xf32> to vector<8x8xbf16>
    %167 = vector.extract_strided_slice %81 {offsets = [0, 0], sizes = [8, 8], strides = [1, 1]} : vector<16x8xf32> to vector<8x8xf32>
    %168 = arith.truncf %167 : vector<8x8xf32> to vector<8x8xbf16>
    %169 = vector.extract_strided_slice %88 {offsets = [0, 0], sizes = [8, 8], strides = [1, 1]} : vector<16x8xf32> to vector<8x8xf32>
    %170 = arith.truncf %169 : vector<8x8xf32> to vector<8x8xbf16>
    %cst_131 = arith.constant dense<0.000000e+00> : vector<8x8xf32>
    %171 = tpu.matmul %166, %168, %cst_131 {dimension_numbers = #tpu.dot_dimension_numbers<[1], [1], [0], [0], [0, 0, 1, 0], [], []>} : vector<8x8xbf16>, vector<8x8xbf16>, vector<8x8xf32> -> vector<8x8xf32>
    %cst_132 = arith.constant 0.353553385 : f32
    %172 = vector.broadcast %cst_132 : f32 to vector<8x8xf32>
    %173 = arith.mulf %171, %172 : vector<8x8xf32>
    %cst_133 = arith.constant dense<0xFF800000> : vector<8xf32>
    %174 = vector.multi_reduction <maximumf>, %173, %cst_133 [1] : vector<8x8xf32> to vector<8xf32>
    %175 = vector.shape_cast %174 : vector<8xf32> to vector<8x1xf32>
    %176 = vector.broadcast %175 : vector<8x1xf32> to vector<8x8xf32>
    %177 = arith.subf %173, %176 : vector<8x8xf32>
    %178 = math.exp %177 : vector<8x8xf32>
    %cst_134 = arith.constant dense<0.000000e+00> : vector<8xf32>
    %179 = vector.multi_reduction <add>, %178, %cst_134 [1] : vector<8x8xf32> to vector<8xf32>
    %180 = vector.shape_cast %179 : vector<8xf32> to vector<8x1xf32>
    %181 = tpu.reciprocal %180 {approx = true} : vector<8x1xf32> -> vector<8x1xf32>
    %182 = vector.broadcast %181 : vector<8x1xf32> to vector<8x8xf32>
    %183 = arith.mulf %178, %182 : vector<8x8xf32>
    %184 = arith.truncf %183 : vector<8x8xf32> to vector<8x8xbf16>
    %cst_135 = arith.constant dense<0.000000e+00> : vector<8x8xf32>
    %185 = tpu.matmul %184, %170, %cst_135 {dimension_numbers = #tpu.dot_dimension_numbers<[1], [0], [0], [1], [0, 0, 1, 1], [], []>} : vector<8x8xbf16>, vector<8x8xbf16>, vector<8x8xf32> -> vector<8x8xf32>
    %186 = arith.truncf %185 : vector<8x8xf32> to vector<8x8xbf16>
    %c0_136 = arith.constant 0 : index
    %c2_137 = arith.constant 2 : index
    %c0_138 = arith.constant 0 : index
    %c0_139 = arith.constant 0 : index
    %187 = vector.load %arg8[%c0_136, %c2_137, %c0_138, %c0_139] : memref<2x4x8x32xbf16, #tpu.memory_space<vmem>>, vector<1x1x8x32xbf16>
    %188 = vector.shape_cast %187 : vector<1x1x8x32xbf16> to vector<8x32xbf16>
    %cst_140 = arith.constant dense<0.000000e+00> : vector<8x32xf32>
    %189 = tpu.matmul %186, %188, %cst_140 {dimension_numbers = #tpu.dot_dimension_numbers<[1], [0], [0], [1], [0, 0, 1, 1], [], []>} : vector<8x8xbf16>, vector<8x32xbf16>, vector<8x32xf32> -> vector<8x32xf32>
    %190 = arith.addf %164, %189 : vector<8x32xf32>
    %191 = vector.extract_strided_slice %95 {offsets = [0, 0], sizes = [8, 8], strides = [1, 1]} : vector<16x8xf32> to vector<8x8xf32>
    %192 = arith.truncf %191 : vector<8x8xf32> to vector<8x8xbf16>
    %193 = vector.extract_strided_slice %102 {offsets = [0, 0], sizes = [8, 8], strides = [1, 1]} : vector<16x8xf32> to vector<8x8xf32>
    %194 = arith.truncf %193 : vector<8x8xf32> to vector<8x8xbf16>
    %195 = vector.extract_strided_slice %109 {offsets = [0, 0], sizes = [8, 8], strides = [1, 1]} : vector<16x8xf32> to vector<8x8xf32>
    %196 = arith.truncf %195 : vector<8x8xf32> to vector<8x8xbf16>
    %cst_141 = arith.constant dense<0.000000e+00> : vector<8x8xf32>
    %197 = tpu.matmul %192, %194, %cst_141 {dimension_numbers = #tpu.dot_dimension_numbers<[1], [1], [0], [0], [0, 0, 1, 0], [], []>} : vector<8x8xbf16>, vector<8x8xbf16>, vector<8x8xf32> -> vector<8x8xf32>
    %cst_142 = arith.constant 0.353553385 : f32
    %198 = vector.broadcast %cst_142 : f32 to vector<8x8xf32>
    %199 = arith.mulf %197, %198 : vector<8x8xf32>
    %cst_143 = arith.constant dense<0xFF800000> : vector<8xf32>
    %200 = vector.multi_reduction <maximumf>, %199, %cst_143 [1] : vector<8x8xf32> to vector<8xf32>
    %201 = vector.shape_cast %200 : vector<8xf32> to vector<8x1xf32>
    %202 = vector.broadcast %201 : vector<8x1xf32> to vector<8x8xf32>
    %203 = arith.subf %199, %202 : vector<8x8xf32>
    %204 = math.exp %203 : vector<8x8xf32>
    %cst_144 = arith.constant dense<0.000000e+00> : vector<8xf32>
    %205 = vector.multi_reduction <add>, %204, %cst_144 [1] : vector<8x8xf32> to vector<8xf32>
    %206 = vector.shape_cast %205 : vector<8xf32> to vector<8x1xf32>
    %207 = tpu.reciprocal %206 {approx = true} : vector<8x1xf32> -> vector<8x1xf32>
    %208 = vector.broadcast %207 : vector<8x1xf32> to vector<8x8xf32>
    %209 = arith.mulf %204, %208 : vector<8x8xf32>
    %210 = arith.truncf %209 : vector<8x8xf32> to vector<8x8xbf16>
    %cst_145 = arith.constant dense<0.000000e+00> : vector<8x8xf32>
    %211 = tpu.matmul %210, %196, %cst_145 {dimension_numbers = #tpu.dot_dimension_numbers<[1], [0], [0], [1], [0, 0, 1, 1], [], []>} : vector<8x8xbf16>, vector<8x8xbf16>, vector<8x8xf32> -> vector<8x8xf32>
    %212 = arith.truncf %211 : vector<8x8xf32> to vector<8x8xbf16>
    %c0_146 = arith.constant 0 : index
    %c3_147 = arith.constant 3 : index
    %c0_148 = arith.constant 0 : index
    %c0_149 = arith.constant 0 : index
    %213 = vector.load %arg8[%c0_146, %c3_147, %c0_148, %c0_149] : memref<2x4x8x32xbf16, #tpu.memory_space<vmem>>, vector<1x1x8x32xbf16>
    %214 = vector.shape_cast %213 : vector<1x1x8x32xbf16> to vector<8x32xbf16>
    %cst_150 = arith.constant dense<0.000000e+00> : vector<8x32xf32>
    %215 = tpu.matmul %212, %214, %cst_150 {dimension_numbers = #tpu.dot_dimension_numbers<[1], [0], [0], [1], [0, 0, 1, 1], [], []>} : vector<8x8xbf16>, vector<8x32xbf16>, vector<8x32xf32> -> vector<8x32xf32>
    %216 = arith.addf %190, %215 : vector<8x32xf32>
    %217 = vector.broadcast %111 : vector<1x32xf32> to vector<8x32xf32>
    %218 = arith.addf %216, %217 : vector<8x32xf32>
    %cst_151 = arith.constant 0.000000e+00 : f32
    %219 = vector.broadcast %cst_151 : f32 to vector<8x32xf32>
    %220 = vector.extract_strided_slice %32 {offsets = [8, 0], sizes = [8, 8], strides = [1, 1]} : vector<16x8xf32> to vector<8x8xf32>
    %221 = arith.truncf %220 : vector<8x8xf32> to vector<8x8xbf16>
    %222 = vector.extract_strided_slice %39 {offsets = [8, 0], sizes = [8, 8], strides = [1, 1]} : vector<16x8xf32> to vector<8x8xf32>
    %223 = arith.truncf %222 : vector<8x8xf32> to vector<8x8xbf16>
    %224 = vector.extract_strided_slice %46 {offsets = [8, 0], sizes = [8, 8], strides = [1, 1]} : vector<16x8xf32> to vector<8x8xf32>
    %225 = arith.truncf %224 : vector<8x8xf32> to vector<8x8xbf16>
    %cst_152 = arith.constant dense<0.000000e+00> : vector<8x8xf32>
    %226 = tpu.matmul %221, %223, %cst_152 {dimension_numbers = #tpu.dot_dimension_numbers<[1], [1], [0], [0], [0, 0, 1, 0], [], []>} : vector<8x8xbf16>, vector<8x8xbf16>, vector<8x8xf32> -> vector<8x8xf32>
    %cst_153 = arith.constant 0.353553385 : f32
    %227 = vector.broadcast %cst_153 : f32 to vector<8x8xf32>
    %228 = arith.mulf %226, %227 : vector<8x8xf32>
    %cst_154 = arith.constant dense<0xFF800000> : vector<8xf32>
    %229 = vector.multi_reduction <maximumf>, %228, %cst_154 [1] : vector<8x8xf32> to vector<8xf32>
    %230 = vector.shape_cast %229 : vector<8xf32> to vector<8x1xf32>
    %231 = vector.broadcast %230 : vector<8x1xf32> to vector<8x8xf32>
    %232 = arith.subf %228, %231 : vector<8x8xf32>
    %233 = math.exp %232 : vector<8x8xf32>
    %cst_155 = arith.constant dense<0.000000e+00> : vector<8xf32>
    %234 = vector.multi_reduction <add>, %233, %cst_155 [1] : vector<8x8xf32> to vector<8xf32>
    %235 = vector.shape_cast %234 : vector<8xf32> to vector<8x1xf32>
    %236 = tpu.reciprocal %235 {approx = true} : vector<8x1xf32> -> vector<8x1xf32>
    %237 = vector.broadcast %236 : vector<8x1xf32> to vector<8x8xf32>
    %238 = arith.mulf %233, %237 : vector<8x8xf32>
    %239 = arith.truncf %238 : vector<8x8xf32> to vector<8x8xbf16>
    %cst_156 = arith.constant dense<0.000000e+00> : vector<8x8xf32>
    %240 = tpu.matmul %239, %225, %cst_156 {dimension_numbers = #tpu.dot_dimension_numbers<[1], [0], [0], [1], [0, 0, 1, 1], [], []>} : vector<8x8xbf16>, vector<8x8xbf16>, vector<8x8xf32> -> vector<8x8xf32>
    %241 = arith.truncf %240 : vector<8x8xf32> to vector<8x8xbf16>
    %c0_157 = arith.constant 0 : index
    %c0_158 = arith.constant 0 : index
    %c0_159 = arith.constant 0 : index
    %c0_160 = arith.constant 0 : index
    %242 = vector.load %arg8[%c0_157, %c0_158, %c0_159, %c0_160] : memref<2x4x8x32xbf16, #tpu.memory_space<vmem>>, vector<1x1x8x32xbf16>
    %243 = vector.shape_cast %242 : vector<1x1x8x32xbf16> to vector<8x32xbf16>
    %cst_161 = arith.constant dense<0.000000e+00> : vector<8x32xf32>
    %244 = tpu.matmul %241, %243, %cst_161 {dimension_numbers = #tpu.dot_dimension_numbers<[1], [0], [0], [1], [0, 0, 1, 1], [], []>} : vector<8x8xbf16>, vector<8x32xbf16>, vector<8x32xf32> -> vector<8x32xf32>
    %245 = arith.addf %219, %244 : vector<8x32xf32>
    %246 = vector.extract_strided_slice %53 {offsets = [8, 0], sizes = [8, 8], strides = [1, 1]} : vector<16x8xf32> to vector<8x8xf32>
    %247 = arith.truncf %246 : vector<8x8xf32> to vector<8x8xbf16>
    %248 = vector.extract_strided_slice %60 {offsets = [8, 0], sizes = [8, 8], strides = [1, 1]} : vector<16x8xf32> to vector<8x8xf32>
    %249 = arith.truncf %248 : vector<8x8xf32> to vector<8x8xbf16>
    %250 = vector.extract_strided_slice %67 {offsets = [8, 0], sizes = [8, 8], strides = [1, 1]} : vector<16x8xf32> to vector<8x8xf32>
    %251 = arith.truncf %250 : vector<8x8xf32> to vector<8x8xbf16>
    %cst_162 = arith.constant dense<0.000000e+00> : vector<8x8xf32>
    %252 = tpu.matmul %247, %249, %cst_162 {dimension_numbers = #tpu.dot_dimension_numbers<[1], [1], [0], [0], [0, 0, 1, 0], [], []>} : vector<8x8xbf16>, vector<8x8xbf16>, vector<8x8xf32> -> vector<8x8xf32>
    %cst_163 = arith.constant 0.353553385 : f32
    %253 = vector.broadcast %cst_163 : f32 to vector<8x8xf32>
    %254 = arith.mulf %252, %253 : vector<8x8xf32>
    %cst_164 = arith.constant dense<0xFF800000> : vector<8xf32>
    %255 = vector.multi_reduction <maximumf>, %254, %cst_164 [1] : vector<8x8xf32> to vector<8xf32>
    %256 = vector.shape_cast %255 : vector<8xf32> to vector<8x1xf32>
    %257 = vector.broadcast %256 : vector<8x1xf32> to vector<8x8xf32>
    %258 = arith.subf %254, %257 : vector<8x8xf32>
    %259 = math.exp %258 : vector<8x8xf32>
    %cst_165 = arith.constant dense<0.000000e+00> : vector<8xf32>
    %260 = vector.multi_reduction <add>, %259, %cst_165 [1] : vector<8x8xf32> to vector<8xf32>
    %261 = vector.shape_cast %260 : vector<8xf32> to vector<8x1xf32>
    %262 = tpu.reciprocal %261 {approx = true} : vector<8x1xf32> -> vector<8x1xf32>
    %263 = vector.broadcast %262 : vector<8x1xf32> to vector<8x8xf32>
    %264 = arith.mulf %259, %263 : vector<8x8xf32>
    %265 = arith.truncf %264 : vector<8x8xf32> to vector<8x8xbf16>
    %cst_166 = arith.constant dense<0.000000e+00> : vector<8x8xf32>
    %266 = tpu.matmul %265, %251, %cst_166 {dimension_numbers = #tpu.dot_dimension_numbers<[1], [0], [0], [1], [0, 0, 1, 1], [], []>} : vector<8x8xbf16>, vector<8x8xbf16>, vector<8x8xf32> -> vector<8x8xf32>
    %267 = arith.truncf %266 : vector<8x8xf32> to vector<8x8xbf16>
    %c0_167 = arith.constant 0 : index
    %c1_168 = arith.constant 1 : index
    %c0_169 = arith.constant 0 : index
    %c0_170 = arith.constant 0 : index
    %268 = vector.load %arg8[%c0_167, %c1_168, %c0_169, %c0_170] : memref<2x4x8x32xbf16, #tpu.memory_space<vmem>>, vector<1x1x8x32xbf16>
    %269 = vector.shape_cast %268 : vector<1x1x8x32xbf16> to vector<8x32xbf16>
    %cst_171 = arith.constant dense<0.000000e+00> : vector<8x32xf32>
    %270 = tpu.matmul %267, %269, %cst_171 {dimension_numbers = #tpu.dot_dimension_numbers<[1], [0], [0], [1], [0, 0, 1, 1], [], []>} : vector<8x8xbf16>, vector<8x32xbf16>, vector<8x32xf32> -> vector<8x32xf32>
    %271 = arith.addf %245, %270 : vector<8x32xf32>
    %272 = vector.extract_strided_slice %74 {offsets = [8, 0], sizes = [8, 8], strides = [1, 1]} : vector<16x8xf32> to vector<8x8xf32>
    %273 = arith.truncf %272 : vector<8x8xf32> to vector<8x8xbf16>
    %274 = vector.extract_strided_slice %81 {offsets = [8, 0], sizes = [8, 8], strides = [1, 1]} : vector<16x8xf32> to vector<8x8xf32>
    %275 = arith.truncf %274 : vector<8x8xf32> to vector<8x8xbf16>
    %276 = vector.extract_strided_slice %88 {offsets = [8, 0], sizes = [8, 8], strides = [1, 1]} : vector<16x8xf32> to vector<8x8xf32>
    %277 = arith.truncf %276 : vector<8x8xf32> to vector<8x8xbf16>
    %cst_172 = arith.constant dense<0.000000e+00> : vector<8x8xf32>
    %278 = tpu.matmul %273, %275, %cst_172 {dimension_numbers = #tpu.dot_dimension_numbers<[1], [1], [0], [0], [0, 0, 1, 0], [], []>} : vector<8x8xbf16>, vector<8x8xbf16>, vector<8x8xf32> -> vector<8x8xf32>
    %cst_173 = arith.constant 0.353553385 : f32
    %279 = vector.broadcast %cst_173 : f32 to vector<8x8xf32>
    %280 = arith.mulf %278, %279 : vector<8x8xf32>
    %cst_174 = arith.constant dense<0xFF800000> : vector<8xf32>
    %281 = vector.multi_reduction <maximumf>, %280, %cst_174 [1] : vector<8x8xf32> to vector<8xf32>
    %282 = vector.shape_cast %281 : vector<8xf32> to vector<8x1xf32>
    %283 = vector.broadcast %282 : vector<8x1xf32> to vector<8x8xf32>
    %284 = arith.subf %280, %283 : vector<8x8xf32>
    %285 = math.exp %284 : vector<8x8xf32>
    %cst_175 = arith.constant dense<0.000000e+00> : vector<8xf32>
    %286 = vector.multi_reduction <add>, %285, %cst_175 [1] : vector<8x8xf32> to vector<8xf32>
    %287 = vector.shape_cast %286 : vector<8xf32> to vector<8x1xf32>
    %288 = tpu.reciprocal %287 {approx = true} : vector<8x1xf32> -> vector<8x1xf32>
    %289 = vector.broadcast %288 : vector<8x1xf32> to vector<8x8xf32>
    %290 = arith.mulf %285, %289 : vector<8x8xf32>
    %291 = arith.truncf %290 : vector<8x8xf32> to vector<8x8xbf16>
    %cst_176 = arith.constant dense<0.000000e+00> : vector<8x8xf32>
    %292 = tpu.matmul %291, %277, %cst_176 {dimension_numbers = #tpu.dot_dimension_numbers<[1], [0], [0], [1], [0, 0, 1, 1], [], []>} : vector<8x8xbf16>, vector<8x8xbf16>, vector<8x8xf32> -> vector<8x8xf32>
    %293 = arith.truncf %292 : vector<8x8xf32> to vector<8x8xbf16>
    %c0_177 = arith.constant 0 : index
    %c2_178 = arith.constant 2 : index
    %c0_179 = arith.constant 0 : index
    %c0_180 = arith.constant 0 : index
    %294 = vector.load %arg8[%c0_177, %c2_178, %c0_179, %c0_180] : memref<2x4x8x32xbf16, #tpu.memory_space<vmem>>, vector<1x1x8x32xbf16>
    %295 = vector.shape_cast %294 : vector<1x1x8x32xbf16> to vector<8x32xbf16>
    %cst_181 = arith.constant dense<0.000000e+00> : vector<8x32xf32>
    %296 = tpu.matmul %293, %295, %cst_181 {dimension_numbers = #tpu.dot_dimension_numbers<[1], [0], [0], [1], [0, 0, 1, 1], [], []>} : vector<8x8xbf16>, vector<8x32xbf16>, vector<8x32xf32> -> vector<8x32xf32>
    %297 = arith.addf %271, %296 : vector<8x32xf32>
    %298 = vector.extract_strided_slice %95 {offsets = [8, 0], sizes = [8, 8], strides = [1, 1]} : vector<16x8xf32> to vector<8x8xf32>
    %299 = arith.truncf %298 : vector<8x8xf32> to vector<8x8xbf16>
    %300 = vector.extract_strided_slice %102 {offsets = [8, 0], sizes = [8, 8], strides = [1, 1]} : vector<16x8xf32> to vector<8x8xf32>
    %301 = arith.truncf %300 : vector<8x8xf32> to vector<8x8xbf16>
    %302 = vector.extract_strided_slice %109 {offsets = [8, 0], sizes = [8, 8], strides = [1, 1]} : vector<16x8xf32> to vector<8x8xf32>
    %303 = arith.truncf %302 : vector<8x8xf32> to vector<8x8xbf16>
    %cst_182 = arith.constant dense<0.000000e+00> : vector<8x8xf32>
    %304 = tpu.matmul %299, %301, %cst_182 {dimension_numbers = #tpu.dot_dimension_numbers<[1], [1], [0], [0], [0, 0, 1, 0], [], []>} : vector<8x8xbf16>, vector<8x8xbf16>, vector<8x8xf32> -> vector<8x8xf32>
    %cst_183 = arith.constant 0.353553385 : f32
    %305 = vector.broadcast %cst_183 : f32 to vector<8x8xf32>
    %306 = arith.mulf %304, %305 : vector<8x8xf32>
    %cst_184 = arith.constant dense<0xFF800000> : vector<8xf32>
    %307 = vector.multi_reduction <maximumf>, %306, %cst_184 [1] : vector<8x8xf32> to vector<8xf32>
    %308 = vector.shape_cast %307 : vector<8xf32> to vector<8x1xf32>
    %309 = vector.broadcast %308 : vector<8x1xf32> to vector<8x8xf32>
    %310 = arith.subf %306, %309 : vector<8x8xf32>
    %311 = math.exp %310 : vector<8x8xf32>
    %cst_185 = arith.constant dense<0.000000e+00> : vector<8xf32>
    %312 = vector.multi_reduction <add>, %311, %cst_185 [1] : vector<8x8xf32> to vector<8xf32>
    %313 = vector.shape_cast %312 : vector<8xf32> to vector<8x1xf32>
    %314 = tpu.reciprocal %313 {approx = true} : vector<8x1xf32> -> vector<8x1xf32>
    %315 = vector.broadcast %314 : vector<8x1xf32> to vector<8x8xf32>
    %316 = arith.mulf %311, %315 : vector<8x8xf32>
    %317 = arith.truncf %316 : vector<8x8xf32> to vector<8x8xbf16>
    %cst_186 = arith.constant dense<0.000000e+00> : vector<8x8xf32>
    %318 = tpu.matmul %317, %303, %cst_186 {dimension_numbers = #tpu.dot_dimension_numbers<[1], [0], [0], [1], [0, 0, 1, 1], [], []>} : vector<8x8xbf16>, vector<8x8xbf16>, vector<8x8xf32> -> vector<8x8xf32>
    %319 = arith.truncf %318 : vector<8x8xf32> to vector<8x8xbf16>
    %c0_187 = arith.constant 0 : index
    %c3_188 = arith.constant 3 : index
    %c0_189 = arith.constant 0 : index
    %c0_190 = arith.constant 0 : index
    %320 = vector.load %arg8[%c0_187, %c3_188, %c0_189, %c0_190] : memref<2x4x8x32xbf16, #tpu.memory_space<vmem>>, vector<1x1x8x32xbf16>
    %321 = vector.shape_cast %320 : vector<1x1x8x32xbf16> to vector<8x32xbf16>
    %cst_191 = arith.constant dense<0.000000e+00> : vector<8x32xf32>
    %322 = tpu.matmul %319, %321, %cst_191 {dimension_numbers = #tpu.dot_dimension_numbers<[1], [0], [0], [1], [0, 0, 1, 1], [], []>} : vector<8x8xbf16>, vector<8x32xbf16>, vector<8x32xf32> -> vector<8x32xf32>
    %323 = arith.addf %297, %322 : vector<8x32xf32>
    %324 = vector.broadcast %111 : vector<1x32xf32> to vector<8x32xf32>
    %325 = arith.addf %323, %324 : vector<8x32xf32>
    %326 = tpu.concatenate %218, %325 in 0 : vector<8x32xf32>, vector<8x32xf32> -> vector<16x32xf32>
    %327 = arith.addf %24, %326 : vector<16x32xf32>
    %cst_192 = arith.constant dense<0.000000e+00> : vector<16xf32>
    %328 = vector.multi_reduction <add>, %327, %cst_192 [1] : vector<16x32xf32> to vector<16xf32>
    %329 = vector.shape_cast %328 : vector<16xf32> to vector<16x1xf32>
    %cst_193 = arith.constant 3.200000e+01 : f32
    %330 = vector.broadcast %cst_193 : f32 to vector<16x1xf32>
    %331 = arith.divf %329, %330 : vector<16x1xf32>
    %332 = arith.mulf %327, %327 : vector<16x32xf32>
    %cst_194 = arith.constant dense<0.000000e+00> : vector<16xf32>
    %333 = vector.multi_reduction <add>, %332, %cst_194 [1] : vector<16x32xf32> to vector<16xf32>
    %334 = vector.shape_cast %333 : vector<16xf32> to vector<16x1xf32>
    %cst_195 = arith.constant 3.200000e+01 : f32
    %335 = vector.broadcast %cst_195 : f32 to vector<16x1xf32>
    %336 = arith.divf %334, %335 : vector<16x1xf32>
    %337 = vector.broadcast %331 : vector<16x1xf32> to vector<16x32xf32>
    %338 = arith.subf %327, %337 : vector<16x32xf32>
    %339 = arith.mulf %331, %331 : vector<16x1xf32>
    %340 = arith.subf %336, %339 : vector<16x1xf32>
    %cst_196 = arith.constant 9.99999974E-6 : f32
    %341 = vector.broadcast %cst_196 : f32 to vector<16x1xf32>
    %342 = arith.addf %340, %341 : vector<16x1xf32>
    %343 = math.rsqrt %342 : vector<16x1xf32>
    %344 = vector.broadcast %343 : vector<16x1xf32> to vector<16x32xf32>
    %345 = arith.mulf %338, %344 : vector<16x32xf32>
    %c0_197 = arith.constant 0 : index
    %c1_198 = arith.constant 1 : index
    %c0_199 = arith.constant 0 : index
    %c0_200 = arith.constant 0 : index
    %346 = vector.load %arg9[%c0_197, %c1_198, %c0_199, %c0_200] : memref<2x6x1x32xf32, #tpu.memory_space<vmem>>, vector<1x1x1x32xf32>
    %347 = vector.shape_cast %346 : vector<1x1x1x32xf32> to vector<1x32xf32>
    %348 = vector.broadcast %347 : vector<1x32xf32> to vector<16x32xf32>
    %349 = arith.mulf %345, %348 : vector<16x32xf32>
    %c0_201 = arith.constant 0 : index
    %c2_202 = arith.constant 2 : index
    %c0_203 = arith.constant 0 : index
    %c0_204 = arith.constant 0 : index
    %350 = vector.load %arg9[%c0_201, %c2_202, %c0_203, %c0_204] : memref<2x6x1x32xf32, #tpu.memory_space<vmem>>, vector<1x1x1x32xf32>
    %351 = vector.shape_cast %350 : vector<1x1x1x32xf32> to vector<1x32xf32>
    %352 = vector.broadcast %351 : vector<1x32xf32> to vector<16x32xf32>
    %353 = arith.addf %349, %352 : vector<16x32xf32>
    %354 = arith.truncf %353 : vector<16x32xf32> to vector<16x32xbf16>
    %c0_205 = arith.constant 0 : index
    %c0_206 = arith.constant 0 : index
    %c0_207 = arith.constant 0 : index
    %355 = vector.load %arg10[%c0_205, %c0_206, %c0_207] : memref<2x32x128xbf16, #tpu.memory_space<vmem>>, vector<1x32x128xbf16>
    %356 = vector.shape_cast %355 : vector<1x32x128xbf16> to vector<32x128xbf16>
    %cst_208 = arith.constant dense<0.000000e+00> : vector<16x128xf32>
    %357 = tpu.matmul %354, %356, %cst_208 {dimension_numbers = #tpu.dot_dimension_numbers<[1], [0], [0], [1], [0, 0, 1, 1], [], []>} : vector<16x32xbf16>, vector<32x128xbf16>, vector<16x128xf32> -> vector<16x128xf32>
    %c0_209 = arith.constant 0 : index
    %c0_210 = arith.constant 0 : index
    %c0_211 = arith.constant 0 : index
    %358 = vector.load %arg11[%c0_209, %c0_210, %c0_211] : memref<2x1x128xf32, #tpu.memory_space<vmem>>, vector<1x1x128xf32>
    %359 = vector.shape_cast %358 : vector<1x1x128xf32> to vector<1x128xf32>
    %360 = vector.broadcast %359 : vector<1x128xf32> to vector<16x128xf32>
    %361 = arith.addf %357, %360 : vector<16x128xf32>
    %cst_212 = arith.constant 0.000000e+00 : f32
    %362 = vector.broadcast %cst_212 : f32 to vector<16x128xf32>
    %363 = arith.maximumf %361, %362 : vector<16x128xf32>
    %364 = arith.truncf %363 : vector<16x128xf32> to vector<16x128xbf16>
    %c0_213 = arith.constant 0 : index
    %c0_214 = arith.constant 0 : index
    %c0_215 = arith.constant 0 : index
    %365 = vector.load %arg12[%c0_213, %c0_214, %c0_215] : memref<2x128x32xbf16, #tpu.memory_space<vmem>>, vector<1x128x32xbf16>
    %366 = vector.shape_cast %365 : vector<1x128x32xbf16> to vector<128x32xbf16>
    %cst_216 = arith.constant dense<0.000000e+00> : vector<16x32xf32>
    %367 = tpu.matmul %364, %366, %cst_216 {dimension_numbers = #tpu.dot_dimension_numbers<[1], [0], [0], [1], [0, 0, 1, 1], [], []>} : vector<16x128xbf16>, vector<128x32xbf16>, vector<16x32xf32> -> vector<16x32xf32>
    %c0_217 = arith.constant 0 : index
    %c3_218 = arith.constant 3 : index
    %c0_219 = arith.constant 0 : index
    %c0_220 = arith.constant 0 : index
    %368 = vector.load %arg9[%c0_217, %c3_218, %c0_219, %c0_220] : memref<2x6x1x32xf32, #tpu.memory_space<vmem>>, vector<1x1x1x32xf32>
    %369 = vector.shape_cast %368 : vector<1x1x1x32xf32> to vector<1x32xf32>
    %370 = vector.broadcast %369 : vector<1x32xf32> to vector<16x32xf32>
    %371 = arith.addf %367, %370 : vector<16x32xf32>
    %372 = arith.addf %353, %371 : vector<16x32xf32>
    %cst_221 = arith.constant dense<0.000000e+00> : vector<16xf32>
    %373 = vector.multi_reduction <add>, %372, %cst_221 [1] : vector<16x32xf32> to vector<16xf32>
    %374 = vector.shape_cast %373 : vector<16xf32> to vector<16x1xf32>
    %cst_222 = arith.constant 3.200000e+01 : f32
    %375 = vector.broadcast %cst_222 : f32 to vector<16x1xf32>
    %376 = arith.divf %374, %375 : vector<16x1xf32>
    %377 = arith.mulf %372, %372 : vector<16x32xf32>
    %cst_223 = arith.constant dense<0.000000e+00> : vector<16xf32>
    %378 = vector.multi_reduction <add>, %377, %cst_223 [1] : vector<16x32xf32> to vector<16xf32>
    %379 = vector.shape_cast %378 : vector<16xf32> to vector<16x1xf32>
    %cst_224 = arith.constant 3.200000e+01 : f32
    %380 = vector.broadcast %cst_224 : f32 to vector<16x1xf32>
    %381 = arith.divf %379, %380 : vector<16x1xf32>
    %382 = vector.broadcast %376 : vector<16x1xf32> to vector<16x32xf32>
    %383 = arith.subf %372, %382 : vector<16x32xf32>
    %384 = arith.mulf %376, %376 : vector<16x1xf32>
    %385 = arith.subf %381, %384 : vector<16x1xf32>
    %cst_225 = arith.constant 9.99999974E-6 : f32
    %386 = vector.broadcast %cst_225 : f32 to vector<16x1xf32>
    %387 = arith.addf %385, %386 : vector<16x1xf32>
    %388 = math.rsqrt %387 : vector<16x1xf32>
    %389 = vector.broadcast %388 : vector<16x1xf32> to vector<16x32xf32>
    %390 = arith.mulf %383, %389 : vector<16x32xf32>
    %c0_226 = arith.constant 0 : index
    %c4_227 = arith.constant 4 : index
    %c0_228 = arith.constant 0 : index
    %c0_229 = arith.constant 0 : index
    %391 = vector.load %arg9[%c0_226, %c4_227, %c0_228, %c0_229] : memref<2x6x1x32xf32, #tpu.memory_space<vmem>>, vector<1x1x1x32xf32>
    %392 = vector.shape_cast %391 : vector<1x1x1x32xf32> to vector<1x32xf32>
    %393 = vector.broadcast %392 : vector<1x32xf32> to vector<16x32xf32>
    %394 = arith.mulf %390, %393 : vector<16x32xf32>
    %c0_230 = arith.constant 0 : index
    %c5_231 = arith.constant 5 : index
    %c0_232 = arith.constant 0 : index
    %c0_233 = arith.constant 0 : index
    %395 = vector.load %arg9[%c0_230, %c5_231, %c0_232, %c0_233] : memref<2x6x1x32xf32, #tpu.memory_space<vmem>>, vector<1x1x1x32xf32>
    %396 = vector.shape_cast %395 : vector<1x1x1x32xf32> to vector<1x32xf32>
    %397 = vector.broadcast %396 : vector<1x32xf32> to vector<16x32xf32>
    %398 = arith.addf %394, %397 : vector<16x32xf32>
    %399 = arith.truncf %398 : vector<16x32xf32> to vector<16x32xbf16>
    %c1_234 = arith.constant 1 : index
    %c0_235 = arith.constant 0 : index
    %c0_236 = arith.constant 0 : index
    %c0_237 = arith.constant 0 : index
    %400 = vector.load %arg6[%c1_234, %c0_235, %c0_236, %c0_237] : memref<2x12x32x8xbf16, #tpu.memory_space<vmem>>, vector<1x1x32x8xbf16>
    %401 = vector.shape_cast %400 : vector<1x1x32x8xbf16> to vector<32x8xbf16>
    %cst_238 = arith.constant dense<0.000000e+00> : vector<16x8xf32>
    %402 = tpu.matmul %399, %401, %cst_238 {dimension_numbers = #tpu.dot_dimension_numbers<[1], [0], [0], [1], [0, 0, 1, 1], [], []>} : vector<16x32xbf16>, vector<32x8xbf16>, vector<16x8xf32> -> vector<16x8xf32>
    %c1_239 = arith.constant 1 : index
    %c0_240 = arith.constant 0 : index
    %c0_241 = arith.constant 0 : index
    %c0_242 = arith.constant 0 : index
    %403 = vector.load %arg7[%c1_239, %c0_240, %c0_241, %c0_242] : memref<2x12x1x8xf32, #tpu.memory_space<vmem>>, vector<1x1x1x8xf32>
    %404 = vector.shape_cast %403 : vector<1x1x1x8xf32> to vector<1x8xf32>
    %405 = vector.broadcast %404 : vector<1x8xf32> to vector<16x8xf32>
    %406 = arith.addf %402, %405 : vector<16x8xf32>
    %c1_243 = arith.constant 1 : index
    %c4_244 = arith.constant 4 : index
    %c0_245 = arith.constant 0 : index
    %c0_246 = arith.constant 0 : index
    %407 = vector.load %arg6[%c1_243, %c4_244, %c0_245, %c0_246] : memref<2x12x32x8xbf16, #tpu.memory_space<vmem>>, vector<1x1x32x8xbf16>
    %408 = vector.shape_cast %407 : vector<1x1x32x8xbf16> to vector<32x8xbf16>
    %cst_247 = arith.constant dense<0.000000e+00> : vector<16x8xf32>
    %409 = tpu.matmul %399, %408, %cst_247 {dimension_numbers = #tpu.dot_dimension_numbers<[1], [0], [0], [1], [0, 0, 1, 1], [], []>} : vector<16x32xbf16>, vector<32x8xbf16>, vector<16x8xf32> -> vector<16x8xf32>
    %c1_248 = arith.constant 1 : index
    %c4_249 = arith.constant 4 : index
    %c0_250 = arith.constant 0 : index
    %c0_251 = arith.constant 0 : index
    %410 = vector.load %arg7[%c1_248, %c4_249, %c0_250, %c0_251] : memref<2x12x1x8xf32, #tpu.memory_space<vmem>>, vector<1x1x1x8xf32>
    %411 = vector.shape_cast %410 : vector<1x1x1x8xf32> to vector<1x8xf32>
    %412 = vector.broadcast %411 : vector<1x8xf32> to vector<16x8xf32>
    %413 = arith.addf %409, %412 : vector<16x8xf32>
    %c1_252 = arith.constant 1 : index
    %c8_253 = arith.constant 8 : index
    %c0_254 = arith.constant 0 : index
    %c0_255 = arith.constant 0 : index
    %414 = vector.load %arg6[%c1_252, %c8_253, %c0_254, %c0_255] : memref<2x12x32x8xbf16, #tpu.memory_space<vmem>>, vector<1x1x32x8xbf16>
    %415 = vector.shape_cast %414 : vector<1x1x32x8xbf16> to vector<32x8xbf16>
    %cst_256 = arith.constant dense<0.000000e+00> : vector<16x8xf32>
    %416 = tpu.matmul %399, %415, %cst_256 {dimension_numbers = #tpu.dot_dimension_numbers<[1], [0], [0], [1], [0, 0, 1, 1], [], []>} : vector<16x32xbf16>, vector<32x8xbf16>, vector<16x8xf32> -> vector<16x8xf32>
    %c1_257 = arith.constant 1 : index
    %c8_258 = arith.constant 8 : index
    %c0_259 = arith.constant 0 : index
    %c0_260 = arith.constant 0 : index
    %417 = vector.load %arg7[%c1_257, %c8_258, %c0_259, %c0_260] : memref<2x12x1x8xf32, #tpu.memory_space<vmem>>, vector<1x1x1x8xf32>
    %418 = vector.shape_cast %417 : vector<1x1x1x8xf32> to vector<1x8xf32>
    %419 = vector.broadcast %418 : vector<1x8xf32> to vector<16x8xf32>
    %420 = arith.addf %416, %419 : vector<16x8xf32>
    %c1_261 = arith.constant 1 : index
    %c1_262 = arith.constant 1 : index
    %c0_263 = arith.constant 0 : index
    %c0_264 = arith.constant 0 : index
    %421 = vector.load %arg6[%c1_261, %c1_262, %c0_263, %c0_264] : memref<2x12x32x8xbf16, #tpu.memory_space<vmem>>, vector<1x1x32x8xbf16>
    %422 = vector.shape_cast %421 : vector<1x1x32x8xbf16> to vector<32x8xbf16>
    %cst_265 = arith.constant dense<0.000000e+00> : vector<16x8xf32>
    %423 = tpu.matmul %399, %422, %cst_265 {dimension_numbers = #tpu.dot_dimension_numbers<[1], [0], [0], [1], [0, 0, 1, 1], [], []>} : vector<16x32xbf16>, vector<32x8xbf16>, vector<16x8xf32> -> vector<16x8xf32>
    %c1_266 = arith.constant 1 : index
    %c1_267 = arith.constant 1 : index
    %c0_268 = arith.constant 0 : index
    %c0_269 = arith.constant 0 : index
    %424 = vector.load %arg7[%c1_266, %c1_267, %c0_268, %c0_269] : memref<2x12x1x8xf32, #tpu.memory_space<vmem>>, vector<1x1x1x8xf32>
    %425 = vector.shape_cast %424 : vector<1x1x1x8xf32> to vector<1x8xf32>
    %426 = vector.broadcast %425 : vector<1x8xf32> to vector<16x8xf32>
    %427 = arith.addf %423, %426 : vector<16x8xf32>
    %c1_270 = arith.constant 1 : index
    %c5_271 = arith.constant 5 : index
    %c0_272 = arith.constant 0 : index
    %c0_273 = arith.constant 0 : index
    %428 = vector.load %arg6[%c1_270, %c5_271, %c0_272, %c0_273] : memref<2x12x32x8xbf16, #tpu.memory_space<vmem>>, vector<1x1x32x8xbf16>
    %429 = vector.shape_cast %428 : vector<1x1x32x8xbf16> to vector<32x8xbf16>
    %cst_274 = arith.constant dense<0.000000e+00> : vector<16x8xf32>
    %430 = tpu.matmul %399, %429, %cst_274 {dimension_numbers = #tpu.dot_dimension_numbers<[1], [0], [0], [1], [0, 0, 1, 1], [], []>} : vector<16x32xbf16>, vector<32x8xbf16>, vector<16x8xf32> -> vector<16x8xf32>
    %c1_275 = arith.constant 1 : index
    %c5_276 = arith.constant 5 : index
    %c0_277 = arith.constant 0 : index
    %c0_278 = arith.constant 0 : index
    %431 = vector.load %arg7[%c1_275, %c5_276, %c0_277, %c0_278] : memref<2x12x1x8xf32, #tpu.memory_space<vmem>>, vector<1x1x1x8xf32>
    %432 = vector.shape_cast %431 : vector<1x1x1x8xf32> to vector<1x8xf32>
    %433 = vector.broadcast %432 : vector<1x8xf32> to vector<16x8xf32>
    %434 = arith.addf %430, %433 : vector<16x8xf32>
    %c1_279 = arith.constant 1 : index
    %c9_280 = arith.constant 9 : index
    %c0_281 = arith.constant 0 : index
    %c0_282 = arith.constant 0 : index
    %435 = vector.load %arg6[%c1_279, %c9_280, %c0_281, %c0_282] : memref<2x12x32x8xbf16, #tpu.memory_space<vmem>>, vector<1x1x32x8xbf16>
    %436 = vector.shape_cast %435 : vector<1x1x32x8xbf16> to vector<32x8xbf16>
    %cst_283 = arith.constant dense<0.000000e+00> : vector<16x8xf32>
    %437 = tpu.matmul %399, %436, %cst_283 {dimension_numbers = #tpu.dot_dimension_numbers<[1], [0], [0], [1], [0, 0, 1, 1], [], []>} : vector<16x32xbf16>, vector<32x8xbf16>, vector<16x8xf32> -> vector<16x8xf32>
    %c1_284 = arith.constant 1 : index
    %c9_285 = arith.constant 9 : index
    %c0_286 = arith.constant 0 : index
    %c0_287 = arith.constant 0 : index
    %438 = vector.load %arg7[%c1_284, %c9_285, %c0_286, %c0_287] : memref<2x12x1x8xf32, #tpu.memory_space<vmem>>, vector<1x1x1x8xf32>
    %439 = vector.shape_cast %438 : vector<1x1x1x8xf32> to vector<1x8xf32>
    %440 = vector.broadcast %439 : vector<1x8xf32> to vector<16x8xf32>
    %441 = arith.addf %437, %440 : vector<16x8xf32>
    %c1_288 = arith.constant 1 : index
    %c2_289 = arith.constant 2 : index
    %c0_290 = arith.constant 0 : index
    %c0_291 = arith.constant 0 : index
    %442 = vector.load %arg6[%c1_288, %c2_289, %c0_290, %c0_291] : memref<2x12x32x8xbf16, #tpu.memory_space<vmem>>, vector<1x1x32x8xbf16>
    %443 = vector.shape_cast %442 : vector<1x1x32x8xbf16> to vector<32x8xbf16>
    %cst_292 = arith.constant dense<0.000000e+00> : vector<16x8xf32>
    %444 = tpu.matmul %399, %443, %cst_292 {dimension_numbers = #tpu.dot_dimension_numbers<[1], [0], [0], [1], [0, 0, 1, 1], [], []>} : vector<16x32xbf16>, vector<32x8xbf16>, vector<16x8xf32> -> vector<16x8xf32>
    %c1_293 = arith.constant 1 : index
    %c2_294 = arith.constant 2 : index
    %c0_295 = arith.constant 0 : index
    %c0_296 = arith.constant 0 : index
    %445 = vector.load %arg7[%c1_293, %c2_294, %c0_295, %c0_296] : memref<2x12x1x8xf32, #tpu.memory_space<vmem>>, vector<1x1x1x8xf32>
    %446 = vector.shape_cast %445 : vector<1x1x1x8xf32> to vector<1x8xf32>
    %447 = vector.broadcast %446 : vector<1x8xf32> to vector<16x8xf32>
    %448 = arith.addf %444, %447 : vector<16x8xf32>
    %c1_297 = arith.constant 1 : index
    %c6_298 = arith.constant 6 : index
    %c0_299 = arith.constant 0 : index
    %c0_300 = arith.constant 0 : index
    %449 = vector.load %arg6[%c1_297, %c6_298, %c0_299, %c0_300] : memref<2x12x32x8xbf16, #tpu.memory_space<vmem>>, vector<1x1x32x8xbf16>
    %450 = vector.shape_cast %449 : vector<1x1x32x8xbf16> to vector<32x8xbf16>
    %cst_301 = arith.constant dense<0.000000e+00> : vector<16x8xf32>
    %451 = tpu.matmul %399, %450, %cst_301 {dimension_numbers = #tpu.dot_dimension_numbers<[1], [0], [0], [1], [0, 0, 1, 1], [], []>} : vector<16x32xbf16>, vector<32x8xbf16>, vector<16x8xf32> -> vector<16x8xf32>
    %c1_302 = arith.constant 1 : index
    %c6_303 = arith.constant 6 : index
    %c0_304 = arith.constant 0 : index
    %c0_305 = arith.constant 0 : index
    %452 = vector.load %arg7[%c1_302, %c6_303, %c0_304, %c0_305] : memref<2x12x1x8xf32, #tpu.memory_space<vmem>>, vector<1x1x1x8xf32>
    %453 = vector.shape_cast %452 : vector<1x1x1x8xf32> to vector<1x8xf32>
    %454 = vector.broadcast %453 : vector<1x8xf32> to vector<16x8xf32>
    %455 = arith.addf %451, %454 : vector<16x8xf32>
    %c1_306 = arith.constant 1 : index
    %c10_307 = arith.constant 10 : index
    %c0_308 = arith.constant 0 : index
    %c0_309 = arith.constant 0 : index
    %456 = vector.load %arg6[%c1_306, %c10_307, %c0_308, %c0_309] : memref<2x12x32x8xbf16, #tpu.memory_space<vmem>>, vector<1x1x32x8xbf16>
    %457 = vector.shape_cast %456 : vector<1x1x32x8xbf16> to vector<32x8xbf16>
    %cst_310 = arith.constant dense<0.000000e+00> : vector<16x8xf32>
    %458 = tpu.matmul %399, %457, %cst_310 {dimension_numbers = #tpu.dot_dimension_numbers<[1], [0], [0], [1], [0, 0, 1, 1], [], []>} : vector<16x32xbf16>, vector<32x8xbf16>, vector<16x8xf32> -> vector<16x8xf32>
    %c1_311 = arith.constant 1 : index
    %c10_312 = arith.constant 10 : index
    %c0_313 = arith.constant 0 : index
    %c0_314 = arith.constant 0 : index
    %459 = vector.load %arg7[%c1_311, %c10_312, %c0_313, %c0_314] : memref<2x12x1x8xf32, #tpu.memory_space<vmem>>, vector<1x1x1x8xf32>
    %460 = vector.shape_cast %459 : vector<1x1x1x8xf32> to vector<1x8xf32>
    %461 = vector.broadcast %460 : vector<1x8xf32> to vector<16x8xf32>
    %462 = arith.addf %458, %461 : vector<16x8xf32>
    %c1_315 = arith.constant 1 : index
    %c3_316 = arith.constant 3 : index
    %c0_317 = arith.constant 0 : index
    %c0_318 = arith.constant 0 : index
    %463 = vector.load %arg6[%c1_315, %c3_316, %c0_317, %c0_318] : memref<2x12x32x8xbf16, #tpu.memory_space<vmem>>, vector<1x1x32x8xbf16>
    %464 = vector.shape_cast %463 : vector<1x1x32x8xbf16> to vector<32x8xbf16>
    %cst_319 = arith.constant dense<0.000000e+00> : vector<16x8xf32>
    %465 = tpu.matmul %399, %464, %cst_319 {dimension_numbers = #tpu.dot_dimension_numbers<[1], [0], [0], [1], [0, 0, 1, 1], [], []>} : vector<16x32xbf16>, vector<32x8xbf16>, vector<16x8xf32> -> vector<16x8xf32>
    %c1_320 = arith.constant 1 : index
    %c3_321 = arith.constant 3 : index
    %c0_322 = arith.constant 0 : index
    %c0_323 = arith.constant 0 : index
    %466 = vector.load %arg7[%c1_320, %c3_321, %c0_322, %c0_323] : memref<2x12x1x8xf32, #tpu.memory_space<vmem>>, vector<1x1x1x8xf32>
    %467 = vector.shape_cast %466 : vector<1x1x1x8xf32> to vector<1x8xf32>
    %468 = vector.broadcast %467 : vector<1x8xf32> to vector<16x8xf32>
    %469 = arith.addf %465, %468 : vector<16x8xf32>
    %c1_324 = arith.constant 1 : index
    %c7_325 = arith.constant 7 : index
    %c0_326 = arith.constant 0 : index
    %c0_327 = arith.constant 0 : index
    %470 = vector.load %arg6[%c1_324, %c7_325, %c0_326, %c0_327] : memref<2x12x32x8xbf16, #tpu.memory_space<vmem>>, vector<1x1x32x8xbf16>
    %471 = vector.shape_cast %470 : vector<1x1x32x8xbf16> to vector<32x8xbf16>
    %cst_328 = arith.constant dense<0.000000e+00> : vector<16x8xf32>
    %472 = tpu.matmul %399, %471, %cst_328 {dimension_numbers = #tpu.dot_dimension_numbers<[1], [0], [0], [1], [0, 0, 1, 1], [], []>} : vector<16x32xbf16>, vector<32x8xbf16>, vector<16x8xf32> -> vector<16x8xf32>
    %c1_329 = arith.constant 1 : index
    %c7_330 = arith.constant 7 : index
    %c0_331 = arith.constant 0 : index
    %c0_332 = arith.constant 0 : index
    %473 = vector.load %arg7[%c1_329, %c7_330, %c0_331, %c0_332] : memref<2x12x1x8xf32, #tpu.memory_space<vmem>>, vector<1x1x1x8xf32>
    %474 = vector.shape_cast %473 : vector<1x1x1x8xf32> to vector<1x8xf32>
    %475 = vector.broadcast %474 : vector<1x8xf32> to vector<16x8xf32>
    %476 = arith.addf %472, %475 : vector<16x8xf32>
    %c1_333 = arith.constant 1 : index
    %c11_334 = arith.constant 11 : index
    %c0_335 = arith.constant 0 : index
    %c0_336 = arith.constant 0 : index
    %477 = vector.load %arg6[%c1_333, %c11_334, %c0_335, %c0_336] : memref<2x12x32x8xbf16, #tpu.memory_space<vmem>>, vector<1x1x32x8xbf16>
    %478 = vector.shape_cast %477 : vector<1x1x32x8xbf16> to vector<32x8xbf16>
    %cst_337 = arith.constant dense<0.000000e+00> : vector<16x8xf32>
    %479 = tpu.matmul %399, %478, %cst_337 {dimension_numbers = #tpu.dot_dimension_numbers<[1], [0], [0], [1], [0, 0, 1, 1], [], []>} : vector<16x32xbf16>, vector<32x8xbf16>, vector<16x8xf32> -> vector<16x8xf32>
    %c1_338 = arith.constant 1 : index
    %c11_339 = arith.constant 11 : index
    %c0_340 = arith.constant 0 : index
    %c0_341 = arith.constant 0 : index
    %480 = vector.load %arg7[%c1_338, %c11_339, %c0_340, %c0_341] : memref<2x12x1x8xf32, #tpu.memory_space<vmem>>, vector<1x1x1x8xf32>
    %481 = vector.shape_cast %480 : vector<1x1x1x8xf32> to vector<1x8xf32>
    %482 = vector.broadcast %481 : vector<1x8xf32> to vector<16x8xf32>
    %483 = arith.addf %479, %482 : vector<16x8xf32>
    %c1_342 = arith.constant 1 : index
    %c0_343 = arith.constant 0 : index
    %c0_344 = arith.constant 0 : index
    %c0_345 = arith.constant 0 : index
    %484 = vector.load %arg9[%c1_342, %c0_343, %c0_344, %c0_345] : memref<2x6x1x32xf32, #tpu.memory_space<vmem>>, vector<1x1x1x32xf32>
    %485 = vector.shape_cast %484 : vector<1x1x1x32xf32> to vector<1x32xf32>
    %cst_346 = arith.constant 0.000000e+00 : f32
    %486 = vector.broadcast %cst_346 : f32 to vector<8x32xf32>
    %487 = vector.extract_strided_slice %406 {offsets = [0, 0], sizes = [8, 8], strides = [1, 1]} : vector<16x8xf32> to vector<8x8xf32>
    %488 = arith.truncf %487 : vector<8x8xf32> to vector<8x8xbf16>
    %489 = vector.extract_strided_slice %413 {offsets = [0, 0], sizes = [8, 8], strides = [1, 1]} : vector<16x8xf32> to vector<8x8xf32>
    %490 = arith.truncf %489 : vector<8x8xf32> to vector<8x8xbf16>
    %491 = vector.extract_strided_slice %420 {offsets = [0, 0], sizes = [8, 8], strides = [1, 1]} : vector<16x8xf32> to vector<8x8xf32>
    %492 = arith.truncf %491 : vector<8x8xf32> to vector<8x8xbf16>
    %cst_347 = arith.constant dense<0.000000e+00> : vector<8x8xf32>
    %493 = tpu.matmul %488, %490, %cst_347 {dimension_numbers = #tpu.dot_dimension_numbers<[1], [1], [0], [0], [0, 0, 1, 0], [], []>} : vector<8x8xbf16>, vector<8x8xbf16>, vector<8x8xf32> -> vector<8x8xf32>
    %cst_348 = arith.constant 0.353553385 : f32
    %494 = vector.broadcast %cst_348 : f32 to vector<8x8xf32>
    %495 = arith.mulf %493, %494 : vector<8x8xf32>
    %cst_349 = arith.constant dense<0xFF800000> : vector<8xf32>
    %496 = vector.multi_reduction <maximumf>, %495, %cst_349 [1] : vector<8x8xf32> to vector<8xf32>
    %497 = vector.shape_cast %496 : vector<8xf32> to vector<8x1xf32>
    %498 = vector.broadcast %497 : vector<8x1xf32> to vector<8x8xf32>
    %499 = arith.subf %495, %498 : vector<8x8xf32>
    %500 = math.exp %499 : vector<8x8xf32>
    %cst_350 = arith.constant dense<0.000000e+00> : vector<8xf32>
    %501 = vector.multi_reduction <add>, %500, %cst_350 [1] : vector<8x8xf32> to vector<8xf32>
    %502 = vector.shape_cast %501 : vector<8xf32> to vector<8x1xf32>
    %503 = tpu.reciprocal %502 {approx = true} : vector<8x1xf32> -> vector<8x1xf32>
    %504 = vector.broadcast %503 : vector<8x1xf32> to vector<8x8xf32>
    %505 = arith.mulf %500, %504 : vector<8x8xf32>
    %506 = arith.truncf %505 : vector<8x8xf32> to vector<8x8xbf16>
    %cst_351 = arith.constant dense<0.000000e+00> : vector<8x8xf32>
    %507 = tpu.matmul %506, %492, %cst_351 {dimension_numbers = #tpu.dot_dimension_numbers<[1], [0], [0], [1], [0, 0, 1, 1], [], []>} : vector<8x8xbf16>, vector<8x8xbf16>, vector<8x8xf32> -> vector<8x8xf32>
    %508 = arith.truncf %507 : vector<8x8xf32> to vector<8x8xbf16>
    %c1_352 = arith.constant 1 : index
    %c0_353 = arith.constant 0 : index
    %c0_354 = arith.constant 0 : index
    %c0_355 = arith.constant 0 : index
    %509 = vector.load %arg8[%c1_352, %c0_353, %c0_354, %c0_355] : memref<2x4x8x32xbf16, #tpu.memory_space<vmem>>, vector<1x1x8x32xbf16>
    %510 = vector.shape_cast %509 : vector<1x1x8x32xbf16> to vector<8x32xbf16>
    %cst_356 = arith.constant dense<0.000000e+00> : vector<8x32xf32>
    %511 = tpu.matmul %508, %510, %cst_356 {dimension_numbers = #tpu.dot_dimension_numbers<[1], [0], [0], [1], [0, 0, 1, 1], [], []>} : vector<8x8xbf16>, vector<8x32xbf16>, vector<8x32xf32> -> vector<8x32xf32>
    %512 = arith.addf %486, %511 : vector<8x32xf32>
    %513 = vector.extract_strided_slice %427 {offsets = [0, 0], sizes = [8, 8], strides = [1, 1]} : vector<16x8xf32> to vector<8x8xf32>
    %514 = arith.truncf %513 : vector<8x8xf32> to vector<8x8xbf16>
    %515 = vector.extract_strided_slice %434 {offsets = [0, 0], sizes = [8, 8], strides = [1, 1]} : vector<16x8xf32> to vector<8x8xf32>
    %516 = arith.truncf %515 : vector<8x8xf32> to vector<8x8xbf16>
    %517 = vector.extract_strided_slice %441 {offsets = [0, 0], sizes = [8, 8], strides = [1, 1]} : vector<16x8xf32> to vector<8x8xf32>
    %518 = arith.truncf %517 : vector<8x8xf32> to vector<8x8xbf16>
    %cst_357 = arith.constant dense<0.000000e+00> : vector<8x8xf32>
    %519 = tpu.matmul %514, %516, %cst_357 {dimension_numbers = #tpu.dot_dimension_numbers<[1], [1], [0], [0], [0, 0, 1, 0], [], []>} : vector<8x8xbf16>, vector<8x8xbf16>, vector<8x8xf32> -> vector<8x8xf32>
    %cst_358 = arith.constant 0.353553385 : f32
    %520 = vector.broadcast %cst_358 : f32 to vector<8x8xf32>
    %521 = arith.mulf %519, %520 : vector<8x8xf32>
    %cst_359 = arith.constant dense<0xFF800000> : vector<8xf32>
    %522 = vector.multi_reduction <maximumf>, %521, %cst_359 [1] : vector<8x8xf32> to vector<8xf32>
    %523 = vector.shape_cast %522 : vector<8xf32> to vector<8x1xf32>
    %524 = vector.broadcast %523 : vector<8x1xf32> to vector<8x8xf32>
    %525 = arith.subf %521, %524 : vector<8x8xf32>
    %526 = math.exp %525 : vector<8x8xf32>
    %cst_360 = arith.constant dense<0.000000e+00> : vector<8xf32>
    %527 = vector.multi_reduction <add>, %526, %cst_360 [1] : vector<8x8xf32> to vector<8xf32>
    %528 = vector.shape_cast %527 : vector<8xf32> to vector<8x1xf32>
    %529 = tpu.reciprocal %528 {approx = true} : vector<8x1xf32> -> vector<8x1xf32>
    %530 = vector.broadcast %529 : vector<8x1xf32> to vector<8x8xf32>
    %531 = arith.mulf %526, %530 : vector<8x8xf32>
    %532 = arith.truncf %531 : vector<8x8xf32> to vector<8x8xbf16>
    %cst_361 = arith.constant dense<0.000000e+00> : vector<8x8xf32>
    %533 = tpu.matmul %532, %518, %cst_361 {dimension_numbers = #tpu.dot_dimension_numbers<[1], [0], [0], [1], [0, 0, 1, 1], [], []>} : vector<8x8xbf16>, vector<8x8xbf16>, vector<8x8xf32> -> vector<8x8xf32>
    %534 = arith.truncf %533 : vector<8x8xf32> to vector<8x8xbf16>
    %c1_362 = arith.constant 1 : index
    %c1_363 = arith.constant 1 : index
    %c0_364 = arith.constant 0 : index
    %c0_365 = arith.constant 0 : index
    %535 = vector.load %arg8[%c1_362, %c1_363, %c0_364, %c0_365] : memref<2x4x8x32xbf16, #tpu.memory_space<vmem>>, vector<1x1x8x32xbf16>
    %536 = vector.shape_cast %535 : vector<1x1x8x32xbf16> to vector<8x32xbf16>
    %cst_366 = arith.constant dense<0.000000e+00> : vector<8x32xf32>
    %537 = tpu.matmul %534, %536, %cst_366 {dimension_numbers = #tpu.dot_dimension_numbers<[1], [0], [0], [1], [0, 0, 1, 1], [], []>} : vector<8x8xbf16>, vector<8x32xbf16>, vector<8x32xf32> -> vector<8x32xf32>
    %538 = arith.addf %512, %537 : vector<8x32xf32>
    %539 = vector.extract_strided_slice %448 {offsets = [0, 0], sizes = [8, 8], strides = [1, 1]} : vector<16x8xf32> to vector<8x8xf32>
    %540 = arith.truncf %539 : vector<8x8xf32> to vector<8x8xbf16>
    %541 = vector.extract_strided_slice %455 {offsets = [0, 0], sizes = [8, 8], strides = [1, 1]} : vector<16x8xf32> to vector<8x8xf32>
    %542 = arith.truncf %541 : vector<8x8xf32> to vector<8x8xbf16>
    %543 = vector.extract_strided_slice %462 {offsets = [0, 0], sizes = [8, 8], strides = [1, 1]} : vector<16x8xf32> to vector<8x8xf32>
    %544 = arith.truncf %543 : vector<8x8xf32> to vector<8x8xbf16>
    %cst_367 = arith.constant dense<0.000000e+00> : vector<8x8xf32>
    %545 = tpu.matmul %540, %542, %cst_367 {dimension_numbers = #tpu.dot_dimension_numbers<[1], [1], [0], [0], [0, 0, 1, 0], [], []>} : vector<8x8xbf16>, vector<8x8xbf16>, vector<8x8xf32> -> vector<8x8xf32>
    %cst_368 = arith.constant 0.353553385 : f32
    %546 = vector.broadcast %cst_368 : f32 to vector<8x8xf32>
    %547 = arith.mulf %545, %546 : vector<8x8xf32>
    %cst_369 = arith.constant dense<0xFF800000> : vector<8xf32>
    %548 = vector.multi_reduction <maximumf>, %547, %cst_369 [1] : vector<8x8xf32> to vector<8xf32>
    %549 = vector.shape_cast %548 : vector<8xf32> to vector<8x1xf32>
    %550 = vector.broadcast %549 : vector<8x1xf32> to vector<8x8xf32>
    %551 = arith.subf %547, %550 : vector<8x8xf32>
    %552 = math.exp %551 : vector<8x8xf32>
    %cst_370 = arith.constant dense<0.000000e+00> : vector<8xf32>
    %553 = vector.multi_reduction <add>, %552, %cst_370 [1] : vector<8x8xf32> to vector<8xf32>
    %554 = vector.shape_cast %553 : vector<8xf32> to vector<8x1xf32>
    %555 = tpu.reciprocal %554 {approx = true} : vector<8x1xf32> -> vector<8x1xf32>
    %556 = vector.broadcast %555 : vector<8x1xf32> to vector<8x8xf32>
    %557 = arith.mulf %552, %556 : vector<8x8xf32>
    %558 = arith.truncf %557 : vector<8x8xf32> to vector<8x8xbf16>
    %cst_371 = arith.constant dense<0.000000e+00> : vector<8x8xf32>
    %559 = tpu.matmul %558, %544, %cst_371 {dimension_numbers = #tpu.dot_dimension_numbers<[1], [0], [0], [1], [0, 0, 1, 1], [], []>} : vector<8x8xbf16>, vector<8x8xbf16>, vector<8x8xf32> -> vector<8x8xf32>
    %560 = arith.truncf %559 : vector<8x8xf32> to vector<8x8xbf16>
    %c1_372 = arith.constant 1 : index
    %c2_373 = arith.constant 2 : index
    %c0_374 = arith.constant 0 : index
    %c0_375 = arith.constant 0 : index
    %561 = vector.load %arg8[%c1_372, %c2_373, %c0_374, %c0_375] : memref<2x4x8x32xbf16, #tpu.memory_space<vmem>>, vector<1x1x8x32xbf16>
    %562 = vector.shape_cast %561 : vector<1x1x8x32xbf16> to vector<8x32xbf16>
    %cst_376 = arith.constant dense<0.000000e+00> : vector<8x32xf32>
    %563 = tpu.matmul %560, %562, %cst_376 {dimension_numbers = #tpu.dot_dimension_numbers<[1], [0], [0], [1], [0, 0, 1, 1], [], []>} : vector<8x8xbf16>, vector<8x32xbf16>, vector<8x32xf32> -> vector<8x32xf32>
    %564 = arith.addf %538, %563 : vector<8x32xf32>
    %565 = vector.extract_strided_slice %469 {offsets = [0, 0], sizes = [8, 8], strides = [1, 1]} : vector<16x8xf32> to vector<8x8xf32>
    %566 = arith.truncf %565 : vector<8x8xf32> to vector<8x8xbf16>
    %567 = vector.extract_strided_slice %476 {offsets = [0, 0], sizes = [8, 8], strides = [1, 1]} : vector<16x8xf32> to vector<8x8xf32>
    %568 = arith.truncf %567 : vector<8x8xf32> to vector<8x8xbf16>
    %569 = vector.extract_strided_slice %483 {offsets = [0, 0], sizes = [8, 8], strides = [1, 1]} : vector<16x8xf32> to vector<8x8xf32>
    %570 = arith.truncf %569 : vector<8x8xf32> to vector<8x8xbf16>
    %cst_377 = arith.constant dense<0.000000e+00> : vector<8x8xf32>
    %571 = tpu.matmul %566, %568, %cst_377 {dimension_numbers = #tpu.dot_dimension_numbers<[1], [1], [0], [0], [0, 0, 1, 0], [], []>} : vector<8x8xbf16>, vector<8x8xbf16>, vector<8x8xf32> -> vector<8x8xf32>
    %cst_378 = arith.constant 0.353553385 : f32
    %572 = vector.broadcast %cst_378 : f32 to vector<8x8xf32>
    %573 = arith.mulf %571, %572 : vector<8x8xf32>
    %cst_379 = arith.constant dense<0xFF800000> : vector<8xf32>
    %574 = vector.multi_reduction <maximumf>, %573, %cst_379 [1] : vector<8x8xf32> to vector<8xf32>
    %575 = vector.shape_cast %574 : vector<8xf32> to vector<8x1xf32>
    %576 = vector.broadcast %575 : vector<8x1xf32> to vector<8x8xf32>
    %577 = arith.subf %573, %576 : vector<8x8xf32>
    %578 = math.exp %577 : vector<8x8xf32>
    %cst_380 = arith.constant dense<0.000000e+00> : vector<8xf32>
    %579 = vector.multi_reduction <add>, %578, %cst_380 [1] : vector<8x8xf32> to vector<8xf32>
    %580 = vector.shape_cast %579 : vector<8xf32> to vector<8x1xf32>
    %581 = tpu.reciprocal %580 {approx = true} : vector<8x1xf32> -> vector<8x1xf32>
    %582 = vector.broadcast %581 : vector<8x1xf32> to vector<8x8xf32>
    %583 = arith.mulf %578, %582 : vector<8x8xf32>
    %584 = arith.truncf %583 : vector<8x8xf32> to vector<8x8xbf16>
    %cst_381 = arith.constant dense<0.000000e+00> : vector<8x8xf32>
    %585 = tpu.matmul %584, %570, %cst_381 {dimension_numbers = #tpu.dot_dimension_numbers<[1], [0], [0], [1], [0, 0, 1, 1], [], []>} : vector<8x8xbf16>, vector<8x8xbf16>, vector<8x8xf32> -> vector<8x8xf32>
    %586 = arith.truncf %585 : vector<8x8xf32> to vector<8x8xbf16>
    %c1_382 = arith.constant 1 : index
    %c3_383 = arith.constant 3 : index
    %c0_384 = arith.constant 0 : index
    %c0_385 = arith.constant 0 : index
    %587 = vector.load %arg8[%c1_382, %c3_383, %c0_384, %c0_385] : memref<2x4x8x32xbf16, #tpu.memory_space<vmem>>, vector<1x1x8x32xbf16>
    %588 = vector.shape_cast %587 : vector<1x1x8x32xbf16> to vector<8x32xbf16>
    %cst_386 = arith.constant dense<0.000000e+00> : vector<8x32xf32>
    %589 = tpu.matmul %586, %588, %cst_386 {dimension_numbers = #tpu.dot_dimension_numbers<[1], [0], [0], [1], [0, 0, 1, 1], [], []>} : vector<8x8xbf16>, vector<8x32xbf16>, vector<8x32xf32> -> vector<8x32xf32>
    %590 = arith.addf %564, %589 : vector<8x32xf32>
    %591 = vector.broadcast %485 : vector<1x32xf32> to vector<8x32xf32>
    %592 = arith.addf %590, %591 : vector<8x32xf32>
    %cst_387 = arith.constant 0.000000e+00 : f32
    %593 = vector.broadcast %cst_387 : f32 to vector<8x32xf32>
    %594 = vector.extract_strided_slice %406 {offsets = [8, 0], sizes = [8, 8], strides = [1, 1]} : vector<16x8xf32> to vector<8x8xf32>
    %595 = arith.truncf %594 : vector<8x8xf32> to vector<8x8xbf16>
    %596 = vector.extract_strided_slice %413 {offsets = [8, 0], sizes = [8, 8], strides = [1, 1]} : vector<16x8xf32> to vector<8x8xf32>
    %597 = arith.truncf %596 : vector<8x8xf32> to vector<8x8xbf16>
    %598 = vector.extract_strided_slice %420 {offsets = [8, 0], sizes = [8, 8], strides = [1, 1]} : vector<16x8xf32> to vector<8x8xf32>
    %599 = arith.truncf %598 : vector<8x8xf32> to vector<8x8xbf16>
    %cst_388 = arith.constant dense<0.000000e+00> : vector<8x8xf32>
    %600 = tpu.matmul %595, %597, %cst_388 {dimension_numbers = #tpu.dot_dimension_numbers<[1], [1], [0], [0], [0, 0, 1, 0], [], []>} : vector<8x8xbf16>, vector<8x8xbf16>, vector<8x8xf32> -> vector<8x8xf32>
    %cst_389 = arith.constant 0.353553385 : f32
    %601 = vector.broadcast %cst_389 : f32 to vector<8x8xf32>
    %602 = arith.mulf %600, %601 : vector<8x8xf32>
    %cst_390 = arith.constant dense<0xFF800000> : vector<8xf32>
    %603 = vector.multi_reduction <maximumf>, %602, %cst_390 [1] : vector<8x8xf32> to vector<8xf32>
    %604 = vector.shape_cast %603 : vector<8xf32> to vector<8x1xf32>
    %605 = vector.broadcast %604 : vector<8x1xf32> to vector<8x8xf32>
    %606 = arith.subf %602, %605 : vector<8x8xf32>
    %607 = math.exp %606 : vector<8x8xf32>
    %cst_391 = arith.constant dense<0.000000e+00> : vector<8xf32>
    %608 = vector.multi_reduction <add>, %607, %cst_391 [1] : vector<8x8xf32> to vector<8xf32>
    %609 = vector.shape_cast %608 : vector<8xf32> to vector<8x1xf32>
    %610 = tpu.reciprocal %609 {approx = true} : vector<8x1xf32> -> vector<8x1xf32>
    %611 = vector.broadcast %610 : vector<8x1xf32> to vector<8x8xf32>
    %612 = arith.mulf %607, %611 : vector<8x8xf32>
    %613 = arith.truncf %612 : vector<8x8xf32> to vector<8x8xbf16>
    %cst_392 = arith.constant dense<0.000000e+00> : vector<8x8xf32>
    %614 = tpu.matmul %613, %599, %cst_392 {dimension_numbers = #tpu.dot_dimension_numbers<[1], [0], [0], [1], [0, 0, 1, 1], [], []>} : vector<8x8xbf16>, vector<8x8xbf16>, vector<8x8xf32> -> vector<8x8xf32>
    %615 = arith.truncf %614 : vector<8x8xf32> to vector<8x8xbf16>
    %c1_393 = arith.constant 1 : index
    %c0_394 = arith.constant 0 : index
    %c0_395 = arith.constant 0 : index
    %c0_396 = arith.constant 0 : index
    %616 = vector.load %arg8[%c1_393, %c0_394, %c0_395, %c0_396] : memref<2x4x8x32xbf16, #tpu.memory_space<vmem>>, vector<1x1x8x32xbf16>
    %617 = vector.shape_cast %616 : vector<1x1x8x32xbf16> to vector<8x32xbf16>
    %cst_397 = arith.constant dense<0.000000e+00> : vector<8x32xf32>
    %618 = tpu.matmul %615, %617, %cst_397 {dimension_numbers = #tpu.dot_dimension_numbers<[1], [0], [0], [1], [0, 0, 1, 1], [], []>} : vector<8x8xbf16>, vector<8x32xbf16>, vector<8x32xf32> -> vector<8x32xf32>
    %619 = arith.addf %593, %618 : vector<8x32xf32>
    %620 = vector.extract_strided_slice %427 {offsets = [8, 0], sizes = [8, 8], strides = [1, 1]} : vector<16x8xf32> to vector<8x8xf32>
    %621 = arith.truncf %620 : vector<8x8xf32> to vector<8x8xbf16>
    %622 = vector.extract_strided_slice %434 {offsets = [8, 0], sizes = [8, 8], strides = [1, 1]} : vector<16x8xf32> to vector<8x8xf32>
    %623 = arith.truncf %622 : vector<8x8xf32> to vector<8x8xbf16>
    %624 = vector.extract_strided_slice %441 {offsets = [8, 0], sizes = [8, 8], strides = [1, 1]} : vector<16x8xf32> to vector<8x8xf32>
    %625 = arith.truncf %624 : vector<8x8xf32> to vector<8x8xbf16>
    %cst_398 = arith.constant dense<0.000000e+00> : vector<8x8xf32>
    %626 = tpu.matmul %621, %623, %cst_398 {dimension_numbers = #tpu.dot_dimension_numbers<[1], [1], [0], [0], [0, 0, 1, 0], [], []>} : vector<8x8xbf16>, vector<8x8xbf16>, vector<8x8xf32> -> vector<8x8xf32>
    %cst_399 = arith.constant 0.353553385 : f32
    %627 = vector.broadcast %cst_399 : f32 to vector<8x8xf32>
    %628 = arith.mulf %626, %627 : vector<8x8xf32>
    %cst_400 = arith.constant dense<0xFF800000> : vector<8xf32>
    %629 = vector.multi_reduction <maximumf>, %628, %cst_400 [1] : vector<8x8xf32> to vector<8xf32>
    %630 = vector.shape_cast %629 : vector<8xf32> to vector<8x1xf32>
    %631 = vector.broadcast %630 : vector<8x1xf32> to vector<8x8xf32>
    %632 = arith.subf %628, %631 : vector<8x8xf32>
    %633 = math.exp %632 : vector<8x8xf32>
    %cst_401 = arith.constant dense<0.000000e+00> : vector<8xf32>
    %634 = vector.multi_reduction <add>, %633, %cst_401 [1] : vector<8x8xf32> to vector<8xf32>
    %635 = vector.shape_cast %634 : vector<8xf32> to vector<8x1xf32>
    %636 = tpu.reciprocal %635 {approx = true} : vector<8x1xf32> -> vector<8x1xf32>
    %637 = vector.broadcast %636 : vector<8x1xf32> to vector<8x8xf32>
    %638 = arith.mulf %633, %637 : vector<8x8xf32>
    %639 = arith.truncf %638 : vector<8x8xf32> to vector<8x8xbf16>
    %cst_402 = arith.constant dense<0.000000e+00> : vector<8x8xf32>
    %640 = tpu.matmul %639, %625, %cst_402 {dimension_numbers = #tpu.dot_dimension_numbers<[1], [0], [0], [1], [0, 0, 1, 1], [], []>} : vector<8x8xbf16>, vector<8x8xbf16>, vector<8x8xf32> -> vector<8x8xf32>
    %641 = arith.truncf %640 : vector<8x8xf32> to vector<8x8xbf16>
    %c1_403 = arith.constant 1 : index
    %c1_404 = arith.constant 1 : index
    %c0_405 = arith.constant 0 : index
    %c0_406 = arith.constant 0 : index
    %642 = vector.load %arg8[%c1_403, %c1_404, %c0_405, %c0_406] : memref<2x4x8x32xbf16, #tpu.memory_space<vmem>>, vector<1x1x8x32xbf16>
    %643 = vector.shape_cast %642 : vector<1x1x8x32xbf16> to vector<8x32xbf16>
    %cst_407 = arith.constant dense<0.000000e+00> : vector<8x32xf32>
    %644 = tpu.matmul %641, %643, %cst_407 {dimension_numbers = #tpu.dot_dimension_numbers<[1], [0], [0], [1], [0, 0, 1, 1], [], []>} : vector<8x8xbf16>, vector<8x32xbf16>, vector<8x32xf32> -> vector<8x32xf32>
    %645 = arith.addf %619, %644 : vector<8x32xf32>
    %646 = vector.extract_strided_slice %448 {offsets = [8, 0], sizes = [8, 8], strides = [1, 1]} : vector<16x8xf32> to vector<8x8xf32>
    %647 = arith.truncf %646 : vector<8x8xf32> to vector<8x8xbf16>
    %648 = vector.extract_strided_slice %455 {offsets = [8, 0], sizes = [8, 8], strides = [1, 1]} : vector<16x8xf32> to vector<8x8xf32>
    %649 = arith.truncf %648 : vector<8x8xf32> to vector<8x8xbf16>
    %650 = vector.extract_strided_slice %462 {offsets = [8, 0], sizes = [8, 8], strides = [1, 1]} : vector<16x8xf32> to vector<8x8xf32>
    %651 = arith.truncf %650 : vector<8x8xf32> to vector<8x8xbf16>
    %cst_408 = arith.constant dense<0.000000e+00> : vector<8x8xf32>
    %652 = tpu.matmul %647, %649, %cst_408 {dimension_numbers = #tpu.dot_dimension_numbers<[1], [1], [0], [0], [0, 0, 1, 0], [], []>} : vector<8x8xbf16>, vector<8x8xbf16>, vector<8x8xf32> -> vector<8x8xf32>
    %cst_409 = arith.constant 0.353553385 : f32
    %653 = vector.broadcast %cst_409 : f32 to vector<8x8xf32>
    %654 = arith.mulf %652, %653 : vector<8x8xf32>
    %cst_410 = arith.constant dense<0xFF800000> : vector<8xf32>
    %655 = vector.multi_reduction <maximumf>, %654, %cst_410 [1] : vector<8x8xf32> to vector<8xf32>
    %656 = vector.shape_cast %655 : vector<8xf32> to vector<8x1xf32>
    %657 = vector.broadcast %656 : vector<8x1xf32> to vector<8x8xf32>
    %658 = arith.subf %654, %657 : vector<8x8xf32>
    %659 = math.exp %658 : vector<8x8xf32>
    %cst_411 = arith.constant dense<0.000000e+00> : vector<8xf32>
    %660 = vector.multi_reduction <add>, %659, %cst_411 [1] : vector<8x8xf32> to vector<8xf32>
    %661 = vector.shape_cast %660 : vector<8xf32> to vector<8x1xf32>
    %662 = tpu.reciprocal %661 {approx = true} : vector<8x1xf32> -> vector<8x1xf32>
    %663 = vector.broadcast %662 : vector<8x1xf32> to vector<8x8xf32>
    %664 = arith.mulf %659, %663 : vector<8x8xf32>
    %665 = arith.truncf %664 : vector<8x8xf32> to vector<8x8xbf16>
    %cst_412 = arith.constant dense<0.000000e+00> : vector<8x8xf32>
    %666 = tpu.matmul %665, %651, %cst_412 {dimension_numbers = #tpu.dot_dimension_numbers<[1], [0], [0], [1], [0, 0, 1, 1], [], []>} : vector<8x8xbf16>, vector<8x8xbf16>, vector<8x8xf32> -> vector<8x8xf32>
    %667 = arith.truncf %666 : vector<8x8xf32> to vector<8x8xbf16>
    %c1_413 = arith.constant 1 : index
    %c2_414 = arith.constant 2 : index
    %c0_415 = arith.constant 0 : index
    %c0_416 = arith.constant 0 : index
    %668 = vector.load %arg8[%c1_413, %c2_414, %c0_415, %c0_416] : memref<2x4x8x32xbf16, #tpu.memory_space<vmem>>, vector<1x1x8x32xbf16>
    %669 = vector.shape_cast %668 : vector<1x1x8x32xbf16> to vector<8x32xbf16>
    %cst_417 = arith.constant dense<0.000000e+00> : vector<8x32xf32>
    %670 = tpu.matmul %667, %669, %cst_417 {dimension_numbers = #tpu.dot_dimension_numbers<[1], [0], [0], [1], [0, 0, 1, 1], [], []>} : vector<8x8xbf16>, vector<8x32xbf16>, vector<8x32xf32> -> vector<8x32xf32>
    %671 = arith.addf %645, %670 : vector<8x32xf32>
    %672 = vector.extract_strided_slice %469 {offsets = [8, 0], sizes = [8, 8], strides = [1, 1]} : vector<16x8xf32> to vector<8x8xf32>
    %673 = arith.truncf %672 : vector<8x8xf32> to vector<8x8xbf16>
    %674 = vector.extract_strided_slice %476 {offsets = [8, 0], sizes = [8, 8], strides = [1, 1]} : vector<16x8xf32> to vector<8x8xf32>
    %675 = arith.truncf %674 : vector<8x8xf32> to vector<8x8xbf16>
    %676 = vector.extract_strided_slice %483 {offsets = [8, 0], sizes = [8, 8], strides = [1, 1]} : vector<16x8xf32> to vector<8x8xf32>
    %677 = arith.truncf %676 : vector<8x8xf32> to vector<8x8xbf16>
    %cst_418 = arith.constant dense<0.000000e+00> : vector<8x8xf32>
    %678 = tpu.matmul %673, %675, %cst_418 {dimension_numbers = #tpu.dot_dimension_numbers<[1], [1], [0], [0], [0, 0, 1, 0], [], []>} : vector<8x8xbf16>, vector<8x8xbf16>, vector<8x8xf32> -> vector<8x8xf32>
    %cst_419 = arith.constant 0.353553385 : f32
    %679 = vector.broadcast %cst_419 : f32 to vector<8x8xf32>
    %680 = arith.mulf %678, %679 : vector<8x8xf32>
    %cst_420 = arith.constant dense<0xFF800000> : vector<8xf32>
    %681 = vector.multi_reduction <maximumf>, %680, %cst_420 [1] : vector<8x8xf32> to vector<8xf32>
    %682 = vector.shape_cast %681 : vector<8xf32> to vector<8x1xf32>
    %683 = vector.broadcast %682 : vector<8x1xf32> to vector<8x8xf32>
    %684 = arith.subf %680, %683 : vector<8x8xf32>
    %685 = math.exp %684 : vector<8x8xf32>
    %cst_421 = arith.constant dense<0.000000e+00> : vector<8xf32>
    %686 = vector.multi_reduction <add>, %685, %cst_421 [1] : vector<8x8xf32> to vector<8xf32>
    %687 = vector.shape_cast %686 : vector<8xf32> to vector<8x1xf32>
    %688 = tpu.reciprocal %687 {approx = true} : vector<8x1xf32> -> vector<8x1xf32>
    %689 = vector.broadcast %688 : vector<8x1xf32> to vector<8x8xf32>
    %690 = arith.mulf %685, %689 : vector<8x8xf32>
    %691 = arith.truncf %690 : vector<8x8xf32> to vector<8x8xbf16>
    %cst_422 = arith.constant dense<0.000000e+00> : vector<8x8xf32>
    %692 = tpu.matmul %691, %677, %cst_422 {dimension_numbers = #tpu.dot_dimension_numbers<[1], [0], [0], [1], [0, 0, 1, 1], [], []>} : vector<8x8xbf16>, vector<8x8xbf16>, vector<8x8xf32> -> vector<8x8xf32>
    %693 = arith.truncf %692 : vector<8x8xf32> to vector<8x8xbf16>
    %c1_423 = arith.constant 1 : index
    %c3_424 = arith.constant 3 : index
    %c0_425 = arith.constant 0 : index
    %c0_426 = arith.constant 0 : index
    %694 = vector.load %arg8[%c1_423, %c3_424, %c0_425, %c0_426] : memref<2x4x8x32xbf16, #tpu.memory_space<vmem>>, vector<1x1x8x32xbf16>
    %695 = vector.shape_cast %694 : vector<1x1x8x32xbf16> to vector<8x32xbf16>
    %cst_427 = arith.constant dense<0.000000e+00> : vector<8x32xf32>
    %696 = tpu.matmul %693, %695, %cst_427 {dimension_numbers = #tpu.dot_dimension_numbers<[1], [0], [0], [1], [0, 0, 1, 1], [], []>} : vector<8x8xbf16>, vector<8x32xbf16>, vector<8x32xf32> -> vector<8x32xf32>
    %697 = arith.addf %671, %696 : vector<8x32xf32>
    %698 = vector.broadcast %485 : vector<1x32xf32> to vector<8x32xf32>
    %699 = arith.addf %697, %698 : vector<8x32xf32>
    %700 = tpu.concatenate %592, %699 in 0 : vector<8x32xf32>, vector<8x32xf32> -> vector<16x32xf32>
    %701 = arith.addf %398, %700 : vector<16x32xf32>
    %cst_428 = arith.constant dense<0.000000e+00> : vector<16xf32>
    %702 = vector.multi_reduction <add>, %701, %cst_428 [1] : vector<16x32xf32> to vector<16xf32>
    %703 = vector.shape_cast %702 : vector<16xf32> to vector<16x1xf32>
    %cst_429 = arith.constant 3.200000e+01 : f32
    %704 = vector.broadcast %cst_429 : f32 to vector<16x1xf32>
    %705 = arith.divf %703, %704 : vector<16x1xf32>
    %706 = arith.mulf %701, %701 : vector<16x32xf32>
    %cst_430 = arith.constant dense<0.000000e+00> : vector<16xf32>
    %707 = vector.multi_reduction <add>, %706, %cst_430 [1] : vector<16x32xf32> to vector<16xf32>
    %708 = vector.shape_cast %707 : vector<16xf32> to vector<16x1xf32>
    %cst_431 = arith.constant 3.200000e+01 : f32
    %709 = vector.broadcast %cst_431 : f32 to vector<16x1xf32>
    %710 = arith.divf %708, %709 : vector<16x1xf32>
    %711 = vector.broadcast %705 : vector<16x1xf32> to vector<16x32xf32>
    %712 = arith.subf %701, %711 : vector<16x32xf32>
    %713 = arith.mulf %705, %705 : vector<16x1xf32>
    %714 = arith.subf %710, %713 : vector<16x1xf32>
    %cst_432 = arith.constant 9.99999974E-6 : f32
    %715 = vector.broadcast %cst_432 : f32 to vector<16x1xf32>
    %716 = arith.addf %714, %715 : vector<16x1xf32>
    %717 = math.rsqrt %716 : vector<16x1xf32>
    %718 = vector.broadcast %717 : vector<16x1xf32> to vector<16x32xf32>
    %719 = arith.mulf %712, %718 : vector<16x32xf32>
    %c1_433 = arith.constant 1 : index
    %c1_434 = arith.constant 1 : index
    %c0_435 = arith.constant 0 : index
    %c0_436 = arith.constant 0 : index
    %720 = vector.load %arg9[%c1_433, %c1_434, %c0_435, %c0_436] : memref<2x6x1x32xf32, #tpu.memory_space<vmem>>, vector<1x1x1x32xf32>
    %721 = vector.shape_cast %720 : vector<1x1x1x32xf32> to vector<1x32xf32>
    %722 = vector.broadcast %721 : vector<1x32xf32> to vector<16x32xf32>
    %723 = arith.mulf %719, %722 : vector<16x32xf32>
    %c1_437 = arith.constant 1 : index
    %c2_438 = arith.constant 2 : index
    %c0_439 = arith.constant 0 : index
    %c0_440 = arith.constant 0 : index
    %724 = vector.load %arg9[%c1_437, %c2_438, %c0_439, %c0_440] : memref<2x6x1x32xf32, #tpu.memory_space<vmem>>, vector<1x1x1x32xf32>
    %725 = vector.shape_cast %724 : vector<1x1x1x32xf32> to vector<1x32xf32>
    %726 = vector.broadcast %725 : vector<1x32xf32> to vector<16x32xf32>
    %727 = arith.addf %723, %726 : vector<16x32xf32>
    %728 = arith.truncf %727 : vector<16x32xf32> to vector<16x32xbf16>
    %c1_441 = arith.constant 1 : index
    %c0_442 = arith.constant 0 : index
    %c0_443 = arith.constant 0 : index
    %729 = vector.load %arg10[%c1_441, %c0_442, %c0_443] : memref<2x32x128xbf16, #tpu.memory_space<vmem>>, vector<1x32x128xbf16>
    %730 = vector.shape_cast %729 : vector<1x32x128xbf16> to vector<32x128xbf16>
    %cst_444 = arith.constant dense<0.000000e+00> : vector<16x128xf32>
    %731 = tpu.matmul %728, %730, %cst_444 {dimension_numbers = #tpu.dot_dimension_numbers<[1], [0], [0], [1], [0, 0, 1, 1], [], []>} : vector<16x32xbf16>, vector<32x128xbf16>, vector<16x128xf32> -> vector<16x128xf32>
    %c1_445 = arith.constant 1 : index
    %c0_446 = arith.constant 0 : index
    %c0_447 = arith.constant 0 : index
    %732 = vector.load %arg11[%c1_445, %c0_446, %c0_447] : memref<2x1x128xf32, #tpu.memory_space<vmem>>, vector<1x1x128xf32>
    %733 = vector.shape_cast %732 : vector<1x1x128xf32> to vector<1x128xf32>
    %734 = vector.broadcast %733 : vector<1x128xf32> to vector<16x128xf32>
    %735 = arith.addf %731, %734 : vector<16x128xf32>
    %cst_448 = arith.constant 0.000000e+00 : f32
    %736 = vector.broadcast %cst_448 : f32 to vector<16x128xf32>
    %737 = arith.maximumf %735, %736 : vector<16x128xf32>
    %738 = arith.truncf %737 : vector<16x128xf32> to vector<16x128xbf16>
    %c1_449 = arith.constant 1 : index
    %c0_450 = arith.constant 0 : index
    %c0_451 = arith.constant 0 : index
    %739 = vector.load %arg12[%c1_449, %c0_450, %c0_451] : memref<2x128x32xbf16, #tpu.memory_space<vmem>>, vector<1x128x32xbf16>
    %740 = vector.shape_cast %739 : vector<1x128x32xbf16> to vector<128x32xbf16>
    %cst_452 = arith.constant dense<0.000000e+00> : vector<16x32xf32>
    %741 = tpu.matmul %738, %740, %cst_452 {dimension_numbers = #tpu.dot_dimension_numbers<[1], [0], [0], [1], [0, 0, 1, 1], [], []>} : vector<16x128xbf16>, vector<128x32xbf16>, vector<16x32xf32> -> vector<16x32xf32>
    %c1_453 = arith.constant 1 : index
    %c3_454 = arith.constant 3 : index
    %c0_455 = arith.constant 0 : index
    %c0_456 = arith.constant 0 : index
    %742 = vector.load %arg9[%c1_453, %c3_454, %c0_455, %c0_456] : memref<2x6x1x32xf32, #tpu.memory_space<vmem>>, vector<1x1x1x32xf32>
    %743 = vector.shape_cast %742 : vector<1x1x1x32xf32> to vector<1x32xf32>
    %744 = vector.broadcast %743 : vector<1x32xf32> to vector<16x32xf32>
    %745 = arith.addf %741, %744 : vector<16x32xf32>
    %746 = arith.addf %727, %745 : vector<16x32xf32>
    %cst_457 = arith.constant dense<0.000000e+00> : vector<16xf32>
    %747 = vector.multi_reduction <add>, %746, %cst_457 [1] : vector<16x32xf32> to vector<16xf32>
    %748 = vector.shape_cast %747 : vector<16xf32> to vector<16x1xf32>
    %cst_458 = arith.constant 3.200000e+01 : f32
    %749 = vector.broadcast %cst_458 : f32 to vector<16x1xf32>
    %750 = arith.divf %748, %749 : vector<16x1xf32>
    %751 = arith.mulf %746, %746 : vector<16x32xf32>
    %cst_459 = arith.constant dense<0.000000e+00> : vector<16xf32>
    %752 = vector.multi_reduction <add>, %751, %cst_459 [1] : vector<16x32xf32> to vector<16xf32>
    %753 = vector.shape_cast %752 : vector<16xf32> to vector<16x1xf32>
    %cst_460 = arith.constant 3.200000e+01 : f32
    %754 = vector.broadcast %cst_460 : f32 to vector<16x1xf32>
    %755 = arith.divf %753, %754 : vector<16x1xf32>
    %756 = vector.broadcast %750 : vector<16x1xf32> to vector<16x32xf32>
    %757 = arith.subf %746, %756 : vector<16x32xf32>
    %758 = arith.mulf %750, %750 : vector<16x1xf32>
    %759 = arith.subf %755, %758 : vector<16x1xf32>
    %cst_461 = arith.constant 9.99999974E-6 : f32
    %760 = vector.broadcast %cst_461 : f32 to vector<16x1xf32>
    %761 = arith.addf %759, %760 : vector<16x1xf32>
    %762 = math.rsqrt %761 : vector<16x1xf32>
    %763 = vector.broadcast %762 : vector<16x1xf32> to vector<16x32xf32>
    %764 = arith.mulf %757, %763 : vector<16x32xf32>
    %c1_462 = arith.constant 1 : index
    %c4_463 = arith.constant 4 : index
    %c0_464 = arith.constant 0 : index
    %c0_465 = arith.constant 0 : index
    %765 = vector.load %arg9[%c1_462, %c4_463, %c0_464, %c0_465] : memref<2x6x1x32xf32, #tpu.memory_space<vmem>>, vector<1x1x1x32xf32>
    %766 = vector.shape_cast %765 : vector<1x1x1x32xf32> to vector<1x32xf32>
    %767 = vector.broadcast %766 : vector<1x32xf32> to vector<16x32xf32>
    %768 = arith.mulf %764, %767 : vector<16x32xf32>
    %c1_466 = arith.constant 1 : index
    %c5_467 = arith.constant 5 : index
    %c0_468 = arith.constant 0 : index
    %c0_469 = arith.constant 0 : index
    %769 = vector.load %arg9[%c1_466, %c5_467, %c0_468, %c0_469] : memref<2x6x1x32xf32, #tpu.memory_space<vmem>>, vector<1x1x1x32xf32>
    %770 = vector.shape_cast %769 : vector<1x1x1x32xf32> to vector<1x32xf32>
    %771 = vector.broadcast %770 : vector<1x32xf32> to vector<16x32xf32>
    %772 = arith.addf %768, %771 : vector<16x32xf32>
    %773 = arith.truncf %772 : vector<16x32xf32> to vector<16x32xbf16>
    %c0_470 = arith.constant 0 : index
    %c0_471 = arith.constant 0 : index
    %774 = vector.load %arg13[%c0_470, %c0_471] : memref<32x128xbf16, #tpu.memory_space<vmem>>, vector<32x128xbf16>
    %cst_472 = arith.constant dense<0.000000e+00> : vector<16x128xf32>
    %775 = tpu.matmul %773, %774, %cst_472 {dimension_numbers = #tpu.dot_dimension_numbers<[1], [0], [0], [1], [0, 0, 1, 1], [], []>} : vector<16x32xbf16>, vector<32x128xbf16>, vector<16x128xf32> -> vector<16x128xf32>
    %c0_473 = arith.constant 0 : index
    %c0_474 = arith.constant 0 : index
    %776 = vector.load %arg14[%c0_473, %c0_474] : memref<1x128xf32, #tpu.memory_space<vmem>>, vector<1x128xf32>
    %777 = vector.broadcast %776 : vector<1x128xf32> to vector<16x128xf32>
    %778 = arith.addf %775, %777 : vector<16x128xf32>
    %c0_475 = arith.constant 0 : index
    %c0_476 = arith.constant 0 : index
    %779 = vector.load %arg15[%c0_475, %c0_476] : memref<16x128xf32, #tpu.memory_space<vmem>>, vector<16x128xf32>
    tpu.vector_store %arg15[%c0_475, %c0_476], %778 {strides = array<i32>} : memref<16x128xf32, #tpu.memory_space<vmem>>, vector<16x128xf32>,
    return
  }
  func.func @transform_0(%arg0: i32) -> (i32, i32) {
    %c0_i32 = arith.constant 0 : i32
    %c0_i32_0 = arith.constant 0 : i32
    return %arg0, %c0_i32 : i32, i32
  }
  func.func @transform_1(%arg0: i32) -> i32 {
    %c0_i32 = arith.constant 0 : i32
    %c0_i32_0 = arith.constant 0 : i32
    return %c0_i32 : i32
  }
  func.func @transform_2(%arg0: i32) -> (i32, i32) {
    %c0_i32 = arith.constant 0 : i32
    %c0_i32_0 = arith.constant 0 : i32
    %c0_i32_1 = arith.constant 0 : i32
    return %c0_i32, %c0_i32_0 : i32, i32
  }
  func.func @transform_3(%arg0: i32) -> (i32, i32) {
    %c0_i32 = arith.constant 0 : i32
    %c0_i32_0 = arith.constant 0 : i32
    %c0_i32_1 = arith.constant 0 : i32
    return %c0_i32, %c0_i32_0 : i32, i32
  }
  func.func @transform_4(%arg0: i32) -> (i32, i32) {
    %c0_i32 = arith.constant 0 : i32
    %c0_i32_0 = arith.constant 0 : i32
    %c0_i32_1 = arith.constant 0 : i32
    return %c0_i32, %c0_i32_0 : i32, i32
  }
  func.func @transform_5(%arg0: i32) -> (i32, i32, i32, i32) {
    %c0_i32 = arith.constant 0 : i32
    %c0_i32_0 = arith.constant 0 : i32
    %c0_i32_1 = arith.constant 0 : i32
    %c0_i32_2 = arith.constant 0 : i32
    %c0_i32_3 = arith.constant 0 : i32
    return %c0_i32, %c0_i32_0, %c0_i32_1, %c0_i32_2 : i32, i32, i32, i32
  }
  func.func @transform_6(%arg0: i32) -> (i32, i32, i32, i32) {
    %c0_i32 = arith.constant 0 : i32
    %c0_i32_0 = arith.constant 0 : i32
    %c0_i32_1 = arith.constant 0 : i32
    %c0_i32_2 = arith.constant 0 : i32
    %c0_i32_3 = arith.constant 0 : i32
    return %c0_i32, %c0_i32_0, %c0_i32_1, %c0_i32_2 : i32, i32, i32, i32
  }
  func.func @transform_7(%arg0: i32) -> (i32, i32, i32, i32) {
    %c0_i32 = arith.constant 0 : i32
    %c0_i32_0 = arith.constant 0 : i32
    %c0_i32_1 = arith.constant 0 : i32
    %c0_i32_2 = arith.constant 0 : i32
    %c0_i32_3 = arith.constant 0 : i32
    return %c0_i32, %c0_i32_0, %c0_i32_1, %c0_i32_2 : i32, i32, i32, i32
  }
  func.func @transform_8(%arg0: i32) -> (i32, i32, i32, i32) {
    %c0_i32 = arith.constant 0 : i32
    %c0_i32_0 = arith.constant 0 : i32
    %c0_i32_1 = arith.constant 0 : i32
    %c0_i32_2 = arith.constant 0 : i32
    %c0_i32_3 = arith.constant 0 : i32
    return %c0_i32, %c0_i32_0, %c0_i32_1, %c0_i32_2 : i32, i32, i32, i32
  }
  func.func @transform_9(%arg0: i32) -> (i32, i32, i32) {
    %c0_i32 = arith.constant 0 : i32
    %c0_i32_0 = arith.constant 0 : i32
    %c0_i32_1 = arith.constant 0 : i32
    %c0_i32_2 = arith.constant 0 : i32
    return %c0_i32, %c0_i32_0, %c0_i32_1 : i32, i32, i32
  }
  func.func @transform_10(%arg0: i32) -> (i32, i32, i32) {
    %c0_i32 = arith.constant 0 : i32
    %c0_i32_0 = arith.constant 0 : i32
    %c0_i32_1 = arith.constant 0 : i32
    %c0_i32_2 = arith.constant 0 : i32
    return %c0_i32, %c0_i32_0, %c0_i32_1 : i32, i32, i32
  }
  func.func @transform_11(%arg0: i32) -> (i32, i32, i32) {
    %c0_i32 = arith.constant 0 : i32
    %c0_i32_0 = arith.constant 0 : i32
    %c0_i32_1 = arith.constant 0 : i32
    %c0_i32_2 = arith.constant 0 : i32
    return %c0_i32, %c0_i32_0, %c0_i32_1 : i32, i32, i32
  }
  func.func @transform_12(%arg0: i32) -> (i32, i32) {
    %c0_i32 = arith.constant 0 : i32
    %c0_i32_0 = arith.constant 0 : i32
    %c0_i32_1 = arith.constant 0 : i32
    return %c0_i32, %c0_i32_0 : i32, i32
  }
  func.func @transform_13(%arg0: i32) -> (i32, i32) {
    %c0_i32 = arith.constant 0 : i32
    %c0_i32_0 = arith.constant 0 : i32
    %c0_i32_1 = arith.constant 0 : i32
    return %c0_i32, %c0_i32_0 : i32, i32
  }
  func.func @transform_14(%arg0: i32) -> (i32, i32) {
    %c0_i32 = arith.constant 0 : i32
    %c0_i32_0 = arith.constant 0 : i32
    return %arg0, %c0_i32 : i32, i32
  }
}

</mosaic_0001>

<bundles_post_ra>
// kernel: eq.1
= control target key start
LH: loop header
LB: loop body
LE: loop exit
PB: predicated region body
PF: predicated region fallthrough
CT: control target
= control target key end

     0   :  { %vm8_vm0 = vcmask 64512   ;;  %vm14_vm1 = vcmask 130112   ;;  %s42_s0 = inlined_call_operand.vmem [shape: s32[2,8], index: 0, kind: input, shape index: {}]   ;;  %s43_s1 = inlined_call_operand.vmem [shape: s32[16], index: 1, kind: output, shape index: {}]  }
   0x1   :  { %v5_v0 = vld [vmem:[%s42_s0] sm:$0x3]  ;;  %s25_s0 = smov 8  }
   0x2   :  { %6 = vst [vmem:[#allocation1] sm:$0x3] %v5_v0 }
   0x9   :  { %v11_v1 = vld [vmem:[#allocation1 + $0x1] sm:$0x1]   ;;  %v7_v2 = vld [vmem:[#allocation1] sm:$0x1]  }
   0xa   :  { %12 = vrot.lane.b32.xlu0 %v11_v1, %s25_s0  ;;  %9 = vst.msk [vmem:[#allocation0] sm:$0x1] %vm8_vm0, %v7_v2  }
  0x7c   :  { %v13_v3 = vpop.permute.xlu0 %12  }
  0x7d   :  { %15 = vst.msk [vmem:[#allocation0] sm:$0x1] %vm14_vm1, %v13_v3  }
  0x84   :  { %v20_v4 = vld [vmem:[#allocation0] sm:$0x1] }
  0x85   :  { %23 = vst [vmem:[%s43_s1] sm:$0x1] %v20_v4 }

// kernel: transformer_forward.1
= control target key start
LH: loop header
LB: loop body
LE: loop exit
PB: predicated region body
PF: predicated region fallthrough
CT: control target
= control target key end

     0   :  { %19 = vsyncpa [#allocation4], 0  ;;  %s7395_s0 = inlined_call_operand.vmem [shape: bf16[16,32], index: 0, kind: input, shape index: {}]   ;;  %s7396_s1 = inlined_call_operand.vmem [shape: f32[2], index: 1, kind: input, shape index: {}]   ;;  %s7397_s2 = inlined_call_operand.vmem [shape: f32[16,32], index: 2, kind: input, shape index: {}]   ;;  %s7398_s3 = inlined_call_operand.vmem [shape: bf16[32,32], index: 3, kind: input, shape index: {}]   ;;  %s7399_s4 = inlined_call_operand.vmem [shape: f32[1,32], index: 4, kind: input, shape index: {}]   ;;  %s7400_s5 = inlined_call_operand.vmem [shape: bf16[2,12,32,8], index: 5, kind: input, shape index: {}]   ;;  %s7401_s6 = inlined_call_operand.vmem [shape: f32[2,12,1,8], index: 6, kind: input, shape index: {}]   ;;  %s7402_s7 = inlined_call_operand.vmem [shape: bf16[2,4,8,32], index: 7, kind: input, shape index: {}]   ;;  %s7403_s8 = inlined_call_operand.vmem [shape: f32[2,6,1,32], index: 8, kind: input, shape index: {}]   ;;  %s7404_s9 = inlined_call_operand.vmem [shape: bf16[2,32,128], index: 9, kind: input, shape index: {}]   ;;  %s7405_s10 = inlined_call_operand.vmem [shape: f32[2,1,128], index: 10, kind: input, shape index: {}]   ;;  %s7406_s11 = inlined_call_operand.vmem [shape: bf16[2,128,32], index: 11, kind: input, shape index: {}]   ;;  %s7407_s12 = inlined_call_operand.vmem [shape: bf16[32,128], index: 12, kind: input, shape index: {}]   ;;  %s7408_s13 = inlined_call_operand.vmem [shape: f32[1,128], index: 13, kind: input, shape index: {}]   ;;  %s7409_s14 = inlined_call_operand.hbm [shape: f32[16,128], index: 14, kind: output, shape index: {}]  }
   0x1   :  { %20 = vsyncpa [#allocation3], 0  ;;  %s29_s15 = sshll.u32 %s7396_s1, 4  ;;  %s30_s15 = int_to_ptr.vmem [resolvable:$true] %s29_s15 }
   0x2   :  { %s6164_s16 = scalar_lea.vmem %s30_s15, 16  ;;  %p6169_p1 = scmp.lt.s32.totalorder %s30_s15, %s30_s15 }
   0x3   :  { %p6165_p0 = scmp.ne.s32.totalorder %s30_s15, %s6164_s16  ;;  %p6170_p2 = scmp.lt.s32.totalorder %s6164_s16, %s6164_s16 }
   0x5   :  { %p6171_p3 = por %p6170_p2, %p6169_p1 }
   0x7   :  { %p6172_p4 = pnand %p6171_p3, %p6165_p0 }
   0x9   :  { %6175 = shalt.err (!%p6172_p4)
}
   0xa   :  { %s6200_s17 = smov [#allocation2]  }
   0xb   :  { %32 = dma.vmem_to_smem %s30_s15, 16, %s6200_s17, [#allocation4]  }
   0xc   :  { %6196 = dma.done.wait [#allocation4], 16  }
   0xd   :  { %6197 = vsyncadd [#allocation4], 4294967280 }
   0xe   :  { %60 = sfence }
   0xf   :  { %v6011_v0 = vld [vmem:[%s7398_s3 + $0x8] sm:$0xff]   ;;  %v6201_v1 = vmov 0.0   ;;  %v6012_v2 = vld [vmem:[%s7398_s3] sm:$0xff]   ;;  %vm6202_vm0 = vmmov 0   ;;  %vm88_vm1 = vcmask 261120   ;;  %s133_s29 = sld [smem:[#allocation2]]  ;;  %v138_v8 = vlaneseq }
  0x10   :  { %5453 = vmatprep.subr.bf16.mxu0 %v6201_v1  ;;  %5477 = vmatprep.subr.bf16.mxu1 %v6201_v1  ;;  %v6013_v3 = vld [vmem:[%s7395_s0] sm:$0xff]   ;;  %v6014_v4 = vld [vmem:[%s7400_s5 + $0x8] sm:$0xff]   ;;  %s4916_s30 = sld [smem:[#allocation2 + $0x1]]  ;;  %v6019_v29 = vld [vmem:[%s7400_s5 + $0x58] sm:$0xff]   ;;  %vm1016_vm2 = vcmask 1043456   ;;  %vm953_vm3 = vcmask 64512  }
  0x11   :  { %5454 = vmatpush3.bf16.msra.mxu0 %v6011_v0  ;;  %5457 = vmatprep.mubr.msk.bf16.mxu0 %vm6202_vm0, %v6201_v1  ;;  %v6015_v5 = vld [vmem:[%s7400_s5 + $0x88] sm:$0xff]   ;;  %v6016_v6 = vld [vmem:[%s7400_s5] sm:$0xff]   ;;  %v139_v9 = vshrl.u32 %v138_v8, 7  ;;  %v6021_v32 = vld [vmem:[%s7400_s5 + $0x50] sm:$0xff]  }
  0x12   :  { %5455 = vmatprep.subr.bf16.mxu0 %v6201_v1  ;;  %5481 = vmatprep.mubr.msk.bf16.mxu1 %vm6202_vm0, %v6201_v1  ;;  %v6017_v7 = vld [vmem:[%s7400_s5 + $0x80] sm:$0xff]   ;;  %v70_v19 = vld [vmem:[%s7397_s2 + $0x8] sm:$0xff]  ;;  %v6022_v33 = vld [vmem:[%s7400_s5 + $0x18] sm:$0xff]  }
  0x13   :  { %5478 = vmatpush3.bf16.msra.mxu1 %v6015_v5  ;;  %v134_v10 = vld [vmem:[%s7399_s4] sm:$0x1]  ;;  %v140_v14 = vsub.s32 0, %v139_v9  ;;  %v6018_v28 = vld [vmem:[%s7400_s5 + $0x48] sm:$0xff]   ;;  %v6024_v35 = vld [vmem:[%s7400_s5 + $0x10] sm:$0xff]  }
  0x14   :  { %5479 = vmatprep.subr.bf16.mxu1 %v6201_v1  ;;  %v69_v16 = vld [vmem:[%s7397_s2] sm:$0xff]  ;;  %v6023_v34 = vld [vmem:[%s7400_s5 + $0x28] sm:$0xff]   ;;  %v6026_v37 = vld [vmem:[%s7400_s5 + $0x98] sm:$0xff]  }
  0x15   :  { %5456 = vmatpush3.bf16.msra.mxu0 %v6012_v2  ;;  %v135_v11 = vstv %s133_s29  ;;  %v6020_v31 = vld [vmem:[%s7400_s5 + $0x40] sm:$0xff]   ;;  %v6027_v38 = vld [vmem:[%s7400_s5 + $0xa8] sm:$0xff]   ;;  %v6028_v39 = vld [vmem:[%s7400_s5 + $0x90] sm:$0xff]  }
  0x16   :  { %5461 = vmatprep.subr.bf16.mxu0 %v6201_v1  ;;  %v146_v12 = vstv %s4916_s30  ;;  %v136_v13 = vmul.f32 %v135_v11, %v134_v10  ;;  %v6025_v36 = vld [vmem:[%s7400_s5 + $0x20] sm:$0xff]   ;;  %v6030_v41 = vld [vmem:[%s7400_s5 + $0x68] sm:$0xff]   ;;  %v6031_v42 = vld [vmem:[%s7400_s5 + $0x78] sm:$0xff]  }
  0x17   :  { %5480 = vmatpush3.bf16.msra.mxu1 %v6017_v7  ;;  %v147_v15 = vmul.f32 %v146_v12, %v134_v10  ;;  %v6029_v40 = vld [vmem:[%s7400_s5 + $0xa0] sm:$0xff]   ;;  %v6033_v44 = vld [vmem:[%s7400_s5 + $0x70] sm:$0xff]   ;;  %v6034_v45 = vld [vmem:[%s7400_s5 + $0x38] sm:$0xff]  }
  0x18   :  { %5458 = vmatmul.mubr.msk.bf16.vlgmr.msra.gmra.mxu0 %vm88_vm1, %v6013_v3  ;;  %5493 = vmatprep.subr.bf16.mxu1 %v6201_v1  ;;  %v141_v21 = vrot.slane %v136_v13, %v140_v14  ;;  %v6032_v43 = vld [vmem:[%s7400_s5 + $0x60] sm:$0xff]   ;;  %v6035_v46 = vld [vmem:[%s7400_s5 + $0x30] sm:$0xff]   ;;  %v6036_v47 = vld [vmem:[%s7400_s5 + $0xb8] sm:$0xff]  }
  0x19   :  { %5465 = vmatprep.mubr.msk.bf16.mxu0 %vm6202_vm0, %v6201_v1  ;;  %5462 = vmatpush3.bf16.msra.mxu0 %v6014_v4  ;;  %v152_v22 = vrot.slane %v147_v15, %v140_v14  ;;  %v6037_v48 = vld [vmem:[%s7400_s5 + $0xb0] sm:$0xff]   ;;  %v4935_v49 = vld [vmem:[%s7401_s6 + $0x8] ss:$0 sm:$0xff]  ;;  %v4917_v56 = vld [vmem:[%s7401_s6] ss:$0 sm:$0xff] }
  0x1a   :  { %5463 = vmatprep.subr.bf16.mxu0 %v6201_v1  ;;  %v4926_v0 = vld [vmem:[%s7401_s6 + $0x4] ss:$0 sm:$0xff]  ;;  %v4953_v5 = vld [vmem:[%s7401_s6 + $0x5] ss:$0 sm:$0xff] }
  0x1d   :  { %5464 = vmatpush3.bf16.msra.mxu0 %v6016_v6 }
  0x1e   :  { %5469 = vmatprep.subr.bf16.mxu0 %v6201_v1 }
  0xd8   :  { %v126_v17 = vpop.f32.mrf.mxu0 }
  0xd9   :  { %v127_v20 = vadd.f32 %v126_v17, %v69_v16 }
  0xda   :  { %v5459_v18 = vpop.f32.mrf.mxu0 }
  0xdb   :  { %v6329_v26 = vadd.f32 %v141_v21, %v127_v20 }
  0xdc   :  { %v129_v23 = vpop.f32.mrf.mxu0 }
  0xdd   :  { %v130_v24 = vadd.f32 %v129_v23, %v70_v19 }
  0xde   :  { %v5460_v25 = vpop.f32.mrf.mxu0 }
  0xdf   :  { %v6331_v27 = vadd.f32 %v152_v22, %v130_v24  ;;  %v4944_v24 = vld [vmem:[%s7401_s6 + $0x1] ss:$0 sm:$0xff]  ;;  %v6497_v25 = vld [vmem:[%s7401_s6 + $0x2] ss:$0 sm:$0xff] }
  0xe1   :  { %v6341_v30 = vpack.c.bf16 %v6331_v27, %v6329_v26 }
  0xe3   :  { %5466 = vmatmul.mubr.msk.bf16.vlgmr.msra.gmra.mxu0 %vm88_vm1, %v6341_v30  ;;  %5482 = vmatmul.mubr.msk.bf16.vlgmr.msra.gmra.mxu1 %vm88_vm1, %v6341_v30 }
  0xe4   :  { %5470 = vmatpush3.bf16.msra.mxu0 %v6018_v28  ;;  %5494 = vmatpush3.bf16.msra.mxu1 %v6019_v29 }
  0xe5   :  { %5471 = vmatprep.subr.bf16.mxu0 %v6201_v1  ;;  %5495 = vmatprep.subr.bf16.mxu1 %v6201_v1 }
  0xe6   :  { %5473 = vmatprep.mubr.msk.bf16.mxu0 %vm6202_vm0, %v6201_v1  ;;  %5497 = vmatprep.mubr.msk.bf16.mxu1 %vm6202_vm0, %v6201_v1 }
  0xe8   :  { %5472 = vmatpush3.bf16.msra.mxu0 %v6020_v31  ;;  %5496 = vmatpush3.bf16.msra.mxu1 %v6021_v32 }
  0xe9   :  { %5485 = vmatprep.subr.bf16.mxu0 %v6201_v1  ;;  %5509 = vmatprep.subr.bf16.mxu1 %v6201_v1 }
  0xeb   :  { %5474 = vmatmul.mubr.msk.bf16.vlgmr.msra.gmra.mxu0 %vm88_vm1, %v6341_v30  ;;  %5498 = vmatmul.mubr.msk.bf16.vlgmr.msra.gmra.mxu1 %vm88_vm1, %v6341_v30 }
  0xec   :  { %5486 = vmatpush3.bf16.msra.mxu0 %v6022_v33  ;;  %5510 = vmatpush3.bf16.msra.mxu1 %v6023_v34 }
  0xed   :  { %5487 = vmatprep.subr.bf16.mxu0 %v6201_v1  ;;  %5511 = vmatprep.subr.bf16.mxu1 %v6201_v1 }
  0xee   :  { %5489 = vmatprep.mubr.msk.bf16.mxu0 %vm6202_vm0, %v6201_v1  ;;  %5513 = vmatprep.mubr.msk.bf16.mxu1 %vm6202_vm0, %v6201_v1 }
  0xf0   :  { %5488 = vmatpush3.bf16.msra.mxu0 %v6024_v35  ;;  %5512 = vmatpush3.bf16.msra.mxu1 %v6025_v36 }
  0xf1   :  { %5501 = vmatprep.subr.bf16.mxu0 %v6201_v1  ;;  %5525 = vmatprep.subr.bf16.mxu1 %v6201_v1 }
  0xf3   :  { %5490 = vmatmul.mubr.msk.bf16.vlgmr.msra.gmra.mxu0 %vm88_vm1, %v6341_v30  ;;  %5514 = vmatmul.mubr.msk.bf16.vlgmr.msra.gmra.mxu1 %vm88_vm1, %v6341_v30 }
  0xf4   :  { %5502 = vmatpush3.bf16.msra.mxu0 %v6026_v37  ;;  %5526 = vmatpush3.bf16.msra.mxu1 %v6027_v38 }
  0xf5   :  { %5503 = vmatprep.subr.bf16.mxu0 %v6201_v1  ;;  %5527 = vmatprep.subr.bf16.mxu1 %v6201_v1 }
  0xf6   :  { %5505 = vmatprep.mubr.msk.bf16.mxu0 %vm6202_vm0, %v6201_v1  ;;  %5529 = vmatprep.mubr.msk.bf16.mxu1 %vm6202_vm0, %v6201_v1 }
  0xf8   :  { %5504 = vmatpush3.bf16.msra.mxu0 %v6028_v39  ;;  %5528 = vmatpush3.bf16.msra.mxu1 %v6029_v40 }
  0xf9   :  { %5517 = vmatprep.subr.bf16.mxu0 %v6201_v1  ;;  %5541 = vmatprep.subr.bf16.mxu1 %v6201_v1 }
  0xfb   :  { %5506 = vmatmul.mubr.msk.bf16.vlgmr.msra.gmra.mxu0 %vm88_vm1, %v6341_v30  ;;  %5530 = vmatmul.mubr.msk.bf16.vlgmr.msra.gmra.mxu1 %vm88_vm1, %v6341_v30 }
  0xfc   :  { %5518 = vmatpush3.bf16.msra.mxu0 %v6030_v41  ;;  %5542 = vmatpush3.bf16.msra.mxu1 %v6031_v42  ;;  %v6516_v41 = vld [vmem:[%s7401_s6 + $0x9] ss:$0 sm:$0xff]  ;;  %v6521_v42 = vld [vmem:[%s7401_s6 + $0xa] ss:$0 sm:$0xff] }
  0xfd   :  { %5519 = vmatprep.subr.bf16.mxu0 %v6201_v1  ;;  %5543 = vmatprep.subr.bf16.mxu1 %v6201_v1 }
  0xfe   :  { %5521 = vmatprep.mubr.msk.bf16.mxu0 %vm6202_vm0, %v6201_v1  ;;  %5545 = vmatprep.mubr.msk.bf16.mxu1 %vm6202_vm0, %v6201_v1 }
 0x100   :  { %5520 = vmatpush3.bf16.msra.mxu0 %v6032_v43  ;;  %5544 = vmatpush3.bf16.msra.mxu1 %v6033_v44 }
 0x101   :  { %5533 = vmatprep.subr.bf16.mxu0 %v6201_v1  ;;  %5557 = vmatprep.subr.bf16.mxu1 %v6201_v1 }
 0x103   :  { %5522 = vmatmul.mubr.msk.bf16.vlgmr.msra.gmra.mxu0 %vm88_vm1, %v6341_v30  ;;  %5546 = vmatmul.mubr.msk.bf16.vlgmr.msra.gmra.mxu1 %vm88_vm1, %v6341_v30 }
 0x104   :  { %5534 = vmatpush3.bf16.msra.mxu0 %v6034_v45  ;;  %5537 = vmatprep.mubr.msk.bf16.mxu0 %vm6202_vm0, %v6201_v1 }
 0x105   :  { %5535 = vmatprep.subr.bf16.mxu0 %v6201_v1  ;;  %5559 = vmatprep.mubr.msk.bf16.mxu1 %vm6202_vm0, %v6201_v1 }
 0x108   :  { %5536 = vmatpush3.bf16.msra.mxu0 %v6035_v46 }
 0x109   :  { %5549 = vmatprep.subr.bf16.mxu0 %v6201_v1 }
 0x10b   :  { %5538 = vmatmul.mubr.msk.bf16.vlgmr.msra.gmra.mxu0 %vm88_vm1, %v6341_v30 }
 0x10c   :  { %5550 = vmatpush3.bf16.msra.mxu0 %v6036_v47  ;;  %5553 = vmatprep.mubr.msk.bf16.mxu0 %vm6202_vm0, %v6201_v1 }
 0x10d   :  { %5551 = vmatprep.subr.bf16.mxu0 %v6201_v1 }
 0x110   :  { %5552 = vmatpush3.bf16.msra.mxu0 %v6037_v48 }
 0x111   :  { %5563 = vmatprep.subr.bf16.mxu0 %v6201_v1 }
 0x113   :  { %5554 = vmatmul.mubr.msk.bf16.vlgmr.msra.gmra.mxu0 %vm88_vm1, %v6341_v30 }
 0x114   :  { %5565 = vmatprep.mubr.msk.bf16.mxu0 %vm6202_vm0, %v6201_v1 }
 0x1a3   :  { %v216_v50 = vpop.f32.mrf.mxu0  ;;  %v348_v51 = vpop.f32.mrf.mxu1 }
 0x1a4   :  { %v349_v52 = vadd.f32 %v4935_v49, %v348_v51  ;;  %v217_v17 = vadd.f32 %v4917_v56, %v216_v50 }
 0x1a5   :  { %v5467_v53 = vpop.f32.mrf.mxu0  ;;  %v5483_v54 = vpop.f32.mrf.mxu1 }
 0x1a6   :  { %v952_v55 = vpack.c.bf16 %v349_v52, %v349_v52  ;;  %v950_v23 = vpack.c.bf16 %v217_v17, %v217_v17  ;;  %v6539_v53 = vld [vmem:[%s7401_s6 + $0x6] ss:$0 sm:$0xff]  ;;  %v6544_v54 = vld [vmem:[%s7401_s6 + $0x7] ss:$0 sm:$0xff] }
 0x1a7   :  { %v219_v57 = vpop.f32.mrf.mxu0  ;;  %v351_v58 = vpop.f32.mrf.mxu1 }
 0x1a8   :  { %v1018_v59 = vsel %vm1016_vm2, %v952_v55, 0  ;;  %v6472_v60 = vadd.f32 %v4917_v56, %v219_v57  ;;  %v6474_v61 = vadd.f32 %v4935_v49, %v351_v58 }
 0x1a9   :  { %v5468_v62 = vpop.f32.mrf.mxu0  ;;  %v5484_v63 = vpop.f32.mrf.mxu1  ;;  %5564 = vmatpush3.bf16.msra.mxu0 %v1018_v59 }
 0x1aa   :  { %5575 = vmatprep.subr.bf16.mxu0 %v6201_v1 }
 0x1ab   :  { %v282_v2 = vpop.f32.mrf.mxu0  ;;  %v480_v3 = vpop.f32.mrf.mxu1 }
 0x1ac   :  { %v283_v4 = vadd.f32 %v4926_v0, %v282_v2  ;;  %v481_v12 = vadd.f32 %v4953_v5, %v480_v3  ;;  %v6557_v2 = vld [vmem:[%s7401_s6 + $0x3] ss:$0 sm:$0xff] }
 0x1ad   :  { %v5475_v6 = vpop.f32.mrf.mxu0  ;;  %v5499_v7 = vpop.f32.mrf.mxu1 }
 0x1ae   :  { %v951_v8 = vpack.c.bf16 %v283_v4, %v283_v4  ;;  %v1063_v20 = vpack.c.bf16 %v481_v12, %v481_v12 }
 0x1af   :  { %v285_v9 = vpop.f32.mrf.mxu0  ;;  %v483_v10 = vpop.f32.mrf.mxu1 }
 0x1b0   :  { %v958_v11 = vsel %vm953_vm3, %v951_v8, 0  ;;  %v6484_v13 = vadd.f32 %v4926_v0, %v285_v9  ;;  %v6486_v14 = vadd.f32 %v4953_v5, %v483_v10  ;;  %v1069_v30 = vsel %vm953_vm3, %v1063_v20, 0  ;;  %v6567_v8 = vld [vmem:[%s7401_s6 + $0xb] ss:$0 sm:$0xff] }
 0x1b1   :  { %v5476_v15 = vpop.f32.mrf.mxu0  ;;  %v5500_v16 = vpop.f32.mrf.mxu1  ;;  %5558 = vmatpush3.bf16.xpose.msra.mxu1 %v958_v11 }
 0x1b2   :  { %5569 = vmatprep.subr.bf16.mxu1 %v6201_v1 }
 0x1b3   :  { %v414_v18 = vpop.f32.mrf.mxu0  ;;  %v6489_v19 = vpop.f32.mrf.mxu1 }
 0x1b4   :  { %v415_v35 = vadd.f32 %v4944_v24, %v414_v18 }
 0x1b5   :  { %v5491_v21 = vpop.f32.mrf.mxu0  ;;  %v5515_v22 = vpop.f32.mrf.mxu1 }
 0x1b6   :  { %v1062_v40 = vpack.c.bf16 %v415_v35, %v415_v35 }
 0x1b7   :  { %v417_v28 = vpop.f32.mrf.mxu0  ;;  %v615_v29 = vpop.f32.mrf.mxu1 }
 0x1b8   :  { %v6500_v31 = vadd.f32 %v4944_v24, %v417_v28  ;;  %v6503_v32 = vadd.f32 %v6497_v25, %v615_v29  ;;  %5560 = vmatmul.mubr.msk.bf16.vlgmr.msra.gmra.mxu1 %vm953_vm3, %v950_v23 }
 0x1b9   :  { %v5492_v33 = vpop.f32.mrf.mxu0  ;;  %v5516_v34 = vpop.f32.mrf.mxu1  ;;  %5570 = vmatpush3.bf16.xpose.msra.mxu1 %v1069_v30  ;;  %5571 = vmatprep.mubr.msk.bf16.mxu1 %vm6202_vm0, %v6201_v1 }
 0x1ba   :  { %5581 = vmatprep.subr.bf16.mxu1 %v6201_v1 }
 0x1bb   :  { %v6509_v36 = vpop.f32.mrf.mxu0  ;;  %v6511_v37 = vpop.f32.mrf.mxu1 }
 0x1bd   :  { %v5507_v38 = vpop.f32.mrf.mxu0  ;;  %v5531_v39 = vpop.f32.mrf.mxu1 }
 0x1bf   :  { %v549_v43 = vpop.f32.mrf.mxu0  ;;  %v747_v44 = vpop.f32.mrf.mxu1 }
 0x1c0   :  { %v6524_v45 = vadd.f32 %v6516_v41, %v549_v43  ;;  %v6527_v46 = vadd.f32 %v6521_v42, %v747_v44  ;;  %5572 = vmatmul.mubr.msk.bf16.vlgmr.msra.gmra.mxu1 %vm953_vm3, %v1062_v40 }
 0x1c1   :  { %v5508_v47 = vpop.f32.mrf.mxu0  ;;  %v5532_v48 = vpop.f32.mrf.mxu1  ;;  %5583 = vmatprep.mubr.msk.bf16.mxu1 %vm6202_vm0, %v6201_v1 }
 0x1c3   :  { %v6532_v49 = vpop.f32.mrf.mxu0  ;;  %v6534_v50 = vpop.f32.mrf.mxu1 }
 0x1c5   :  { %v5523_v51 = vpop.f32.mrf.mxu0  ;;  %v5547_v52 = vpop.f32.mrf.mxu1 }
 0x1c6   :  { %v547_v52 = vadd.f32 %v6516_v41, %v6509_v36 }
 0x1c7   :  { %v681_v55 = vpop.f32.mrf.mxu0  ;;  %v879_v56 = vpop.f32.mrf.mxu1 }
 0x1c8   :  { %v6547_v57 = vadd.f32 %v6539_v53, %v681_v55  ;;  %v6550_v58 = vadd.f32 %v6544_v54, %v879_v56  ;;  %v1064_v56 = vpack.c.bf16 %v547_v52, %v547_v52 }
 0x1c9   :  { %v5524_v59 = vpop.f32.mrf.mxu0  ;;  %v5548_v62 = vpop.f32.mrf.mxu1 }
 0x1cb   :  { %v6552_v63 = vpop.f32.mrf.mxu0 }
 0x1cd   :  { %v5539_v0 = vpop.f32.mrf.mxu0 }
 0x1ce   :  { %v1128_v0 = vsel %vm1016_vm2, %v1064_v56, 0 }
 0x1cf   :  { %v813_v3 = vpop.f32.mrf.mxu0 }
 0x1d0   :  { %v6560_v4 = vadd.f32 %v6557_v2, %v813_v3 }
 0x1d1   :  { %v5540_v5 = vpop.f32.mrf.mxu0 }
 0x1d2   :  { %v1061_v5 = vld [vmem:[%s7402_s7] sm:$0xf] }
 0x1d3   :  { %v6562_v6 = vpop.f32.mrf.mxu0 }
 0x1d5   :  { %v5555_v7 = vpop.f32.mrf.mxu0 }
 0x1d6   :  { %v6587_v7 = vsel %vm1016_vm2, %v1061_v5, 0 }
 0x1d7   :  { %v945_v9 = vpop.f32.mrf.mxu0 }
 0x1d8   :  { %v6570_v10 = vadd.f32 %v6567_v8, %v945_v9  ;;  %v5024_v9 = vld [vmem:[%s7402_s7 + $0x4] sm:$0xf] }
 0x1d9   :  { %v5556_v11 = vpop.f32.mrf.mxu0 }
 0x1da   :  { %v6598_v11 = vsel %vm1016_vm2, %v5024_v9, 0 }
 0x1db   :  { %5582 = vmatpush3.bf16.msra.mxu1 %v6598_v11 }
 0x1dc   :  { %5593 = vmatprep.subr.bf16.mxu1 %v6201_v1 }
 0x278   :  { %v994_v12 = vpop.f32.mrf.mxu1 }
 0x279   :  { %v1000_v15 = vmul.f32 0.35355338, %v994_v12  ;;  %v745_v12 = vadd.f32 %v6521_v42, %v6511_v37 }
 0x27a   :  { %v5561_v16 = vpop.f32.mrf.mxu1 }
 0x27b   :  { %v1001_v17 = vsel %vm953_vm3, %v1000_v15, -inf }
 0x27c   :  { %1002 = vmax.xlane.f32.xlu0 %v1001_v17  ;;  %v997_v18 = vpop.f32.mrf.mxu1 }
 0x27e   :  { %v5562_v20 = vpop.f32.mrf.mxu1 }
 0x280   :  { %v1105_v21 = vpop.f32.mrf.mxu1 }
 0x281   :  { %v1111_v22 = vmul.f32 0.35355338, %v1105_v21  ;;  %v679_v21 = vadd.f32 %v6539_v53, %v6532_v49  ;;  %v613_v53 = vadd.f32 %v6497_v25, %v6489_v19 }
 0x282   :  { %v5573_v23 = vpop.f32.mrf.mxu1 }
 0x283   :  { %v1112_v24 = vsel %vm953_vm3, %v1111_v22, -inf  ;;  %v1266_v37 = vpack.c.bf16 %v679_v21, %v679_v21  ;;  %v811_v21 = vadd.f32 %v6557_v2, %v6552_v63 }
 0x284   :  { %1113 = vmax.xlane.f32.xlu0 %v1112_v24  ;;  %v1108_v28 = vpop.f32.mrf.mxu1 }
 0x286   :  { %v5574_v29 = vpop.f32.mrf.mxu1 }
 0x287   :  { %v1272_v29 = vsel %vm953_vm3, %v1266_v37, 0 }
 0x305   :  { %v1003_v30 = vpop.xlane.xlu0 %1002 }
 0x306   :  { %v1004_v33 = vsub.f32 %v1000_v15, %v1003_v30  ;;  %v1267_v15 = vpack.c.bf16 %v745_v12, %v745_v12  ;;  %v877_v12 = vadd.f32 %v6544_v54, %v6534_v50  ;;  %v943_v50 = vadd.f32 %v6567_v8, %v6562_v6 }
 0x308   :  { %v1005_v34 = vmul.f32 1.442695, %v1004_v33  ;;  %v1331_v20 = vsel %vm1016_vm2, %v1267_v15, 0  ;;  %v1265_v33 = vpack.c.bf16 %v613_v53, %v613_v53  ;;  %v1425_v54 = vpack.c.bf16 %v943_v50, %v943_v50 }
 0x30a   :  { %6084 = vpow2.f32 %v1005_v34 }
 0x30d   :  { %v1114_v35 = vpop.xlane.xlu0 %1113 }
 0x30e   :  { %v1115_v38 = vsub.f32 %v1111_v22, %v1114_v35 }
 0x310   :  { %v1116_v39 = vmul.f32 1.442695, %v1115_v38 }
 0x312   :  { %6086 = vpow2.f32 %v1116_v39 }
 0x317   :  { %v6085_v40 = vpop.eup %6084 }
 0x318   :  { %v1007_v43 = vsel %vm953_vm3, %v6085_v40, 0.0 }
 0x319   :  { %1008 = vadd.xlane.f32.xlu1 %v1007_v43 }
 0x31f   :  { %v6087_v44 = vpop.eup %6086 }
 0x320   :  { %v1118_v47 = vsel %vm953_vm3, %v6087_v44, 0.0 }
 0x321   :  { %1119 = vadd.xlane.f32.xlu1 %v1118_v47 }
 0x3a2   :  { %v1009_v48 = vpop.xlane.xlu1 %1008 }
 0x3a3   :  { %6088 = vrcp.f32 %v1009_v48 }
 0x3aa   :  { %v1120_v51 = vpop.xlane.xlu1 %1119 }
 0x3ab   :  { %6090 = vrcp.f32 %v1120_v51 }
 0x3b0   :  { %v6089_v55 = vpop.eup %6088 }
 0x3b1   :  { %v1011_v59 = vmul.f32 %v6089_v55, %v6085_v40 }
 0x3b3   :  { %v1012_v62 = vpack.c.bf16 %v1011_v59, %v1011_v59 }
 0x3b5   :  { %5566 = vmatmul.mubr.msk.bf16.vlgmr.msra.gmra.mxu0 %vm953_vm3, %v1012_v62 }
 0x3b6   :  { %5576 = vmatpush3.bf16.msra.mxu0 %v1128_v0  ;;  %5577 = vmatprep.mubr.msk.bf16.mxu0 %vm6202_vm0, %v6201_v1 }
 0x3b7   :  { %5587 = vmatprep.subr.bf16.mxu0 %v6201_v1 }
 0x3b8   :  { %v6091_v3 = vpop.eup %6090 }
 0x3b9   :  { %v1122_v36 = vmul.f32 %v6091_v3, %v6087_v44 }
 0x3bb   :  { %v1123_v41 = vpack.c.bf16 %v1122_v36, %v1122_v36  ;;  %v5029_v36 = vld [vmem:[%s7402_s7 + $0x8] sm:$0xf] }
 0x3bd   :  { %5578 = vmatmul.mubr.msk.bf16.vlgmr.msra.gmra.mxu0 %vm953_vm3, %v1123_v41  ;;  %v6629_v41 = vsel %vm1016_vm2, %v5029_v36, 0 }
 0x3be   :  { %5588 = vmatpush3.bf16.msra.mxu0 %v6587_v7  ;;  %5589 = vmatprep.mubr.msk.bf16.mxu0 %vm6202_vm0, %v6201_v1 }
 0x3bf   :  { %5599 = vmatprep.subr.bf16.mxu0 %v6201_v1 }
 0x475   :  { %v1054_v16 = vpop.f32.mrf.mxu0 }
 0x476   :  { %v1060_v17 = vpack.c.bf16 %v1054_v16, %v1054_v16  ;;  %v1424_v16 = vpack.c.bf16 %v877_v12, %v877_v12 }
 0x477   :  { %v5567_v18 = vpop.f32.mrf.mxu0 }
 0x478   :  { %5590 = vmatmul.mubr.msk.bf16.vlgmr.msra.gmra.mxu0 %vm953_vm3, %v1060_v17 }
 0x479   :  { %5600 = vmatpush3.bf16.msra.mxu0 %v1331_v20  ;;  %v1057_v22 = vpop.f32.mrf.mxu0  ;;  %5601 = vmatprep.mubr.msk.bf16.mxu0 %vm6202_vm0, %v6201_v1  ;;  %v1430_v20 = vsel %vm953_vm3, %v1424_v16, 0 }
 0x47a   :  { %5611 = vmatprep.subr.bf16.mxu0 %v6201_v1  ;;  %v1423_v22 = vpack.c.bf16 %v811_v21, %v811_v21 }
 0x47b   :  { %v5568_v23 = vpop.f32.mrf.mxu0 }
 0x47d   :  { %v1164_v42 = vpop.f32.mrf.mxu0 }
 0x47e   :  { %v1170_v24 = vpack.c.bf16 %v1164_v42, %v1164_v42 }
 0x47f   :  { %v5579_v28 = vpop.f32.mrf.mxu0 }
 0x480   :  { %5584 = vmatmul.mubr.msk.bf16.vlgmr.msra.gmra.mxu1 %vm953_vm3, %v1170_v24  ;;  %v1489_v24 = vsel %vm1016_vm2, %v1425_v54, 0 }
 0x481   :  { %5594 = vmatpush3.bf16.xpose.msra.mxu1 %v1272_v29  ;;  %v1167_v49 = vpop.f32.mrf.mxu0  ;;  %5595 = vmatprep.mubr.msk.bf16.mxu1 %vm6202_vm0, %v6201_v1 }
 0x482   :  { %5605 = vmatprep.subr.bf16.mxu1 %v6201_v1 }
 0x483   :  { %v5580_v30 = vpop.f32.mrf.mxu0 }
 0x488   :  { %5596 = vmatmul.mubr.msk.bf16.vlgmr.msra.gmra.mxu1 %vm953_vm3, %v1265_v33 }
 0x489   :  { %5607 = vmatprep.mubr.msk.bf16.mxu1 %vm6202_vm0, %v6201_v1  ;;  %5606 = vmatpush3.bf16.msra.mxu1 %v6629_v41 }
 0x48a   :  { %5617 = vmatprep.subr.bf16.mxu1 %v6201_v1 }
 0x538   :  { %v1259_v34 = vpop.f32.mrf.mxu0 }
 0x53a   :  { %v5591_v35 = vpop.f32.mrf.mxu0 }
 0x53c   :  { %v1262_v38 = vpop.f32.mrf.mxu0 }
 0x53e   :  { %v5592_v39 = vpop.f32.mrf.mxu0 }
 0x540   :  { %v1213_v40 = vpop.f32.mrf.mxu1 }
 0x541   :  { %v6621_v43 = vadd.f32 %v1259_v34, %v1213_v40 }
 0x542   :  { %v5585_v44 = vpop.f32.mrf.mxu1 }
 0x544   :  { %v1216_v47 = vpop.f32.mrf.mxu1 }
 0x546   :  { %v5586_v48 = vpop.f32.mrf.mxu1 }
 0x548   :  { %v1308_v19 = vpop.f32.mrf.mxu1 }
 0x549   :  { %v1314_v25 = vmul.f32 0.35355338, %v1308_v19  ;;  %v5033_v19 = vld [vmem:[%s7402_s7 + $0xc] sm:$0xf] }
 0x54a   :  { %v5597_v51 = vpop.f32.mrf.mxu1 }
 0x54b   :  { %v1315_v52 = vsel %vm953_vm3, %v1314_v25, -inf }
 0x54c   :  { %1316 = vmax.xlane.f32.xlu0 %v1315_v52  ;;  %v1311_v55 = vpop.f32.mrf.mxu1 }
 0x54e   :  { %v5598_v56 = vpop.f32.mrf.mxu1 }
 0x5d5   :  { %v1317_v59 = vpop.xlane.xlu0 %1316 }
 0x5d6   :  { %v1318_v62 = vsub.f32 %v1314_v25, %v1317_v59  ;;  %v6661_v25 = vsel %vm1016_vm2, %v5033_v19, 0 }
 0x5d8   :  { %v1319_v0 = vmul.f32 1.442695, %v1318_v62  ;;  %v1698_v62 = vpack.c.bf16 %v6486_v14, %v6486_v14 }
 0x5da   :  { %6092 = vpow2.f32 %v1319_v0  ;;  %v1588_v0 = vpack.c.bf16 %v6472_v60, %v6472_v60  ;;  %v1590_v60 = vpack.c.bf16 %v6474_v61, %v6474_v61 }
 0x5e7   :  { %v6093_v3 = vpop.eup %6092 }
 0x5e8   :  { %v1321_v5 = vsel %vm953_vm3, %v6093_v3, 0.0 }
 0x5e9   :  { %1322 = vadd.xlane.f32.xlu1 %v1321_v5 }
 0x672   :  { %v1323_v9 = vpop.xlane.xlu1 %1322 }
 0x673   :  { %6094 = vrcp.f32 %v1323_v9  ;;  %v1654_v9 = vsel %vm1016_vm2, %v1590_v60, 0 }
 0x680   :  { %v6095_v15 = vpop.eup %6094 }
 0x681   :  { %v1325_v17 = vmul.f32 %v6095_v15, %v6093_v3  ;;  %v1697_v3 = vpack.c.bf16 %v6500_v31, %v6500_v31 }
 0x683   :  { %v1326_v18 = vpack.c.bf16 %v1325_v17, %v1325_v17 }
 0x685   :  { %5602 = vmatmul.mubr.msk.bf16.vlgmr.msra.gmra.mxu0 %vm953_vm3, %v1326_v18 }
 0x686   :  { %5612 = vmatpush3.bf16.xpose.msra.mxu0 %v1430_v20  ;;  %5613 = vmatprep.mubr.msk.bf16.mxu0 %vm6202_vm0, %v6201_v1 }
 0x687   :  { %5623 = vmatprep.subr.bf16.mxu0 %v6201_v1 }
 0x68d   :  { %5614 = vmatmul.mubr.msk.bf16.vlgmr.msra.gmra.mxu0 %vm953_vm3, %v1423_v22 }
 0x68e   :  { %5625 = vmatprep.mubr.msk.bf16.mxu0 %vm6202_vm0, %v6201_v1  ;;  %5624 = vmatpush3.bf16.msra.mxu0 %v6661_v25 }
 0x68f   :  { %5635 = vmatprep.subr.bf16.mxu0 %v6201_v1 }
 0x745   :  { %v1367_v23 = vpop.f32.mrf.mxu0 }
 0x746   :  { %v1373_v37 = vpack.c.bf16 %v1367_v23, %v1367_v23 }
 0x747   :  { %v5603_v42 = vpop.f32.mrf.mxu0 }
 0x748   :  { %5608 = vmatmul.mubr.msk.bf16.vlgmr.msra.gmra.mxu1 %vm953_vm3, %v1373_v37 }
 0x749   :  { %5618 = vmatpush3.bf16.msra.mxu1 %v1489_v24  ;;  %v1370_v63 = vpop.f32.mrf.mxu0  ;;  %5619 = vmatprep.mubr.msk.bf16.mxu1 %vm6202_vm0, %v6201_v1 }
 0x74a   :  { %5629 = vmatprep.subr.bf16.mxu1 %v6201_v1 }
 0x74b   :  { %v5604_v2 = vpop.f32.mrf.mxu0 }
 0x74d   :  { %v1466_v28 = vpop.f32.mrf.mxu0 }
 0x74e   :  { %v1472_v29 = vmul.f32 0.35355338, %v1466_v28 }
 0x74f   :  { %v5615_v49 = vpop.f32.mrf.mxu0 }
 0x750   :  { %v1473_v6 = vsel %vm953_vm3, %v1472_v29, -inf }
 0x751   :  { %1474 = vmax.xlane.f32.xlu0 %v1473_v6  ;;  %v1469_v8 = vpop.f32.mrf.mxu0 }
 0x753   :  { %v5616_v53 = vpop.f32.mrf.mxu0 }
 0x7da   :  { %v1475_v30 = vpop.xlane.xlu0 %1474 }
 0x7db   :  { %v1476_v33 = vsub.f32 %v1472_v29, %v1475_v30 }
 0x7dd   :  { %v1477_v34 = vmul.f32 1.442695, %v1476_v33 }
 0x7df   :  { %6096 = vpow2.f32 %v1477_v34 }
 0x7ec   :  { %v6097_v35 = vpop.eup %6096 }
 0x7ed   :  { %v1479_v38 = vsel %vm953_vm3, %v6097_v35, 0.0 }
 0x7ee   :  { %1480 = vadd.xlane.f32.xlu1 %v1479_v38 }
 0x808   :  { %v1416_v39 = vpop.f32.mrf.mxu1 }
 0x809   :  { %v6655_v40 = vadd.f32 %v1416_v39, %v6621_v43  ;;  %v1589_v43 = vpack.c.bf16 %v6484_v13, %v6484_v13  ;;  %v1704_v13 = vsel %vm953_vm3, %v1698_v62, 0 }
 0x80a   :  { %v5609_v44 = vpop.f32.mrf.mxu1 }
 0x80b   :  { %v1595_v59 = vsel %vm953_vm3, %v1589_v43, 0 }
 0x80c   :  { %v1419_v47 = vpop.f32.mrf.mxu1 }
 0x80d   :  { %v1699_v47 = vpack.c.bf16 %v6524_v45, %v6524_v45  ;;  %v1894_v45 = vpack.c.bf16 %v6527_v46, %v6527_v46 }
 0x80e   :  { %v5610_v48 = vpop.f32.mrf.mxu1 }
 0x80f   :  { %v1958_v62 = vsel %vm1016_vm2, %v1894_v45, 0 }
 0x877   :  { %v1481_v51 = vpop.xlane.xlu1 %1480 }
 0x878   :  { %6098 = vrcp.f32 %v1481_v51  ;;  %v1763_v51 = vsel %vm1016_vm2, %v1699_v47, 0 }
 0x885   :  { %v6099_v52 = vpop.eup %6098 }
 0x886   :  { %v1483_v55 = vmul.f32 %v6099_v52, %v6097_v35 }
 0x888   :  { %v1484_v56 = vpack.c.bf16 %v1483_v55, %v1483_v55 }
 0x88a   :  { %5620 = vmatmul.mubr.msk.bf16.vlgmr.msra.gmra.mxu1 %vm953_vm3, %v1484_v56 }
 0x88b   :  { %5630 = vmatpush3.bf16.xpose.msra.mxu1 %v1595_v59  ;;  %5631 = vmatprep.mubr.msk.bf16.mxu1 %vm6202_vm0, %v6201_v1 }
 0x88c   :  { %5641 = vmatprep.subr.bf16.mxu1 %v6201_v1 }
 0x892   :  { %5632 = vmatmul.mubr.msk.bf16.vlgmr.msra.gmra.mxu1 %vm953_vm3, %v1588_v0 }
 0x893   :  { %5642 = vmatpush3.bf16.xpose.msra.mxu1 %v1704_v13  ;;  %5643 = vmatprep.mubr.msk.bf16.mxu1 %vm6202_vm0, %v6201_v1  ;;  %v1893_v13 = vpack.c.bf16 %v6547_v57, %v6547_v57 }
 0x894   :  { %5653 = vmatprep.subr.bf16.mxu1 %v6201_v1 }
 0x89a   :  { %5644 = vmatmul.mubr.msk.bf16.vlgmr.msra.gmra.mxu1 %vm953_vm3, %v1697_v3 }
 0x89b   :  { %5654 = vmatpush3.bf16.msra.mxu1 %v6598_v11  ;;  %5655 = vmatprep.mubr.msk.bf16.mxu1 %vm6202_vm0, %v6201_v1 }
 0x89c   :  { %5665 = vmatprep.subr.bf16.mxu1 %v6201_v1 }
 0x94a   :  { %v1525_v14 = vpop.f32.mrf.mxu1 }
 0x94b   :  { %v1531_v5 = vpack.c.bf16 %v1525_v14, %v1525_v14  ;;  %v1899_v14 = vsel %vm953_vm3, %v1893_v13, 0 }
 0x94c   :  { %v5621_v36 = vpop.f32.mrf.mxu1 }
 0x94d   :  { %5626 = vmatmul.mubr.msk.bf16.vlgmr.msra.gmra.mxu0 %vm953_vm3, %v1531_v5 }
 0x94e   :  { %5636 = vmatpush3.bf16.msra.mxu0 %v1654_v9  ;;  %v1528_v31 = vpop.f32.mrf.mxu1  ;;  %5637 = vmatprep.mubr.msk.bf16.mxu0 %vm6202_vm0, %v6201_v1  ;;  %v1892_v9 = vpack.c.bf16 %v6503_v32, %v6503_v32 }
 0x94f   :  { %5647 = vmatprep.subr.bf16.mxu0 %v6201_v1 }
 0x950   :  { %v5622_v11 = vpop.f32.mrf.mxu1 }
 0x952   :  { %v1631_v12 = vpop.f32.mrf.mxu1 }
 0x953   :  { %v1637_v15 = vmul.f32 0.35355338, %v1631_v12 }
 0x954   :  { %v5633_v16 = vpop.f32.mrf.mxu1 }
 0x955   :  { %v1638_v61 = vsel %vm953_vm3, %v1637_v15, -inf }
 0x956   :  { %1639 = vmax.xlane.f32.xlu0 %v1638_v61  ;;  %v1634_v17 = vpop.f32.mrf.mxu1 }
 0x958   :  { %v5634_v18 = vpop.f32.mrf.mxu1 }
 0x95a   :  { %v1740_v20 = vpop.f32.mrf.mxu1 }
 0x95b   :  { %v1746_v21 = vmul.f32 0.35355338, %v1740_v20 }
 0x95c   :  { %v5645_v22 = vpop.f32.mrf.mxu1 }
 0x95d   :  { %v1747_v50 = vsel %vm953_vm3, %v1746_v21, -inf }
 0x95e   :  { %1748 = vmax.xlane.f32.xlu1 %v1747_v50  ;;  %v1743_v54 = vpop.f32.mrf.mxu1 }
 0x960   :  { %v5646_v23 = vpop.f32.mrf.mxu1 }
 0x9df   :  { %v1640_v37 = vpop.xlane.xlu0 %1639 }
 0x9e0   :  { %v1641_v42 = vsub.f32 %v1637_v15, %v1640_v37 }
 0x9e2   :  { %v1642_v24 = vmul.f32 1.442695, %v1641_v42 }
 0x9e4   :  { %6100 = vpow2.f32 %v1642_v24 }
 0x9e7   :  { %v1749_v63 = vpop.xlane.xlu1 %1748 }
 0x9e8   :  { %v1750_v2 = vsub.f32 %v1746_v21, %v1749_v63 }
 0x9ea   :  { %v1751_v28 = vmul.f32 1.442695, %v1750_v2 }
 0x9ec   :  { %6102 = vpow2.f32 %v1751_v28  ;;  %v2046_v28 = vpack.c.bf16 %v6550_v58, %v6550_v58  ;;  %v2047_v58 = vpack.c.bf16 %v6570_v10, %v6570_v10 }
 0x9f1   :  { %v6101_v29 = vpop.eup %6100 }
 0x9f2   :  { %v1644_v49 = vsel %vm953_vm3, %v6101_v29, 0.0 }
 0x9f3   :  { %1645 = vadd.xlane.f32.xlu0 %v1644_v49 }
 0x9f9   :  { %v6103_v6 = vpop.eup %6102 }
 0x9fa   :  { %v1753_v8 = vsel %vm953_vm3, %v6103_v6, 0.0 }
 0x9fb   :  { %1754 = vadd.xlane.f32.xlu1 %v1753_v8  ;;  %v2045_v8 = vpack.c.bf16 %v6560_v4, %v6560_v4  ;;  %v5035_v4 = vld [vmem:[%s7403_s8] ss:$0 sm:$0xff] }
 0xa0d   :  { %v1574_v53 = vpop.f32.mrf.mxu0 }
 0xa0e   :  { %v6700_v30 = vadd.f32 %v1574_v53, %v6655_v40 }
 0xa0f   :  { %v5627_v33 = vpop.f32.mrf.mxu0 }
 0xa10   :  { %v1587_v10 = vadd.f32 %v5035_v4, %v6700_v30 }
 0xa11   :  { %v1577_v34 = vpop.f32.mrf.mxu0 }
 0xa13   :  { %v5628_v35 = vpop.f32.mrf.mxu0 }
 0xa14   :  { %v2111_v35 = vsel %vm1016_vm2, %v2047_v58, 0 }
 0xa7c   :  { %v1646_v38 = vpop.xlane.xlu0 %1645 }
 0xa7d   :  { %6104 = vrcp.f32 %v1646_v38 }
 0xa84   :  { %v1755_v39 = vpop.xlane.xlu1 %1754 }
 0xa85   :  { %6106 = vrcp.f32 %v1755_v39 }
 0xa8a   :  { %v6105_v44 = vpop.eup %6104 }
 0xa8b   :  { %v1648_v48 = vmul.f32 %v6105_v44, %v6101_v29 }
 0xa8d   :  { %v1649_v19 = vpack.c.bf16 %v1648_v48, %v1648_v48  ;;  %v6765_v48 = vadd.f32 %v1587_v10, %v6329_v26 }
 0xa8f   :  { %5638 = vmatmul.mubr.msk.bf16.vlgmr.msra.gmra.mxu0 %vm953_vm3, %v1649_v19 }
 0xa90   :  { %5648 = vmatpush3.bf16.msra.mxu0 %v1763_v51  ;;  %5649 = vmatprep.mubr.msk.bf16.mxu0 %vm6202_vm0, %v6201_v1 }
 0xa91   :  { %5659 = vmatprep.subr.bf16.mxu0 %v6201_v1 }
 0xa92   :  { %v6107_v40 = vpop.eup %6106 }
 0xa93   :  { %v1757_v52 = vmul.f32 %v6107_v40, %v6103_v6  ;;  %v2052_v6 = vsel %vm953_vm3, %v2046_v28, 0 }
 0xa95   :  { %v1758_v43 = vpack.c.bf16 %v1757_v52, %v1757_v52  ;;  %v2201_v52 = vsel %vm88_vm1, %v6765_v48, 0.0 }
 0xa97   :  { %5650 = vmatmul.mubr.msk.bf16.vlgmr.msra.gmra.mxu0 %vm953_vm3, %v1758_v43  ;;  %v2210_v43 = vmul.f32 %v6765_v48, %v6765_v48 }
 0xa98   :  { %5660 = vmatpush3.bf16.msra.mxu0 %v6587_v7  ;;  %5661 = vmatprep.mubr.msk.bf16.mxu0 %vm6202_vm0, %v6201_v1 }
 0xa99   :  { %5671 = vmatprep.subr.bf16.mxu0 %v6201_v1  ;;  %v2212_v30 = vsel %vm88_vm1, %v2210_v43, 0.0 }
 0xb4f   :  { %v1690_v55 = vpop.f32.mrf.mxu0 }
 0xb50   :  { %v1696_v56 = vpack.c.bf16 %v1690_v55, %v1690_v55 }
 0xb51   :  { %v5639_v59 = vpop.f32.mrf.mxu0 }
 0xb52   :  { %5662 = vmatmul.mubr.msk.bf16.vlgmr.msra.gmra.mxu0 %vm953_vm3, %v1696_v56 }
 0xb53   :  { %5672 = vmatpush3.bf16.msra.mxu0 %v1958_v62  ;;  %v1693_v0 = vpop.f32.mrf.mxu0  ;;  %5673 = vmatprep.mubr.msk.bf16.mxu0 %vm6202_vm0, %v6201_v1 }
 0xb54   :  { %5683 = vmatprep.subr.bf16.mxu0 %v6201_v1 }
 0xb55   :  { %v5640_v7 = vpop.f32.mrf.mxu0 }
 0xb57   :  { %v1799_v3 = vpop.f32.mrf.mxu0 }
 0xb58   :  { %v1805_v46 = vpack.c.bf16 %v1799_v3, %v1799_v3 }
 0xb59   :  { %v5651_v60 = vpop.f32.mrf.mxu0 }
 0xb5a   :  { %5656 = vmatmul.mubr.msk.bf16.vlgmr.msra.gmra.mxu1 %vm953_vm3, %v1805_v46 }
 0xb5b   :  { %5666 = vmatpush3.bf16.xpose.msra.mxu1 %v1899_v14  ;;  %v1802_v5 = vpop.f32.mrf.mxu0  ;;  %5667 = vmatprep.mubr.msk.bf16.mxu1 %vm6202_vm0, %v6201_v1 }
 0xb5c   :  { %5677 = vmatprep.subr.bf16.mxu1 %v6201_v1 }
 0xb5d   :  { %v5652_v36 = vpop.f32.mrf.mxu0 }
 0xb62   :  { %5668 = vmatmul.mubr.msk.bf16.vlgmr.msra.gmra.mxu1 %vm953_vm3, %v1892_v9 }
 0xb63   :  { %5678 = vmatpush3.bf16.msra.mxu1 %v6629_v41  ;;  %5679 = vmatprep.mubr.msk.bf16.mxu1 %vm6202_vm0, %v6201_v1 }
 0xb64   :  { %5689 = vmatprep.subr.bf16.mxu1 %v6201_v1 }
 0xc12   :  { %v1886_v57 = vpop.f32.mrf.mxu0 }
 0xc14   :  { %v5663_v31 = vpop.f32.mrf.mxu0 }
 0xc16   :  { %v1889_v11 = vpop.f32.mrf.mxu0 }
 0xc18   :  { %v5664_v12 = vpop.f32.mrf.mxu0 }
 0xc1a   :  { %v1843_v15 = vpop.f32.mrf.mxu1 }
 0xc1b   :  { %v6735_v16 = vadd.f32 %v1886_v57, %v1843_v15 }
 0xc1c   :  { %v5657_v61 = vpop.f32.mrf.mxu1 }
 0xc1e   :  { %v1846_v17 = vpop.f32.mrf.mxu1 }
 0xc20   :  { %v5658_v18 = vpop.f32.mrf.mxu1 }
 0xc22   :  { %v1935_v32 = vpop.f32.mrf.mxu1 }
 0xc23   :  { %v1941_v20 = vmul.f32 0.35355338, %v1935_v32 }
 0xc24   :  { %v5669_v21 = vpop.f32.mrf.mxu1 }
 0xc25   :  { %v1942_v41 = vsel %vm953_vm3, %v1941_v20, -inf }
 0xc26   :  { %1943 = vmax.xlane.f32.xlu0 %v1942_v41  ;;  %v1938_v22 = vpop.f32.mrf.mxu1 }
 0xc27   :  { %v6038_v22 = vld [vmem:[%s7404_s9 + $0x8] sm:$0xff]  }
 0xc28   :  { %v5670_v50 = vpop.f32.mrf.mxu1 }
 0xc29   :  { %v6039_v50 = vld [vmem:[%s7404_s9] sm:$0xff]  }
 0xcaf   :  { %v1944_v54 = vpop.xlane.xlu0 %1943 }
 0xcb0   :  { %v1945_v23 = vsub.f32 %v1941_v20, %v1944_v54  ;;  %v6041_v54 = vld [vmem:[%s7406_s11 + $0x30] sm:$0xff]  }
 0xcb2   :  { %v1946_v37 = vmul.f32 1.442695, %v1945_v23  ;;  %v6042_v23 = vld [vmem:[%s7406_s11 + $0x28] sm:$0xff]  }
 0xcb4   :  { %6108 = vpow2.f32 %v1946_v37  ;;  %v6043_v37 = vld [vmem:[%s7406_s11 + $0x20] sm:$0xff]  }
 0xcc1   :  { %v6109_v42 = vpop.eup %6108 }
 0xcc2   :  { %v1948_v24 = vsel %vm953_vm3, %v6109_v42, 0.0 }
 0xcc3   :  { %1949 = vadd.xlane.f32.xlu1 %v1948_v24 }
 0xd4c   :  { %v1950_v63 = vpop.xlane.xlu1 %1949 }
 0xd4d   :  { %6110 = vrcp.f32 %v1950_v63 }
 0xd5a   :  { %v6111_v2 = vpop.eup %6110 }
 0xd5b   :  { %v1952_v29 = vmul.f32 %v6111_v2, %v6109_v42  ;;  %v6044_v42 = vld [vmem:[%s7406_s11 + $0x18] sm:$0xff]  }
 0xd5d   :  { %v1953_v49 = vpack.c.bf16 %v1952_v29, %v1952_v29 }
 0xd5f   :  { %5674 = vmatmul.mubr.msk.bf16.vlgmr.msra.gmra.mxu0 %vm953_vm3, %v1953_v49 }
 0xd60   :  { %5684 = vmatpush3.bf16.xpose.msra.mxu0 %v2052_v6  ;;  %5685 = vmatprep.mubr.msk.bf16.mxu0 %vm6202_vm0, %v6201_v1 }
 0xd61   :  { %5695 = vmatprep.subr.bf16.mxu0 %v6201_v1 }
 0xd67   :  { %5686 = vmatmul.mubr.msk.bf16.vlgmr.msra.gmra.mxu0 %vm953_vm3, %v2045_v8 }
 0xd68   :  { %5696 = vmatpush3.bf16.msra.mxu0 %v6661_v25  ;;  %5697 = vmatprep.mubr.msk.bf16.mxu0 %vm6202_vm0, %v6201_v1 }
 0xd69   :  { %5709 = vmatprep.subr.bf16.mxu0 %v6201_v1 }
 0xe1f   :  { %v1994_v53 = vpop.f32.mrf.mxu0 }
 0xe20   :  { %v2000_v33 = vpack.c.bf16 %v1994_v53, %v1994_v53 }
 0xe21   :  { %v5675_v34 = vpop.f32.mrf.mxu0 }
 0xe22   :  { %5680 = vmatmul.mubr.msk.bf16.vlgmr.msra.gmra.mxu1 %vm953_vm3, %v2000_v33 }
 0xe23   :  { %5690 = vmatpush3.bf16.msra.mxu1 %v2111_v35  ;;  %v1997_v25 = vpop.f32.mrf.mxu0  ;;  %5691 = vmatprep.mubr.msk.bf16.mxu1 %vm6202_vm0, %v6201_v1 }
 0xe24   :  { %5701 = vmatprep.subr.bf16.mxu1 %v6201_v1 }
 0xe25   :  { %v5676_v38 = vpop.f32.mrf.mxu0 }
 0xe27   :  { %v2088_v39 = vpop.f32.mrf.mxu0 }
 0xe28   :  { %v2094_v44 = vmul.f32 0.35355338, %v2088_v39  ;;  %v5049_v39 = vld [vmem:[%s7403_s8 + $0x1] ss:$0 sm:$0xff] }
 0xe29   :  { %v5687_v47 = vpop.f32.mrf.mxu0 }
 0xe2a   :  { %v2095_v19 = vsel %vm953_vm3, %v2094_v44, -inf }
 0xe2b   :  { %2096 = vmax.xlane.f32.xlu0 %v2095_v19  ;;  %v2091_v51 = vpop.f32.mrf.mxu0 }
 0xe2d   :  { %v5688_v40 = vpop.f32.mrf.mxu0 }
 0xe2e   :  { %v5051_v40 = vld [vmem:[%s7403_s8 + $0x2] ss:$0 sm:$0xff] }
 0xe2f   :  { %2202 = vadd.xlane.f32.xlu0 %v2201_v52 }
 0xe33   :  { %2213 = vadd.xlane.f32.xlu0 %v2212_v30 }
 0xeb4   :  { %v2097_v45 = vpop.xlane.xlu0 %2096 }
 0xeb5   :  { %v2098_v55 = vsub.f32 %v2094_v44, %v2097_v45 }
 0xeb7   :  { %v2099_v56 = vmul.f32 1.442695, %v2098_v55  ;;  %v6046_v55 = vld [vmem:[%s7406_s11 + $0x8] sm:$0xff]  }
 0xeb8   :  { %v2203_v24 = vpop.xlane.xlu0 %2202 }
 0xeb9   :  { %6112 = vpow2.f32 %v2099_v56  ;;  %v2208_v2 = vmul.f32 0.03125, %v2203_v24  ;;  %v6047_v56 = vld [vmem:[%s7406_s11] sm:$0xff]  }
 0xebb   :  { %v2222_v29 = vmul.f32 %v2208_v2, %v2208_v2  ;;  %v2220_v38 = vsub.f32 %v6765_v48, %v2208_v2  ;;  %v6045_v48 = vld [vmem:[%s7406_s11 + $0x10] sm:$0xff]  }
 0xebc   :  { %v2214_v63 = vpop.xlane.xlu0 %2213 }
 0xebd   :  { %v2218_v28 = vmul.f32 0.03125, %v2214_v63 }
 0xebf   :  { %v2224_v49 = vsub.f32 %v2218_v28, %v2222_v29 }
 0xec1   :  { %v2226_v8 = vadd.f32 1e-05, %v2224_v49 }
 0xec6   :  { %v6113_v26 = vpop.eup %6112 }
 0xec7   :  { %v2101_v59 = vsel %vm953_vm3, %v6113_v26, 0.0 }
 0xec8   :  { %2102 = vadd.xlane.f32.xlu1 %v2101_v59 }
 0xee2   :  { %v2038_v62 = vpop.f32.mrf.mxu1 }
 0xee3   :  { %v2044_v0 = vadd.f32 %v2038_v62, %v6735_v16 }
 0xee4   :  { %v5681_v7 = vpop.f32.mrf.mxu1 }
 0xee6   :  { %v2041_v13 = vpop.f32.mrf.mxu1 }
 0xee8   :  { %v5682_v3 = vpop.f32.mrf.mxu1 }
 0xf51   :  { %v2103_v46 = vpop.xlane.xlu1 %2102 }
 0xf52   :  { %6114 = vrcp.f32 %v2103_v46 }
 0xf53   :  { %6116 = vrsqrt.f32 %v2226_v8 }
 0xf5f   :  { %v6115_v60 = vpop.eup %6114 }
 0xf60   :  { %v2105_v14 = vmul.f32 %v6115_v60, %v6113_v26  ;;  %v6117_v25 = vpop.eup %6116  ;;  %v5052_v26 = vld [vmem:[%s7405_s10] ss:$0 sm:$0xff] }
 0xf61   :  { %v2230_v10 = vmul.f32 %v6117_v25, %v2220_v38 }
 0xf62   :  { %v2106_v5 = vpack.c.bf16 %v2105_v14, %v2105_v14 }
 0xf63   :  { %v2240_v51 = vmul.f32 %v5049_v39, %v2230_v10 }
 0xf64   :  { %5692 = vmatmul.mubr.msk.bf16.vlgmr.msra.gmra.mxu1 %vm953_vm3, %v2106_v5  ;;  %v5057_v5 = vld [vmem:[%s7403_s8 + $0x3] ss:$0 sm:$0xff] }
 0xf65   :  { %5705 = vmatprep.mubr.msk.bf16.mxu1 %vm6202_vm0, %v6201_v1  ;;  %5702 = vmatpush3.bf16.msra.mxu1 %v6038_v22  ;;  %v2250_v43 = vadd.f32 %v5051_v40, %v2240_v51  ;;  %v6049_v22 = vld [vmem:[%s7400_s5 + $0x118] sm:$0xff]  }
 0xf66   :  { %5703 = vmatprep.subr.bf16.mxu1 %v6201_v1 }
 0xf69   :  { %5704 = vmatpush3.bf16.msra.mxu1 %v6039_v50  ;;  %v6050_v50 = vld [vmem:[%s7400_s5 + $0xc0] sm:$0xff]  }
 0xf6a   :  { %5729 = vmatprep.subr.bf16.mxu1 %v6201_v1 }
0x1024   :  { %v2147_v36 = vpop.f32.mrf.mxu1 }
0x1025   :  { %v2153_v9 = vpack.c.bf16 %v2147_v36, %v2147_v36 }
0x1026   :  { %v5693_v57 = vpop.f32.mrf.mxu1 }
0x1027   :  { %5698 = vmatmul.mubr.msk.bf16.vlgmr.msra.gmra.mxu0 %vm953_vm3, %v2153_v9 }
0x1028   :  { %v2150_v31 = vpop.f32.mrf.mxu1  ;;  %5725 = vmatprep.mubr.msk.bf16.mxu0 %vm6202_vm0, %v6201_v1 }
0x102a   :  { %v5694_v11 = vpop.f32.mrf.mxu1 }
0x10e7   :  { %v2191_v12 = vpop.f32.mrf.mxu0 }
0x10e8   :  { %v2197_v15 = vadd.f32 %v2191_v12, %v2044_v0 }
0x10e9   :  { %v5699_v16 = vpop.f32.mrf.mxu0 }
0x10ea   :  { %v2198_v61 = vadd.f32 %v5035_v4, %v2197_v15 }
0x10eb   :  { %v2194_v17 = vpop.f32.mrf.mxu0 }
0x10ec   :  { %v2200_v18 = vadd.f32 %v2198_v61, %v6331_v27  ;;  %v6040_v27 = vld [vmem:[%s7406_s11 + $0x38] sm:$0xff]  }
0x10ed   :  { %v5700_v32 = vpop.f32.mrf.mxu0  ;;  %5710 = vmatpush3.bf16.msra.mxu0 %v6040_v27  ;;  %v6051_v27 = vld [vmem:[%s7400_s5 + $0x110] sm:$0xff]  }
0x10ee   :  { %v2204_v20 = vsel %vm88_vm1, %v2200_v18, 0.0  ;;  %v2211_v21 = vmul.f32 %v2200_v18, %v2200_v18  ;;  %5711 = vmatprep.subr.bf16.mxu0 %v6201_v1 }
0x10ef   :  { %2205 = vadd.xlane.f32.xlu1 %v2204_v20 }
0x10f0   :  { %v2215_v41 = vsel %vm88_vm1, %v2211_v21, 0.0 }
0x10f1   :  { %5712 = vmatpush3.bf16.msra.mxu0 %v6041_v54 }
0x10f2   :  { %5713 = vmatprep.subr.bf16.mxu0 %v6201_v1 }
0x10f3   :  { %2216 = vadd.xlane.f32.xlu1 %v2215_v41  ;;  %v6048_v41 = vld [vmem:[%s7400_s5 + $0xc8] sm:$0xff]  }
0x10f5   :  { %5714 = vmatpush3.bf16.msra.mxu0 %v6042_v23 }
0x10f6   :  { %5715 = vmatprep.subr.bf16.mxu0 %v6201_v1 }
0x10f9   :  { %5716 = vmatpush3.bf16.msra.mxu0 %v6043_v37 }
0x10fa   :  { %5717 = vmatprep.subr.bf16.mxu0 %v6201_v1 }
0x10fd   :  { %5718 = vmatpush3.bf16.msra.mxu0 %v6044_v42 }
0x10fe   :  { %5719 = vmatprep.subr.bf16.mxu0 %v6201_v1 }
0x1101   :  { %5720 = vmatpush3.bf16.msra.mxu0 %v6045_v48  ;;  %v6056_v48 = vld [vmem:[%s7400_s5 + $0x148] sm:$0xff]  }
0x1102   :  { %5721 = vmatprep.subr.bf16.mxu0 %v6201_v1 }
0x1105   :  { %5722 = vmatpush3.bf16.msra.mxu0 %v6046_v55  ;;  %v6057_v55 = vld [vmem:[%s7400_s5 + $0x168] sm:$0xff]  }
0x1106   :  { %5723 = vmatprep.subr.bf16.mxu0 %v6201_v1 }
0x1109   :  { %5724 = vmatpush3.bf16.msra.mxu0 %v6047_v56  ;;  %v6058_v56 = vld [vmem:[%s7400_s5 + $0x140] sm:$0xff]  }
0x110a   :  { %5761 = vmatprep.subr.bf16.mxu0 %v6201_v1 }
0x1178   :  { %v2206_v6 = vpop.xlane.xlu1 %2205 }
0x1179   :  { %v2209_v58 = vmul.f32 0.03125, %v2206_v6 }
0x117b   :  { %v2223_v33 = vmul.f32 %v2209_v58, %v2209_v58  ;;  %v2221_v44 = vsub.f32 %v2200_v18, %v2209_v58 }
0x117c   :  { %v2217_v53 = vpop.xlane.xlu1 %2216 }
0x117d   :  { %v2219_v34 = vmul.f32 0.03125, %v2217_v53 }
0x117f   :  { %v2225_v35 = vsub.f32 %v2219_v34, %v2223_v33 }
0x1181   :  { %v2227_v4 = vadd.f32 1e-05, %v2225_v35 }
0x1183   :  { %6118 = vrsqrt.f32 %v2227_v4  ;;  %v5067_v4 = vld [vmem:[%s7403_s8 + $0x4] ss:$0 sm:$0xff] }
0x1190   :  { %v6119_v47 = vpop.eup %6118 }
0x1191   :  { %v2231_v19 = vmul.f32 %v6119_v47, %v2221_v44  ;;  %v5069_v44 = vld [vmem:[%s7403_s8 + $0x5] ss:$0 sm:$0xff] }
0x1193   :  { %v2241_v52 = vmul.f32 %v5049_v39, %v2231_v19 }
0x1195   :  { %v2251_v30 = vadd.f32 %v5051_v40, %v2241_v52  ;;  %v6052_v40 = vld [vmem:[%s7400_s5 + $0x108] sm:$0xff]  }
0x1196   :  { %v6053_v52 = vld [vmem:[%s7400_s5 + $0xe8] sm:$0xff]  }
0x1197   :  { %v2252_v45 = vpack.c.bf16 %v2251_v30, %v2250_v43 }
0x1199   :  { %5706 = vmatmul.mubr.msk.bf16.vlgmr.msra.gmra.mxu1 %vm88_vm1, %v2252_v45  ;;  %v6055_v45 = vld [vmem:[%s7400_s5 + $0xe0] sm:$0xff]  }
0x119a   :  { %5733 = vmatprep.mubr.msk.bf16.mxu1 %vm6202_vm0, %v6201_v1  ;;  %5730 = vmatpush3.bf16.msra.mxu1 %v6048_v41  ;;  %v5084_v41 = vld [vmem:[%s7401_s6 + $0x10] ss:$0 sm:$0xff] }
0x119b   :  { %5731 = vmatprep.subr.bf16.mxu1 %v6201_v1 }
0x119e   :  { %5732 = vmatpush3.bf16.msra.mxu1 %v6050_v50 }
0x119f   :  { %5737 = vmatprep.subr.bf16.mxu1 %v6201_v1 }
0x1259   :  { %v2313_v59 = vpop.f32.mrf.mxu1 }
0x125a   :  { %v2314_v0 = vadd.f32 %v5052_v26, %v2313_v59  ;;  %v6060_v59 = vld [vmem:[%s7400_s5 + $0xd8] sm:$0xff]  }
0x125b   :  { %v5707_v62 = vpop.f32.mrf.mxu1 }
0x125c   :  { %v2320_v46 = vmax.f32 %v2314_v0, 0.0  ;;  %v6061_v62 = vld [vmem:[%s7400_s5 + $0x138] sm:$0xff]   ;;  %v6062_v0 = vld [vmem:[%s7400_s5 + $0xd0] sm:$0xff]  }
0x125d   :  { %v2316_v7 = vpop.f32.mrf.mxu1 }
0x125e   :  { %v2317_v13 = vadd.f32 %v5052_v26, %v2316_v7  ;;  %v6059_v26 = vld [vmem:[%s7400_s5 + $0x160] sm:$0xff]   ;;  %v6063_v7 = vld [vmem:[%s7400_s5 + $0x130] sm:$0xff]  }
0x125f   :  { %v5708_v3 = vpop.f32.mrf.mxu1 }
0x1260   :  { %v2321_v60 = vmax.f32 %v2317_v13, 0.0  ;;  %v6064_v13 = vld [vmem:[%s7400_s5 + $0x158] sm:$0xff]   ;;  %v6065_v3 = vld [vmem:[%s7400_s5 + $0x150] sm:$0xff]  }
0x1262   :  { %v2322_v14 = vpack.c.bf16 %v2321_v60, %v2320_v46  ;;  %v6066_v46 = vld [vmem:[%s7400_s5 + $0x128] sm:$0xff]   ;;  %v6067_v60 = vld [vmem:[%s7400_s5 + $0x120] sm:$0xff]  }
0x1264   :  { %5726 = vmatmul.mubr.bf16.vlgmr.msra.gmra.mxu0 %v2322_v14  ;;  %v6068_v14 = vld [vmem:[%s7400_s5 + $0xf8] sm:$0xff]  }
0x1265   :  { %5765 = vmatprep.mubr.msk.bf16.mxu0 %vm6202_vm0, %v6201_v1  ;;  %5762 = vmatpush3.bf16.msra.mxu0 %v6049_v22 }
0x1266   :  { %5763 = vmatprep.subr.bf16.mxu0 %v6201_v1 }
0x1269   :  { %5764 = vmatpush3.bf16.msra.mxu0 %v6051_v27 }
0x126a   :  { %5777 = vmatprep.subr.bf16.mxu0 %v6201_v1 }
0x1324   :  { %v2429_v36 = vpop.f32.mrf.mxu0 }
0x1325   :  { %v2430_v9 = vadd.f32 %v5057_v5, %v2429_v36  ;;  %v6070_v36 = vld [vmem:[%s7400_s5 + $0x178] sm:$0xff]  }
0x1326   :  { %v5727_v57 = vpop.f32.mrf.mxu0 }
0x1327   :  { %v2436_v31 = vadd.f32 %v2430_v9, %v2250_v43  ;;  %v6071_v9 = vld [vmem:[%s7400_s5 + $0x170] sm:$0xff]  }
0x1328   :  { %v2432_v11 = vpop.f32.mrf.mxu0 }
0x1329   :  { %v2433_v12 = vadd.f32 %v5057_v5, %v2432_v11  ;;  %v2438_v15 = vsel %vm88_vm1, %v2436_v31, 0.0  ;;  %v2446_v16 = vmul.f32 %v2436_v31, %v2436_v31  ;;  %v6069_v5 = vld [vmem:[%s7400_s5 + $0xf0] sm:$0xff]  }
0x132a   :  { %2439 = vadd.xlane.f32.xlu0 %v2438_v15  ;;  %v5728_v61 = vpop.f32.mrf.mxu0  ;;  %v5075_v15 = vld [vmem:[%s7401_s6 + $0xc] ss:$0 sm:$0xff] }
0x132b   :  { %v2437_v17 = vadd.f32 %v2433_v12, %v2251_v30  ;;  %v2448_v18 = vsel %vm88_vm1, %v2446_v16, 0.0  ;;  %v6054_v30 = vld [vmem:[%s7400_s5 + $0x100] sm:$0xff]   ;;  %v5111_v16 = vld [vmem:[%s7401_s6 + $0x11] ss:$0 sm:$0xff] }
0x132d   :  { %v2441_v32 = vsel %vm88_vm1, %v2437_v17, 0.0  ;;  %v2447_v20 = vmul.f32 %v2437_v17, %v2437_v17 }
0x132e   :  { %2449 = vadd.xlane.f32.xlu0 %v2448_v18  ;;  %2442 = vadd.xlane.f32.xlu1 %v2441_v32 }
0x132f   :  { %v2451_v21 = vsel %vm88_vm1, %v2447_v20, 0.0 }
0x1332   :  { %2452 = vadd.xlane.f32.xlu1 %v2451_v21 }
0x13b3   :  { %v2440_v54 = vpop.xlane.xlu0 %2439 }
0x13b4   :  { %v2444_v23 = vmul.f32 0.03125, %v2440_v54 }
0x13b6   :  { %v2458_v24 = vmul.f32 %v2444_v23, %v2444_v23  ;;  %v2456_v33 = vsub.f32 %v2436_v31, %v2444_v23 }
0x13b7   :  { %v2450_v37 = vpop.xlane.xlu0 %2449  ;;  %v2443_v42 = vpop.xlane.xlu1 %2442 }
0x13b8   :  { %v2454_v63 = vmul.f32 0.03125, %v2450_v37  ;;  %v2445_v2 = vmul.f32 0.03125, %v2443_v42  ;;  %v7022_v42 = vld [vmem:[%s7401_s6 + $0xe] ss:$0 sm:$0xff] }
0x13ba   :  { %v2460_v28 = vsub.f32 %v2454_v63, %v2458_v24  ;;  %v2459_v6 = vmul.f32 %v2445_v2, %v2445_v2  ;;  %v2457_v25 = vsub.f32 %v2437_v17, %v2445_v2 }
0x13bb   :  { %v2453_v29 = vpop.xlane.xlu1 %2452 }
0x13bc   :  { %v2462_v49 = vadd.f32 1e-05, %v2460_v28  ;;  %v2455_v8 = vmul.f32 0.03125, %v2453_v29 }
0x13be   :  { %6120 = vrsqrt.f32 %v2462_v49  ;;  %v2461_v58 = vsub.f32 %v2455_v8, %v2459_v6 }
0x13c0   :  { %v2463_v53 = vadd.f32 1e-05, %v2461_v58  ;;  %v5093_v58 = vld [vmem:[%s7401_s6 + $0x14] ss:$0 sm:$0xff] }
0x13c2   :  { %6122 = vrsqrt.f32 %v2463_v53 }
0x13cb   :  { %v6121_v34 = vpop.eup %6120 }
0x13cc   :  { %v2466_v35 = vmul.f32 %v6121_v34, %v2456_v33 }
0x13ce   :  { %v2476_v10 = vmul.f32 %v5067_v4, %v2466_v35 }
0x13cf   :  { %v6123_v38 = vpop.eup %6122 }
0x13d0   :  { %v2467_v39 = vmul.f32 %v6123_v38, %v2457_v25  ;;  %v6868_v19 = vadd.f32 %v5069_v44, %v2476_v10 }
0x13d2   :  { %v2477_v47 = vmul.f32 %v5067_v4, %v2467_v39 }
0x13d4   :  { %v6870_v51 = vadd.f32 %v5069_v44, %v2477_v47  ;;  %v7039_v44 = vld [vmem:[%s7401_s6 + $0x16] ss:$0 sm:$0xff] }
0x13d6   :  { %v6880_v43 = vpack.c.bf16 %v6870_v51, %v6868_v19 }
0x13d8   :  { %5734 = vmatmul.mubr.msk.bf16.vlgmr.msra.gmra.mxu1 %vm88_vm1, %v6880_v43  ;;  %5766 = vmatmul.mubr.msk.bf16.vlgmr.msra.gmra.mxu0 %vm88_vm1, %v6880_v43 }
0x13d9   :  { %5738 = vmatpush3.bf16.msra.mxu1 %v6052_v40  ;;  %5778 = vmatpush3.bf16.msra.mxu0 %v6053_v52 }
0x13da   :  { %5739 = vmatprep.subr.bf16.mxu1 %v6201_v1  ;;  %5779 = vmatprep.subr.bf16.mxu0 %v6201_v1 }
0x13db   :  { %5741 = vmatprep.mubr.msk.bf16.mxu1 %vm6202_vm0, %v6201_v1  ;;  %5781 = vmatprep.mubr.msk.bf16.mxu0 %vm6202_vm0, %v6201_v1 }
0x13dd   :  { %5740 = vmatpush3.bf16.msra.mxu1 %v6054_v30  ;;  %5780 = vmatpush3.bf16.msra.mxu0 %v6055_v45 }
0x13de   :  { %5745 = vmatprep.subr.bf16.mxu1 %v6201_v1  ;;  %5793 = vmatprep.subr.bf16.mxu0 %v6201_v1 }
0x13e0   :  { %5742 = vmatmul.mubr.msk.bf16.vlgmr.msra.gmra.mxu1 %vm88_vm1, %v6880_v43  ;;  %5782 = vmatmul.mubr.msk.bf16.vlgmr.msra.gmra.mxu0 %vm88_vm1, %v6880_v43 }
0x13e1   :  { %5746 = vmatpush3.bf16.msra.mxu1 %v6056_v48  ;;  %5794 = vmatpush3.bf16.msra.mxu0 %v6057_v55 }
0x13e2   :  { %5747 = vmatprep.subr.bf16.mxu1 %v6201_v1  ;;  %5795 = vmatprep.subr.bf16.mxu0 %v6201_v1 }
0x13e3   :  { %5749 = vmatprep.mubr.msk.bf16.mxu1 %vm6202_vm0, %v6201_v1  ;;  %5797 = vmatprep.mubr.msk.bf16.mxu0 %vm6202_vm0, %v6201_v1 }
0x13e5   :  { %5748 = vmatpush3.bf16.msra.mxu1 %v6058_v56  ;;  %5796 = vmatpush3.bf16.msra.mxu0 %v6059_v26  ;;  %v5102_v56 = vld [vmem:[%s7401_s6 + $0xd] ss:$0 sm:$0xff] }
0x13e6   :  { %5753 = vmatprep.subr.bf16.mxu1 %v6201_v1  ;;  %5809 = vmatprep.subr.bf16.mxu0 %v6201_v1 }
0x13e8   :  { %5750 = vmatmul.mubr.msk.bf16.vlgmr.msra.gmra.mxu1 %vm88_vm1, %v6880_v43  ;;  %5798 = vmatmul.mubr.msk.bf16.vlgmr.msra.gmra.mxu0 %vm88_vm1, %v6880_v43 }
0x13e9   :  { %5754 = vmatpush3.bf16.msra.mxu1 %v6060_v59  ;;  %5810 = vmatpush3.bf16.msra.mxu0 %v6061_v62 }
0x13ea   :  { %5755 = vmatprep.subr.bf16.mxu1 %v6201_v1  ;;  %5811 = vmatprep.subr.bf16.mxu0 %v6201_v1 }
0x13eb   :  { %5757 = vmatprep.mubr.msk.bf16.mxu1 %vm6202_vm0, %v6201_v1  ;;  %5813 = vmatprep.mubr.msk.bf16.mxu0 %vm6202_vm0, %v6201_v1 }
0x13ed   :  { %5756 = vmatpush3.bf16.msra.mxu1 %v6062_v0  ;;  %5812 = vmatpush3.bf16.msra.mxu0 %v6063_v7 }
0x13ee   :  { %5769 = vmatprep.subr.bf16.mxu1 %v6201_v1  ;;  %5825 = vmatprep.subr.bf16.mxu0 %v6201_v1 }
0x13f0   :  { %5758 = vmatmul.mubr.msk.bf16.vlgmr.msra.gmra.mxu1 %vm88_vm1, %v6880_v43  ;;  %5814 = vmatmul.mubr.msk.bf16.vlgmr.msra.gmra.mxu0 %vm88_vm1, %v6880_v43 }
0x13f1   :  { %5770 = vmatpush3.bf16.msra.mxu1 %v6064_v13  ;;  %5773 = vmatprep.mubr.msk.bf16.mxu1 %vm6202_vm0, %v6201_v1 }
0x13f2   :  { %5771 = vmatprep.subr.bf16.mxu1 %v6201_v1  ;;  %5827 = vmatprep.mubr.msk.bf16.mxu0 %vm6202_vm0, %v6201_v1 }
0x13f5   :  { %5772 = vmatpush3.bf16.msra.mxu1 %v6065_v3  ;;  %v7061_v3 = vld [vmem:[%s7401_s6 + $0x13] ss:$0 sm:$0xff] }
0x13f6   :  { %5785 = vmatprep.subr.bf16.mxu1 %v6201_v1 }
0x13f8   :  { %5774 = vmatmul.mubr.msk.bf16.vlgmr.msra.gmra.mxu1 %vm88_vm1, %v6880_v43 }
0x13f9   :  { %5786 = vmatpush3.bf16.msra.mxu1 %v6066_v46  ;;  %5789 = vmatprep.mubr.msk.bf16.mxu1 %vm6202_vm0, %v6201_v1 }
0x13fa   :  { %5787 = vmatprep.subr.bf16.mxu1 %v6201_v1 }
0x13fd   :  { %5788 = vmatpush3.bf16.msra.mxu1 %v6067_v60 }
0x13fe   :  { %5801 = vmatprep.subr.bf16.mxu1 %v6201_v1 }
0x1400   :  { %5790 = vmatmul.mubr.msk.bf16.vlgmr.msra.gmra.mxu1 %vm88_vm1, %v6880_v43 }
0x1401   :  { %5802 = vmatpush3.bf16.msra.mxu1 %v6068_v14  ;;  %5805 = vmatprep.mubr.msk.bf16.mxu1 %vm6202_vm0, %v6201_v1 }
0x1402   :  { %5803 = vmatprep.subr.bf16.mxu1 %v6201_v1 }
0x1405   :  { %5804 = vmatpush3.bf16.msra.mxu1 %v6069_v5 }
0x1406   :  { %5817 = vmatprep.subr.bf16.mxu1 %v6201_v1 }
0x1408   :  { %5806 = vmatmul.mubr.msk.bf16.vlgmr.msra.gmra.mxu1 %vm88_vm1, %v6880_v43 }
0x1409   :  { %5818 = vmatpush3.bf16.msra.mxu1 %v6070_v36  ;;  %5821 = vmatprep.mubr.msk.bf16.mxu1 %vm6202_vm0, %v6201_v1 }
0x140a   :  { %5819 = vmatprep.subr.bf16.mxu1 %v6201_v1 }
0x140d   :  { %5820 = vmatpush3.bf16.msra.mxu1 %v6071_v9 }
0x140e   :  { %5831 = vmatprep.subr.bf16.mxu1 %v6201_v1 }
0x1410   :  { %5822 = vmatmul.mubr.msk.bf16.vlgmr.msra.gmra.mxu1 %vm88_vm1, %v6880_v43 }
0x1411   :  { %5833 = vmatprep.mubr.msk.bf16.mxu1 %vm6202_vm0, %v6201_v1 }
0x1498   :  { %v2551_v57 = vpop.f32.mrf.mxu1  ;;  %v2815_v31 = vpop.f32.mrf.mxu0 }
0x1499   :  { %v2816_v2 = vadd.f32 %v5111_v16, %v2815_v31  ;;  %v2552_v53 = vadd.f32 %v5075_v15, %v2551_v57 }
0x149a   :  { %v5735_v11 = vpop.f32.mrf.mxu1  ;;  %v5767_v12 = vpop.f32.mrf.mxu0 }
0x149b   :  { %v3398_v35 = vpack.c.bf16 %v2816_v2, %v2816_v2  ;;  %v3286_v10 = vpack.c.bf16 %v2552_v53, %v2552_v53  ;;  %v5120_v11 = vld [vmem:[%s7401_s6 + $0x15] ss:$0 sm:$0xff] }
0x149c   :  { %v2554_v61 = vpop.f32.mrf.mxu1  ;;  %v2818_v17 = vpop.f32.mrf.mxu0 }
0x149d   :  { %v7010_v18 = vadd.f32 %v5075_v15, %v2554_v61  ;;  %v7012_v32 = vadd.f32 %v5111_v16, %v2818_v17  ;;  %v3404_v52 = vsel %vm953_vm3, %v3398_v35, 0 }
0x149e   :  { %v5736_v20 = vpop.f32.mrf.mxu1  ;;  %v5768_v21 = vpop.f32.mrf.mxu0 }
0x149f   :  { %v7081_v20 = vld [vmem:[%s7401_s6 + $0x12] ss:$0 sm:$0xff] }
0x14a0   :  { %v2617_v22 = vpop.f32.mrf.mxu1  ;;  %v7017_v50 = vpop.f32.mrf.mxu0 }
0x14a1   :  { %v2618_v27 = vadd.f32 %v5084_v41, %v2617_v22 }
0x14a2   :  { %v5743_v54 = vpop.f32.mrf.mxu1  ;;  %v5783_v23 = vpop.f32.mrf.mxu0 }
0x14a3   :  { %v3287_v37 = vpack.c.bf16 %v2618_v27, %v2618_v27  ;;  %v7091_v23 = vld [vmem:[%s7401_s6 + $0xf] ss:$0 sm:$0xff] }
0x14a4   :  { %v2620_v24 = vpop.f32.mrf.mxu1  ;;  %v2950_v63 = vpop.f32.mrf.mxu0 }
0x14a5   :  { %v3293_v28 = vsel %vm953_vm3, %v3287_v37, 0  ;;  %v7025_v29 = vadd.f32 %v5084_v41, %v2620_v24  ;;  %v7028_v49 = vadd.f32 %v7022_v42, %v2950_v63 }
0x14a6   :  { %v5744_v6 = vpop.f32.mrf.mxu1  ;;  %v5784_v8 = vpop.f32.mrf.mxu0  ;;  %5826 = vmatpush3.bf16.xpose.msra.mxu0 %v3293_v28 }
0x14a7   :  { %5837 = vmatprep.subr.bf16.mxu0 %v6201_v1  ;;  %v7101_v6 = vld [vmem:[%s7401_s6 + $0x17] ss:$0 sm:$0xff] }
0x14a8   :  { %v2683_v33 = vpop.f32.mrf.mxu1  ;;  %v7034_v34 = vpop.f32.mrf.mxu0 }
0x14a9   :  { %v2684_v4 = vadd.f32 %v5093_v58, %v2683_v33 }
0x14aa   :  { %v5751_v25 = vpop.f32.mrf.mxu1  ;;  %v5799_v38 = vpop.f32.mrf.mxu0 }
0x14ab   :  { %v3288_v39 = vpack.c.bf16 %v2684_v4, %v2684_v4 }
0x14ac   :  { %v2686_v47 = vpop.f32.mrf.mxu1  ;;  %v3082_v40 = vpop.f32.mrf.mxu0 }
0x14ad   :  { %v3352_v43 = vsel %vm1016_vm2, %v3288_v39, 0  ;;  %v7043_v30 = vadd.f32 %v5093_v58, %v2686_v47  ;;  %v7046_v45 = vadd.f32 %v7039_v44, %v3082_v40  ;;  %5828 = vmatmul.mubr.msk.bf16.vlgmr.msra.gmra.mxu0 %vm953_vm3, %v3286_v10 }
0x14ae   :  { %v5752_v48 = vpop.f32.mrf.mxu1  ;;  %v5800_v55 = vpop.f32.mrf.mxu0  ;;  %5832 = vmatpush3.bf16.msra.mxu1 %v3352_v43  ;;  %5838 = vmatpush3.bf16.xpose.msra.mxu0 %v3404_v52 }
0x14af   :  { %5839 = vmatprep.mubr.msk.bf16.mxu0 %vm6202_vm0, %v6201_v1  ;;  %5843 = vmatprep.subr.bf16.mxu1 %v6201_v1 }
0x14b0   :  { %v2749_v26 = vpop.f32.mrf.mxu1  ;;  %v7055_v59 = vpop.f32.mrf.mxu0  ;;  %5849 = vmatprep.subr.bf16.mxu0 %v6201_v1 }
0x14b1   :  { %v2750_v62 = vadd.f32 %v5102_v56, %v2749_v26 }
0x14b2   :  { %v5759_v0 = vpop.f32.mrf.mxu1  ;;  %v5815_v7 = vpop.f32.mrf.mxu0 }
0x14b3   :  { %v3397_v13 = vpack.c.bf16 %v2750_v62, %v2750_v62 }
0x14b4   :  { %v2752_v46 = vpop.f32.mrf.mxu1  ;;  %v3214_v60 = vpop.f32.mrf.mxu0 }
0x14b5   :  { %v7063_v14 = vadd.f32 %v5102_v56, %v2752_v46  ;;  %v7066_v5 = vadd.f32 %v7061_v3, %v3214_v60  ;;  %5840 = vmatmul.mubr.msk.bf16.vlgmr.msra.gmra.mxu0 %vm953_vm3, %v3397_v13 }
0x14b6   :  { %v5760_v36 = vpop.f32.mrf.mxu1  ;;  %v5816_v9 = vpop.f32.mrf.mxu0  ;;  %5851 = vmatprep.mubr.msk.bf16.mxu0 %vm6202_vm0, %v6201_v1 }
0x14b8   :  { %v2881_v57 = vpop.f32.mrf.mxu1 }
0x14ba   :  { %v5775_v31 = vpop.f32.mrf.mxu1 }
0x14bc   :  { %v2884_v12 = vpop.f32.mrf.mxu1 }
0x14bd   :  { %v7074_v15 = vadd.f32 %v5120_v11, %v2884_v12  ;;  %v2882_v12 = vadd.f32 %v5120_v11, %v2881_v57 }
0x14be   :  { %v5776_v16 = vpop.f32.mrf.mxu1 }
0x14c0   :  { %v7076_v61 = vpop.f32.mrf.mxu1 }
0x14c2   :  { %v5791_v17 = vpop.f32.mrf.mxu1 }
0x14c3   :  { %v3399_v17 = vpack.c.bf16 %v2882_v12, %v2882_v12 }
0x14c4   :  { %v3016_v21 = vpop.f32.mrf.mxu1 }
0x14c5   :  { %v7084_v41 = vadd.f32 %v7081_v20, %v3016_v21 }
0x14c6   :  { %v5792_v22 = vpop.f32.mrf.mxu1 }
0x14c8   :  { %v7086_v27 = vpop.f32.mrf.mxu1 }
0x14ca   :  { %v5807_v54 = vpop.f32.mrf.mxu1 }
0x14cb   :  { %v3463_v54 = vsel %vm1016_vm2, %v3399_v17, 0 }
0x14cc   :  { %v3148_v37 = vpop.f32.mrf.mxu1 }
0x14cd   :  { %v7094_v24 = vadd.f32 %v7091_v23, %v3148_v37 }
0x14ce   :  { %v5808_v63 = vpop.f32.mrf.mxu1 }
0x14cf   :  { %v5181_v63 = vld [vmem:[%s7402_s7 + $0x10] sm:$0xf] }
0x14d0   :  { %v7096_v2 = vpop.f32.mrf.mxu1 }
0x14d2   :  { %v5823_v28 = vpop.f32.mrf.mxu1 }
0x14d3   :  { %v7119_v28 = vsel %vm1016_vm2, %v5181_v63, 0 }
0x14d4   :  { %v3280_v8 = vpop.f32.mrf.mxu1 }
0x14d5   :  { %v7104_v58 = vadd.f32 %v7101_v6, %v3280_v8  ;;  %v5184_v8 = vld [vmem:[%s7402_s7 + $0x14] sm:$0xf] }
0x14d6   :  { %v5824_v53 = vpop.f32.mrf.mxu1 }
0x14d7   :  { %v7130_v53 = vsel %vm1016_vm2, %v5184_v8, 0 }
0x14d8   :  { %5850 = vmatpush3.bf16.msra.mxu0 %v7130_v53 }
0x14d9   :  { %5861 = vmatprep.subr.bf16.mxu0 %v6201_v1 }
0x156d   :  { %v3329_v33 = vpop.f32.mrf.mxu0 }
0x156e   :  { %v3335_v35 = vmul.f32 0.35355338, %v3329_v33  ;;  %v3080_v33 = vadd.f32 %v7039_v44, %v7034_v34 }
0x156f   :  { %v5829_v4 = vpop.f32.mrf.mxu0 }
0x1570   :  { %v3336_v25 = vsel %vm953_vm3, %v3335_v35, -inf }
0x1571   :  { %3337 = vmax.xlane.f32.xlu0 %v3336_v25  ;;  %v3332_v38 = vpop.f32.mrf.mxu0 }
0x1573   :  { %v5830_v10 = vpop.f32.mrf.mxu0 }
0x1575   :  { %v3440_v39 = vpop.f32.mrf.mxu0 }
0x1576   :  { %v3446_v47 = vmul.f32 0.35355338, %v3440_v39  ;;  %v3014_v39 = vadd.f32 %v7081_v20, %v7076_v61  ;;  %v2948_v20 = vadd.f32 %v7022_v42, %v7017_v50 }
0x1577   :  { %v5841_v40 = vpop.f32.mrf.mxu0 }
0x1578   :  { %v3447_v52 = vsel %vm953_vm3, %v3446_v47, -inf  ;;  %v3601_v34 = vpack.c.bf16 %v3014_v39, %v3014_v39  ;;  %v3146_v39 = vadd.f32 %v7091_v23, %v7086_v27 }
0x1579   :  { %3448 = vmax.xlane.f32.xlu1 %v3447_v52  ;;  %v3443_v43 = vpop.f32.mrf.mxu0 }
0x157b   :  { %v5842_v48 = vpop.f32.mrf.mxu0 }
0x157c   :  { %v3607_v48 = vsel %vm953_vm3, %v3601_v34, 0 }
0x15fa   :  { %v3338_v55 = vpop.xlane.xlu0 %3337 }
0x15fb   :  { %v3339_v56 = vsub.f32 %v3335_v35, %v3338_v55  ;;  %v3602_v35 = vpack.c.bf16 %v3080_v33, %v3080_v33  ;;  %v3212_v33 = vadd.f32 %v7061_v3, %v7055_v59  ;;  %v3278_v59 = vadd.f32 %v7101_v6, %v7096_v2 }
0x15fd   :  { %v3340_v26 = vmul.f32 1.442695, %v3339_v56  ;;  %v3666_v10 = vsel %vm1016_vm2, %v3602_v35, 0  ;;  %v3600_v56 = vpack.c.bf16 %v2948_v20, %v2948_v20  ;;  %v3760_v3 = vpack.c.bf16 %v3278_v59, %v3278_v59 }
0x15ff   :  { %6124 = vpow2.f32 %v3340_v26 }
0x1602   :  { %v3449_v62 = vpop.xlane.xlu1 %3448 }
0x1603   :  { %v3450_v0 = vsub.f32 %v3446_v47, %v3449_v62 }
0x1605   :  { %v3451_v7 = vmul.f32 1.442695, %v3450_v0 }
0x1607   :  { %6126 = vpow2.f32 %v3451_v7 }
0x160c   :  { %v6125_v13 = vpop.eup %6124 }
0x160d   :  { %v3342_v46 = vsel %vm953_vm3, %v6125_v13, 0.0 }
0x160e   :  { %3343 = vadd.xlane.f32.xlu0 %v3342_v46 }
0x1614   :  { %v6127_v60 = vpop.eup %6126 }
0x1615   :  { %v3453_v36 = vsel %vm953_vm3, %v6127_v60, 0.0 }
0x1616   :  { %3454 = vadd.xlane.f32.xlu1 %v3453_v36 }
0x1697   :  { %v3344_v9 = vpop.xlane.xlu0 %3343 }
0x1698   :  { %6128 = vrcp.f32 %v3344_v9 }
0x169f   :  { %v3455_v31 = vpop.xlane.xlu1 %3454 }
0x16a0   :  { %6130 = vrcp.f32 %v3455_v31 }
0x16a5   :  { %v6129_v16 = vpop.eup %6128 }
0x16a6   :  { %v3346_v21 = vmul.f32 %v6129_v16, %v6125_v13 }
0x16a8   :  { %v3347_v22 = vpack.c.bf16 %v3346_v21, %v3346_v21 }
0x16aa   :  { %5834 = vmatmul.mubr.msk.bf16.vlgmr.msra.gmra.mxu1 %vm953_vm3, %v3347_v22 }
0x16ab   :  { %5844 = vmatpush3.bf16.msra.mxu1 %v3463_v54  ;;  %5845 = vmatprep.mubr.msk.bf16.mxu1 %vm6202_vm0, %v6201_v1 }
0x16ac   :  { %5855 = vmatprep.subr.bf16.mxu1 %v6201_v1 }
0x16ad   :  { %v6131_v37 = vpop.eup %6130 }
0x16ae   :  { %v3457_v57 = vmul.f32 %v6131_v37, %v6127_v60 }
0x16b0   :  { %v3458_v11 = vpack.c.bf16 %v3457_v57, %v3457_v57  ;;  %v5189_v57 = vld [vmem:[%s7402_s7 + $0x18] sm:$0xf] }
0x16b2   :  { %5846 = vmatmul.mubr.msk.bf16.vlgmr.msra.gmra.mxu1 %vm953_vm3, %v3458_v11  ;;  %v7161_v11 = vsel %vm1016_vm2, %v5189_v57, 0 }
0x16b3   :  { %5856 = vmatpush3.bf16.msra.mxu1 %v7119_v28  ;;  %5857 = vmatprep.mubr.msk.bf16.mxu1 %vm6202_vm0, %v6201_v1 }
0x16b4   :  { %5867 = vmatprep.subr.bf16.mxu1 %v6201_v1 }
0x176a   :  { %v3388_v4 = vpop.f32.mrf.mxu1 }
0x176b   :  { %v3394_v25 = vpack.c.bf16 %v3388_v4, %v3388_v4  ;;  %v3759_v4 = vpack.c.bf16 %v3212_v33, %v3212_v33 }
0x176c   :  { %v5835_v38 = vpop.f32.mrf.mxu1 }
0x176d   :  { %5858 = vmatmul.mubr.msk.bf16.vlgmr.msra.gmra.mxu1 %vm953_vm3, %v3394_v25 }
0x176e   :  { %5868 = vmatpush3.bf16.msra.mxu1 %v3666_v10  ;;  %v3391_v47 = vpop.f32.mrf.mxu1  ;;  %5869 = vmatprep.mubr.msk.bf16.mxu1 %vm6202_vm0, %v6201_v1  ;;  %v3765_v10 = vsel %vm953_vm3, %v3759_v4, 0 }
0x176f   :  { %5879 = vmatprep.subr.bf16.mxu1 %v6201_v1  ;;  %v3758_v47 = vpack.c.bf16 %v3146_v39, %v3146_v39 }
0x1770   :  { %v5836_v40 = vpop.f32.mrf.mxu1 }
0x1772   :  { %v3499_v44 = vpop.f32.mrf.mxu1 }
0x1773   :  { %v3505_v52 = vpack.c.bf16 %v3499_v44, %v3499_v44 }
0x1774   :  { %v5847_v43 = vpop.f32.mrf.mxu1 }
0x1775   :  { %5852 = vmatmul.mubr.msk.bf16.vlgmr.msra.gmra.mxu0 %vm953_vm3, %v3505_v52  ;;  %v3824_v52 = vsel %vm1016_vm2, %v3760_v3, 0 }
0x1776   :  { %5862 = vmatpush3.bf16.xpose.msra.mxu0 %v3607_v48  ;;  %v3502_v61 = vpop.f32.mrf.mxu1  ;;  %5863 = vmatprep.mubr.msk.bf16.mxu0 %vm6202_vm0, %v6201_v1 }
0x1777   :  { %5873 = vmatprep.subr.bf16.mxu0 %v6201_v1 }
0x1778   :  { %v5848_v55 = vpop.f32.mrf.mxu1 }
0x177d   :  { %5864 = vmatmul.mubr.msk.bf16.vlgmr.msra.gmra.mxu0 %vm953_vm3, %v3600_v56 }
0x177e   :  { %5875 = vmatprep.mubr.msk.bf16.mxu0 %vm6202_vm0, %v6201_v1  ;;  %5874 = vmatpush3.bf16.msra.mxu0 %v7161_v11 }
0x177f   :  { %5885 = vmatprep.subr.bf16.mxu0 %v6201_v1 }
0x182d   :  { %v3594_v26 = vpop.f32.mrf.mxu1 }
0x182f   :  { %v5859_v62 = vpop.f32.mrf.mxu1 }
0x1831   :  { %v3597_v0 = vpop.f32.mrf.mxu1 }
0x1833   :  { %v5860_v7 = vpop.f32.mrf.mxu1 }
0x1835   :  { %v3548_v13 = vpop.f32.mrf.mxu0 }
0x1836   :  { %v7153_v46 = vadd.f32 %v3594_v26, %v3548_v13 }
0x1837   :  { %v5853_v60 = vpop.f32.mrf.mxu0 }
0x1839   :  { %v3551_v36 = vpop.f32.mrf.mxu0 }
0x183b   :  { %v5854_v9 = vpop.f32.mrf.mxu0 }
0x183d   :  { %v3643_v50 = vpop.f32.mrf.mxu0 }
0x183e   :  { %v3649_v42 = vmul.f32 0.35355338, %v3643_v50  ;;  %v5193_v50 = vld [vmem:[%s7402_s7 + $0x1c] sm:$0xf] }
0x183f   :  { %v5865_v31 = vpop.f32.mrf.mxu0 }
0x1840   :  { %v3650_v12 = vsel %vm953_vm3, %v3649_v42, -inf }
0x1841   :  { %3651 = vmax.xlane.f32.xlu0 %v3650_v12  ;;  %v3646_v16 = vpop.f32.mrf.mxu0 }
0x1843   :  { %v5866_v17 = vpop.f32.mrf.mxu0 }
0x18ca   :  { %v3652_v21 = vpop.xlane.xlu0 %3651 }
0x18cb   :  { %v3653_v22 = vsub.f32 %v3649_v42, %v3652_v21  ;;  %v7193_v42 = vsel %vm1016_vm2, %v5193_v50, 0 }
0x18cd   :  { %v3654_v54 = vmul.f32 1.442695, %v3653_v22  ;;  %v4033_v22 = vpack.c.bf16 %v7012_v32, %v7012_v32 }
0x18cf   :  { %6132 = vpow2.f32 %v3654_v54  ;;  %v3923_v54 = vpack.c.bf16 %v7010_v18, %v7010_v18  ;;  %v3925_v18 = vpack.c.bf16 %v7043_v30, %v7043_v30 }
0x18dc   :  { %v6133_v37 = vpop.eup %6132 }
0x18dd   :  { %v3656_v63 = vsel %vm953_vm3, %v6133_v37, 0.0 }
0x18de   :  { %3657 = vadd.xlane.f32.xlu1 %v3656_v63 }
0x1967   :  { %v3658_v8 = vpop.xlane.xlu1 %3657 }
0x1968   :  { %6134 = vrcp.f32 %v3658_v8  ;;  %v3989_v8 = vsel %vm1016_vm2, %v3925_v18, 0 }
0x1975   :  { %v6135_v35 = vpop.eup %6134 }
0x1976   :  { %v3660_v25 = vmul.f32 %v6135_v35, %v6133_v37  ;;  %v4032_v37 = vpack.c.bf16 %v7063_v14, %v7063_v14 }
0x1978   :  { %v3661_v38 = vpack.c.bf16 %v3660_v25, %v3660_v25 }
0x197a   :  { %5870 = vmatmul.mubr.msk.bf16.vlgmr.msra.gmra.mxu1 %vm953_vm3, %v3661_v38 }
0x197b   :  { %5880 = vmatpush3.bf16.xpose.msra.mxu1 %v3765_v10  ;;  %5881 = vmatprep.mubr.msk.bf16.mxu1 %vm6202_vm0, %v6201_v1 }
0x197c   :  { %5891 = vmatprep.subr.bf16.mxu1 %v6201_v1 }
0x1982   :  { %5882 = vmatmul.mubr.msk.bf16.vlgmr.msra.gmra.mxu1 %vm953_vm3, %v3758_v47 }
0x1983   :  { %5893 = vmatprep.mubr.msk.bf16.mxu1 %vm6202_vm0, %v6201_v1  ;;  %5892 = vmatpush3.bf16.msra.mxu1 %v7193_v42 }
0x1984   :  { %5903 = vmatprep.subr.bf16.mxu1 %v6201_v1 }
0x1a3a   :  { %v3702_v40 = vpop.f32.mrf.mxu1 }
0x1a3b   :  { %v3708_v34 = vpack.c.bf16 %v3702_v40, %v3702_v40 }
0x1a3c   :  { %v5871_v44 = vpop.f32.mrf.mxu1 }
0x1a3d   :  { %5876 = vmatmul.mubr.msk.bf16.vlgmr.msra.gmra.mxu0 %vm953_vm3, %v3708_v34 }
0x1a3e   :  { %5886 = vmatpush3.bf16.msra.mxu0 %v3824_v52  ;;  %v3705_v27 = vpop.f32.mrf.mxu1  ;;  %5887 = vmatprep.mubr.msk.bf16.mxu0 %vm6202_vm0, %v6201_v1 }
0x1a3f   :  { %5897 = vmatprep.subr.bf16.mxu0 %v6201_v1 }
0x1a40   :  { %v5872_v23 = vpop.f32.mrf.mxu1 }
0x1a42   :  { %v3801_v43 = vpop.f32.mrf.mxu1 }
0x1a43   :  { %v3807_v48 = vmul.f32 0.35355338, %v3801_v43 }
0x1a44   :  { %v5883_v61 = vpop.f32.mrf.mxu1 }
0x1a45   :  { %v3808_v2 = vsel %vm953_vm3, %v3807_v48, -inf }
0x1a46   :  { %3809 = vmax.xlane.f32.xlu0 %v3808_v2  ;;  %v3804_v6 = vpop.f32.mrf.mxu1 }
0x1a48   :  { %v5884_v20 = vpop.f32.mrf.mxu1 }
0x1acf   :  { %v3810_v55 = vpop.xlane.xlu0 %3809 }
0x1ad0   :  { %v3811_v56 = vsub.f32 %v3807_v48, %v3810_v55 }
0x1ad2   :  { %v3812_v26 = vmul.f32 1.442695, %v3811_v56 }
0x1ad4   :  { %6136 = vpow2.f32 %v3812_v26 }
0x1ae1   :  { %v6137_v62 = vpop.eup %6136 }
0x1ae2   :  { %v3814_v0 = vsel %vm953_vm3, %v6137_v62, 0.0 }
0x1ae3   :  { %3815 = vadd.xlane.f32.xlu1 %v3814_v0 }
0x1afd   :  { %v3751_v7 = vpop.f32.mrf.mxu0 }
0x1afe   :  { %v7187_v13 = vadd.f32 %v3751_v7, %v7153_v46  ;;  %v3924_v46 = vpack.c.bf16 %v7025_v29, %v7025_v29  ;;  %v4039_v29 = vsel %vm953_vm3, %v4033_v22, 0 }
0x1aff   :  { %v5877_v60 = vpop.f32.mrf.mxu0 }
0x1b00   :  { %v3930_v21 = vsel %vm953_vm3, %v3924_v46, 0 }
0x1b01   :  { %v3754_v36 = vpop.f32.mrf.mxu0 }
0x1b02   :  { %v4034_v36 = vpack.c.bf16 %v7074_v15, %v7074_v15  ;;  %v4229_v15 = vpack.c.bf16 %v7046_v45, %v7046_v45 }
0x1b03   :  { %v5878_v9 = vpop.f32.mrf.mxu0 }
0x1b04   :  { %v4293_v22 = vsel %vm1016_vm2, %v4229_v15, 0 }
0x1b6c   :  { %v3816_v31 = vpop.xlane.xlu1 %3815 }
0x1b6d   :  { %6138 = vrcp.f32 %v3816_v31  ;;  %v4098_v31 = vsel %vm1016_vm2, %v4034_v36, 0 }
0x1b7a   :  { %v6139_v12 = vpop.eup %6138 }
0x1b7b   :  { %v3818_v16 = vmul.f32 %v6139_v12, %v6137_v62 }
0x1b7d   :  { %v3819_v17 = vpack.c.bf16 %v3818_v16, %v3818_v16 }
0x1b7f   :  { %5888 = vmatmul.mubr.msk.bf16.vlgmr.msra.gmra.mxu0 %vm953_vm3, %v3819_v17 }
0x1b80   :  { %5898 = vmatpush3.bf16.xpose.msra.mxu0 %v3930_v21  ;;  %5899 = vmatprep.mubr.msk.bf16.mxu0 %vm6202_vm0, %v6201_v1 }
0x1b81   :  { %5909 = vmatprep.subr.bf16.mxu0 %v6201_v1 }
0x1b87   :  { %5900 = vmatmul.mubr.msk.bf16.vlgmr.msra.gmra.mxu0 %vm953_vm3, %v3923_v54 }
0x1b88   :  { %5910 = vmatpush3.bf16.xpose.msra.mxu0 %v4039_v29  ;;  %5911 = vmatprep.mubr.msk.bf16.mxu0 %vm6202_vm0, %v6201_v1  ;;  %v4228_v29 = vpack.c.bf16 %v7084_v41, %v7084_v41 }
0x1b89   :  { %5921 = vmatprep.subr.bf16.mxu0 %v6201_v1 }
0x1b8f   :  { %5912 = vmatmul.mubr.msk.bf16.vlgmr.msra.gmra.mxu0 %vm953_vm3, %v4032_v37 }
0x1b90   :  { %5922 = vmatpush3.bf16.msra.mxu0 %v7130_v53  ;;  %5923 = vmatprep.mubr.msk.bf16.mxu0 %vm6202_vm0, %v6201_v1 }
0x1b91   :  { %5933 = vmatprep.subr.bf16.mxu0 %v6201_v1 }
0x1c3f   :  { %v3860_v32 = vpop.f32.mrf.mxu0 }
0x1c40   :  { %v3866_v63 = vpack.c.bf16 %v3860_v32, %v3860_v32  ;;  %v4234_v32 = vsel %vm953_vm3, %v4228_v29, 0 }
0x1c41   :  { %v5889_v57 = vpop.f32.mrf.mxu0 }
0x1c42   :  { %5894 = vmatmul.mubr.msk.bf16.vlgmr.msra.gmra.mxu1 %vm953_vm3, %v3866_v63 }
0x1c43   :  { %5904 = vmatpush3.bf16.msra.mxu1 %v3989_v8  ;;  %v3863_v14 = vpop.f32.mrf.mxu0  ;;  %5905 = vmatprep.mubr.msk.bf16.mxu1 %vm6202_vm0, %v6201_v1  ;;  %v4227_v8 = vpack.c.bf16 %v7028_v49, %v7028_v49 }
0x1c44   :  { %5915 = vmatprep.subr.bf16.mxu1 %v6201_v1 }
0x1c45   :  { %v5890_v53 = vpop.f32.mrf.mxu0 }
0x1c47   :  { %v3966_v33 = vpop.f32.mrf.mxu0 }
0x1c48   :  { %v3972_v35 = vmul.f32 0.35355338, %v3966_v33 }
0x1c49   :  { %v5901_v4 = vpop.f32.mrf.mxu0 }
0x1c4a   :  { %v3973_v30 = vsel %vm953_vm3, %v3972_v35, -inf }
0x1c4b   :  { %3974 = vmax.xlane.f32.xlu0 %v3973_v30  ;;  %v3969_v25 = vpop.f32.mrf.mxu0 }
0x1c4d   :  { %v5902_v38 = vpop.f32.mrf.mxu0 }
0x1c4f   :  { %v4075_v10 = vpop.f32.mrf.mxu0 }
0x1c50   :  { %v4081_v39 = vmul.f32 0.35355338, %v4075_v10 }
0x1c51   :  { %v5913_v47 = vpop.f32.mrf.mxu0 }
0x1c52   :  { %v4082_v59 = vsel %vm953_vm3, %v4081_v39, -inf }
0x1c53   :  { %4083 = vmax.xlane.f32.xlu1 %v4082_v59  ;;  %v4078_v3 = vpop.f32.mrf.mxu0 }
0x1c55   :  { %v5914_v40 = vpop.f32.mrf.mxu0 }
0x1cd4   :  { %v3975_v34 = vpop.xlane.xlu0 %3974 }
0x1cd5   :  { %v3976_v44 = vsub.f32 %v3972_v35, %v3975_v34 }
0x1cd7   :  { %v3977_v52 = vmul.f32 1.442695, %v3976_v44 }
0x1cd9   :  { %6140 = vpow2.f32 %v3977_v52 }
0x1cdc   :  { %v4084_v27 = vpop.xlane.xlu1 %4083 }
0x1cdd   :  { %v4085_v23 = vsub.f32 %v4081_v39, %v4084_v27 }
0x1cdf   :  { %v4086_v43 = vmul.f32 1.442695, %v4085_v23 }
0x1ce1   :  { %6142 = vpow2.f32 %v4086_v43  ;;  %v4381_v43 = vpack.c.bf16 %v7066_v5, %v7066_v5  ;;  %v4382_v5 = vpack.c.bf16 %v7104_v58, %v7104_v58 }
0x1ce6   :  { %v6141_v48 = vpop.eup %6140 }
0x1ce7   :  { %v3979_v61 = vsel %vm953_vm3, %v6141_v48, 0.0 }
0x1ce8   :  { %3980 = vadd.xlane.f32.xlu0 %v3979_v61 }
0x1cee   :  { %v6143_v2 = vpop.eup %6142 }
0x1cef   :  { %v4088_v6 = vsel %vm953_vm3, %v6143_v2, 0.0 }
0x1cf0   :  { %4089 = vadd.xlane.f32.xlu1 %v4088_v6  ;;  %v4380_v6 = vpack.c.bf16 %v7094_v24, %v7094_v24  ;;  %v5195_v24 = vld [vmem:[%s7403_s8 + $0x6] ss:$0 sm:$0xff] }
0x1d02   :  { %v3909_v20 = vpop.f32.mrf.mxu1 }
0x1d03   :  { %v7232_v55 = vadd.f32 %v3909_v20, %v7187_v13 }
0x1d04   :  { %v5895_v56 = vpop.f32.mrf.mxu1 }
0x1d05   :  { %v3922_v58 = vadd.f32 %v5195_v24, %v7232_v55 }
0x1d06   :  { %v3912_v26 = vpop.f32.mrf.mxu1 }
0x1d08   :  { %v5896_v62 = vpop.f32.mrf.mxu1 }
0x1d09   :  { %v4446_v62 = vsel %vm1016_vm2, %v4382_v5, 0 }
0x1d71   :  { %v3981_v0 = vpop.xlane.xlu0 %3980 }
0x1d72   :  { %6144 = vrcp.f32 %v3981_v0 }
0x1d79   :  { %v4090_v7 = vpop.xlane.xlu1 %4089 }
0x1d7a   :  { %6146 = vrcp.f32 %v4090_v7 }
0x1d7f   :  { %v6145_v60 = vpop.eup %6144 }
0x1d80   :  { %v3983_v9 = vmul.f32 %v6145_v60, %v6141_v48 }
0x1d82   :  { %v3984_v50 = vpack.c.bf16 %v3983_v9, %v3983_v9  ;;  %v7297_v9 = vadd.f32 %v3922_v58, %v6868_v19 }
0x1d84   :  { %5906 = vmatmul.mubr.msk.bf16.vlgmr.msra.gmra.mxu1 %vm953_vm3, %v3984_v50 }
0x1d85   :  { %5916 = vmatpush3.bf16.msra.mxu1 %v4098_v31  ;;  %5917 = vmatprep.mubr.msk.bf16.mxu1 %vm6202_vm0, %v6201_v1 }
0x1d86   :  { %5927 = vmatprep.subr.bf16.mxu1 %v6201_v1 }
0x1d87   :  { %v6147_v13 = vpop.eup %6146 }
0x1d88   :  { %v4092_v12 = vmul.f32 %v6147_v13, %v6143_v2  ;;  %v4387_v2 = vsel %vm953_vm3, %v4381_v43, 0 }
0x1d8a   :  { %v4093_v46 = vpack.c.bf16 %v4092_v12, %v4092_v12  ;;  %v4536_v12 = vsel %vm88_vm1, %v7297_v9, 0.0 }
0x1d8c   :  { %5918 = vmatmul.mubr.msk.bf16.vlgmr.msra.gmra.mxu1 %vm953_vm3, %v4093_v46  ;;  %v4544_v46 = vmul.f32 %v7297_v9, %v7297_v9 }
0x1d8d   :  { %5928 = vmatpush3.bf16.msra.mxu1 %v7119_v28  ;;  %5929 = vmatprep.mubr.msk.bf16.mxu1 %vm6202_vm0, %v6201_v1 }
0x1d8e   :  { %5939 = vmatprep.subr.bf16.mxu1 %v6201_v1  ;;  %v4546_v55 = vsel %vm88_vm1, %v4544_v46, 0.0 }
0x1e44   :  { %v4025_v16 = vpop.f32.mrf.mxu1 }
0x1e45   :  { %v4031_v17 = vpack.c.bf16 %v4025_v16, %v4025_v16 }
0x1e46   :  { %v5907_v21 = vpop.f32.mrf.mxu1 }
0x1e47   :  { %5930 = vmatmul.mubr.msk.bf16.vlgmr.msra.gmra.mxu1 %vm953_vm3, %v4031_v17 }
0x1e48   :  { %5940 = vmatpush3.bf16.msra.mxu1 %v4293_v22  ;;  %v4028_v54 = vpop.f32.mrf.mxu1  ;;  %5941 = vmatprep.mubr.msk.bf16.mxu1 %vm6202_vm0, %v6201_v1 }
0x1e49   :  { %5951 = vmatprep.subr.bf16.mxu1 %v6201_v1 }
0x1e4a   :  { %v5908_v28 = vpop.f32.mrf.mxu1 }
0x1e4c   :  { %v4134_v37 = vpop.f32.mrf.mxu1 }
0x1e4d   :  { %v4140_v45 = vpack.c.bf16 %v4134_v37, %v4134_v37 }
0x1e4e   :  { %v5919_v18 = vpop.f32.mrf.mxu1 }
0x1e4f   :  { %5924 = vmatmul.mubr.msk.bf16.vlgmr.msra.gmra.mxu0 %vm953_vm3, %v4140_v45 }
0x1e50   :  { %5934 = vmatpush3.bf16.xpose.msra.mxu0 %v4234_v32  ;;  %v4137_v63 = vpop.f32.mrf.mxu1  ;;  %5935 = vmatprep.mubr.msk.bf16.mxu0 %vm6202_vm0, %v6201_v1 }
0x1e51   :  { %5945 = vmatprep.subr.bf16.mxu0 %v6201_v1 }
0x1e52   :  { %v5920_v57 = vpop.f32.mrf.mxu1 }
0x1e57   :  { %5936 = vmatmul.mubr.msk.bf16.vlgmr.msra.gmra.mxu0 %vm953_vm3, %v4227_v8 }
0x1e58   :  { %5946 = vmatpush3.bf16.msra.mxu0 %v7161_v11  ;;  %5947 = vmatprep.mubr.msk.bf16.mxu0 %vm6202_vm0, %v6201_v1 }
0x1e59   :  { %5957 = vmatprep.subr.bf16.mxu0 %v6201_v1 }
0x1f07   :  { %v4221_v41 = vpop.f32.mrf.mxu1 }
0x1f09   :  { %v5931_v14 = vpop.f32.mrf.mxu1 }
0x1f0b   :  { %v4224_v53 = vpop.f32.mrf.mxu1 }
0x1f0d   :  { %v5932_v33 = vpop.f32.mrf.mxu1 }
0x1f0f   :  { %v4178_v35 = vpop.f32.mrf.mxu0 }
0x1f10   :  { %v7267_v4 = vadd.f32 %v4221_v41, %v4178_v35 }
0x1f11   :  { %v5925_v30 = vpop.f32.mrf.mxu0 }
0x1f13   :  { %v4181_v25 = vpop.f32.mrf.mxu0 }
0x1f15   :  { %v5926_v38 = vpop.f32.mrf.mxu0 }
0x1f17   :  { %v4270_v49 = vpop.f32.mrf.mxu0 }
0x1f18   :  { %v4276_v10 = vmul.f32 0.35355338, %v4270_v49 }
0x1f19   :  { %v5937_v39 = vpop.f32.mrf.mxu0 }
0x1f1a   :  { %v4277_v11 = vsel %vm953_vm3, %v4276_v10, -inf }
0x1f1b   :  { %4278 = vmax.xlane.f32.xlu0 %v4277_v11  ;;  %v4273_v47 = vpop.f32.mrf.mxu0 }
0x1f1c   :  { %v6072_v47 = vld [vmem:[%s7404_s9 + $0x18] sm:$0xff]  }
0x1f1d   :  { %v5938_v59 = vpop.f32.mrf.mxu0 }
0x1f1e   :  { %v6073_v59 = vld [vmem:[%s7404_s9 + $0x10] sm:$0xff]   ;;  %s6203_s9 = smov [#allocation5]  }
0x1f1f   :  { %s4900_s3 = sshll.u32 %s6203_s9, 4  ;;  %s4901_s3 = int_to_ptr.vmem [resolvable:$true] %s4900_s3 }
0x1f20   :  { %p6181_p6 = scmp.lt.s32.totalorder %s4901_s3, %s4901_s3 }
0x1fa4   :  { %v4279_v3 = vpop.xlane.xlu0 %4278 }
0x1fa5   :  { %v4280_v40 = vsub.f32 %v4276_v10, %v4279_v3  ;;  %v6075_v3 = vld [vmem:[%s7406_s11 + $0x70] sm:$0xff]  }
0x1fa7   :  { %v4281_v34 = vmul.f32 1.442695, %v4280_v40  ;;  %v6076_v40 = vld [vmem:[%s7406_s11 + $0x68] sm:$0xff]  }
0x1fa9   :  { %6148 = vpow2.f32 %v4281_v34  ;;  %v6077_v34 = vld [vmem:[%s7406_s11 + $0x60] sm:$0xff]  }
0x1fb6   :  { %v6149_v44 = vpop.eup %6148 }
0x1fb7   :  { %v4283_v52 = vsel %vm953_vm3, %v6149_v44, 0.0 }
0x1fb8   :  { %4284 = vadd.xlane.f32.xlu1 %v4283_v52 }
0x2041   :  { %v4285_v27 = vpop.xlane.xlu1 %4284 }
0x2042   :  { %6150 = vrcp.f32 %v4285_v27 }
0x204f   :  { %v6151_v23 = vpop.eup %6150 }
0x2050   :  { %v4287_v48 = vmul.f32 %v6151_v23, %v6149_v44  ;;  %v6078_v44 = vld [vmem:[%s7406_s11 + $0x58] sm:$0xff]  }
0x2052   :  { %v4288_v61 = vpack.c.bf16 %v4287_v48, %v4287_v48 }
0x2054   :  { %5942 = vmatmul.mubr.msk.bf16.vlgmr.msra.gmra.mxu1 %vm953_vm3, %v4288_v61 }
0x2055   :  { %5952 = vmatpush3.bf16.xpose.msra.mxu1 %v4387_v2  ;;  %5953 = vmatprep.mubr.msk.bf16.mxu1 %vm6202_vm0, %v6201_v1 }
0x2056   :  { %5963 = vmatprep.subr.bf16.mxu1 %v6201_v1 }
0x205c   :  { %5954 = vmatmul.mubr.msk.bf16.vlgmr.msra.gmra.mxu1 %vm953_vm3, %v4380_v6 }
0x205d   :  { %5964 = vmatpush3.bf16.msra.mxu1 %v7193_v42  ;;  %5965 = vmatprep.mubr.msk.bf16.mxu1 %vm6202_vm0, %v6201_v1 }
0x205e   :  { %5977 = vmatprep.subr.bf16.mxu1 %v6201_v1 }
0x2114   :  { %v4329_v20 = vpop.f32.mrf.mxu1 }
0x2115   :  { %v4335_v56 = vpack.c.bf16 %v4329_v20, %v4329_v20 }
0x2116   :  { %v5943_v26 = vpop.f32.mrf.mxu1 }
0x2117   :  { %5948 = vmatmul.mubr.msk.bf16.vlgmr.msra.gmra.mxu0 %vm953_vm3, %v4335_v56 }
0x2118   :  { %5958 = vmatpush3.bf16.msra.mxu0 %v4446_v62  ;;  %v4332_v42 = vpop.f32.mrf.mxu1  ;;  %5959 = vmatprep.mubr.msk.bf16.mxu0 %vm6202_vm0, %v6201_v1 }
0x2119   :  { %5969 = vmatprep.subr.bf16.mxu0 %v6201_v1 }
0x211a   :  { %v5944_v0 = vpop.f32.mrf.mxu1 }
0x211c   :  { %v4423_v7 = vpop.f32.mrf.mxu1 }
0x211d   :  { %v4429_v60 = vmul.f32 0.35355338, %v4423_v7  ;;  %v5209_v7 = vld [vmem:[%s7403_s8 + $0x7] ss:$0 sm:$0xff] }
0x211e   :  { %v5955_v36 = vpop.f32.mrf.mxu1 }
0x211f   :  { %v4430_v50 = vsel %vm953_vm3, %v4429_v60, -inf }
0x2120   :  { %4431 = vmax.xlane.f32.xlu0 %v4430_v50  ;;  %v4426_v31 = vpop.f32.mrf.mxu1 }
0x2122   :  { %v5956_v13 = vpop.f32.mrf.mxu1 }
0x2123   :  { %v5211_v13 = vld [vmem:[%s7403_s8 + $0x8] ss:$0 sm:$0xff] }
0x2124   :  { %4537 = vadd.xlane.f32.xlu0 %v4536_v12 }
0x2128   :  { %4547 = vadd.xlane.f32.xlu0 %v4546_v55 }
0x21a9   :  { %v4432_v15 = vpop.xlane.xlu0 %4431 }
0x21aa   :  { %v4433_v16 = vsub.f32 %v4429_v60, %v4432_v15 }
0x21ac   :  { %v4434_v17 = vmul.f32 1.442695, %v4433_v16  ;;  %v6080_v16 = vld [vmem:[%s7406_s11 + $0x48] sm:$0xff]  }
0x21ad   :  { %v4538_v52 = vpop.xlane.xlu0 %4537 }
0x21ae   :  { %6152 = vpow2.f32 %v4434_v17  ;;  %v4542_v23 = vmul.f32 0.03125, %v4538_v52  ;;  %v6081_v17 = vld [vmem:[%s7406_s11 + $0x40] sm:$0xff]  }
0x21b0   :  { %v4556_v48 = vmul.f32 %v4542_v23, %v4542_v23  ;;  %v4554_v0 = vsub.f32 %v7297_v9, %v4542_v23  ;;  %v6079_v9 = vld [vmem:[%s7406_s11 + $0x50] sm:$0xff]  }
0x21b1   :  { %v4548_v27 = vpop.xlane.xlu0 %4547 }
0x21b2   :  { %v4552_v43 = vmul.f32 0.03125, %v4548_v27 }
0x21b4   :  { %v4558_v61 = vsub.f32 %v4552_v43, %v4556_v48 }
0x21b6   :  { %v4560_v6 = vadd.f32 1e-05, %v4558_v61 }
0x21bb   :  { %v6153_v19 = vpop.eup %6152 }
0x21bc   :  { %v4436_v21 = vsel %vm953_vm3, %v6153_v19, 0.0 }
0x21bd   :  { %4437 = vadd.xlane.f32.xlu1 %v4436_v21 }
0x21d7   :  { %v4373_v22 = vpop.f32.mrf.mxu0 }
0x21d8   :  { %v4379_v54 = vadd.f32 %v4373_v22, %v7267_v4 }
0x21d9   :  { %v5949_v28 = vpop.f32.mrf.mxu0 }
0x21db   :  { %v4376_v29 = vpop.f32.mrf.mxu0 }
0x21dd   :  { %v5950_v37 = vpop.f32.mrf.mxu0 }
0x2246   :  { %v4438_v45 = vpop.xlane.xlu1 %4437 }
0x2247   :  { %6154 = vrcp.f32 %v4438_v45 }
0x2248   :  { %6156 = vrsqrt.f32 %v4560_v6 }
0x2254   :  { %v6155_v18 = vpop.eup %6154 }
0x2255   :  { %v4440_v32 = vmul.f32 %v6155_v18, %v6153_v19  ;;  %v6157_v42 = vpop.eup %6156  ;;  %v5217_v19 = vld [vmem:[%s7405_s10 + $0x1] ss:$0 sm:$0xff] }
0x2256   :  { %v4564_v58 = vmul.f32 %v6157_v42, %v4554_v0  ;;  %v5250_v0 = vld [vmem:[%s7403_s8 + $0xb] ss:$0 sm:$0xff] }
0x2257   :  { %v4441_v63 = vpack.c.bf16 %v4440_v32, %v4440_v32 }
0x2258   :  { %v4574_v50 = vmul.f32 %v5209_v7, %v4564_v58 }
0x2259   :  { %5960 = vmatmul.mubr.msk.bf16.vlgmr.msra.gmra.mxu0 %vm953_vm3, %v4441_v63  ;;  %v5238_v63 = vld [vmem:[%s7403_s8 + $0x9] ss:$0 sm:$0xff] }
0x225a   :  { %5973 = vmatprep.mubr.msk.bf16.mxu0 %vm6202_vm0, %v6201_v1  ;;  %5970 = vmatpush3.bf16.msra.mxu0 %v6072_v47  ;;  %v4584_v46 = vadd.f32 %v5211_v13, %v4574_v50  ;;  %v6083_v47 = vld [vmem:[%s7407_s12] sm:$0xff]  }
0x225b   :  { %5971 = vmatprep.subr.bf16.mxu0 %v6201_v1  ;;  %v5251_v50 = vld [vmem:[%s7408_s13] ss:$0 sm:$0xff] }
0x225e   :  { %5972 = vmatpush3.bf16.msra.mxu0 %v6073_v59 }
0x225f   :  { %5997 = vmatprep.subr.bf16.mxu0 %v6201_v1 }
0x2319   :  { %v4482_v57 = vpop.f32.mrf.mxu0 }
0x231a   :  { %v4488_v8 = vpack.c.bf16 %v4482_v57, %v4482_v57 }
0x231b   :  { %v5961_v41 = vpop.f32.mrf.mxu0 }
0x231c   :  { %5966 = vmatmul.mubr.msk.bf16.vlgmr.msra.gmra.mxu1 %vm953_vm3, %v4488_v8 }
0x231d   :  { %v4485_v14 = vpop.f32.mrf.mxu0  ;;  %5993 = vmatprep.mubr.msk.bf16.mxu1 %vm6202_vm0, %v6201_v1 }
0x231f   :  { %v5962_v53 = vpop.f32.mrf.mxu0 }
0x23dc   :  { %v4526_v33 = vpop.f32.mrf.mxu1 }
0x23dd   :  { %v4532_v35 = vadd.f32 %v4526_v33, %v4379_v54 }
0x23de   :  { %v5967_v4 = vpop.f32.mrf.mxu1 }
0x23df   :  { %v4533_v30 = vadd.f32 %v5195_v24, %v4532_v35 }
0x23e0   :  { %v4529_v25 = vpop.f32.mrf.mxu1 }
0x23e1   :  { %v4535_v38 = vadd.f32 %v4533_v30, %v6870_v51  ;;  %v6074_v51 = vld [vmem:[%s7406_s11 + $0x78] sm:$0xff]  }
0x23e2   :  { %v5968_v49 = vpop.f32.mrf.mxu1  ;;  %5978 = vmatpush3.bf16.msra.mxu1 %v6074_v51 }
0x23e3   :  { %v4539_v10 = vsel %vm88_vm1, %v4535_v38, 0.0  ;;  %v4545_v39 = vmul.f32 %v4535_v38, %v4535_v38  ;;  %5979 = vmatprep.subr.bf16.mxu1 %v6201_v1 }
0x23e4   :  { %4540 = vadd.xlane.f32.xlu1 %v4539_v10 }
0x23e5   :  { %v4549_v11 = vsel %vm88_vm1, %v4545_v39, 0.0 }
0x23e6   :  { %5980 = vmatpush3.bf16.msra.mxu1 %v6075_v3 }
0x23e7   :  { %5981 = vmatprep.subr.bf16.mxu1 %v6201_v1 }
0x23e8   :  { %4550 = vadd.xlane.f32.xlu1 %v4549_v11  ;;  %v6082_v11 = vld [vmem:[%s7407_s12 + $0x8] sm:$0xff]  }
0x23ea   :  { %5982 = vmatpush3.bf16.msra.mxu1 %v6076_v40 }
0x23eb   :  { %5983 = vmatprep.subr.bf16.mxu1 %v6201_v1 }
0x23ee   :  { %5984 = vmatpush3.bf16.msra.mxu1 %v6077_v34 }
0x23ef   :  { %5985 = vmatprep.subr.bf16.mxu1 %v6201_v1 }
0x23f2   :  { %5986 = vmatpush3.bf16.msra.mxu1 %v6078_v44 }
0x23f3   :  { %5987 = vmatprep.subr.bf16.mxu1 %v6201_v1 }
0x23f6   :  { %5988 = vmatpush3.bf16.msra.mxu1 %v6079_v9 }
0x23f7   :  { %5989 = vmatprep.subr.bf16.mxu1 %v6201_v1 }
0x23fa   :  { %5990 = vmatpush3.bf16.msra.mxu1 %v6080_v16 }
0x23fb   :  { %5991 = vmatprep.subr.bf16.mxu1 %v6201_v1 }
0x23fe   :  { %5992 = vmatpush3.bf16.msra.mxu1 %v6081_v17 }
0x246d   :  { %v4541_v2 = vpop.xlane.xlu1 %4540 }
0x246e   :  { %v4543_v5 = vmul.f32 0.03125, %v4541_v2 }
0x2470   :  { %v4557_v56 = vmul.f32 %v4543_v5, %v4543_v5  ;;  %v4555_v60 = vsub.f32 %v4535_v38, %v4543_v5 }
0x2471   :  { %v4551_v20 = vpop.xlane.xlu1 %4550 }
0x2472   :  { %v4553_v26 = vmul.f32 0.03125, %v4551_v20 }
0x2474   :  { %v4559_v62 = vsub.f32 %v4553_v26, %v4557_v56  ;;  %v5248_v56 = vld [vmem:[%s7403_s8 + $0xa] ss:$0 sm:$0xff]  ;;  %s6176_s8 = scalar_lea.vmem %s4901_s3, 256 }
0x2475   :  { %p6177_p5 = scmp.ne.s32.totalorder %s4901_s3, %s6176_s8  ;;  %p6182_p7 = scmp.lt.s32.totalorder %s6176_s8, %s6176_s8 }
0x2476   :  { %v4561_v24 = vadd.f32 1e-05, %v4559_v62 }
0x2477   :  { %p6183_p8 = por %p6182_p7, %p6181_p6 }
0x2478   :  { %6158 = vrsqrt.f32 %v4561_v24 }
0x2479   :  { %p6184_p9 = pnand %p6183_p8, %p6177_p5 }
0x2485   :  { %v6159_v36 = vpop.eup %6158 }
0x2486   :  { %v4565_v31 = vmul.f32 %v6159_v36, %v4555_v60 }
0x2488   :  { %v4575_v12 = vmul.f32 %v5209_v7, %v4565_v31 }
0x248a   :  { %v4585_v55 = vadd.f32 %v5211_v13, %v4575_v12 }
0x248c   :  { %v4586_v15 = vpack.c.bf16 %v4585_v55, %v4584_v46 }
0x248e   :  { %5974 = vmatmul.mubr.msk.bf16.vlgmr.msra.gmra.mxu0 %vm88_vm1, %v4586_v15 }
0x248f   :  { %6001 = vmatprep.mubr.msk.bf16.mxu0 %vm6202_vm0, %v6201_v1  ;;  %5998 = vmatpush3.bf16.msra.mxu0 %v6082_v11 }
0x2490   :  { %5999 = vmatprep.subr.bf16.mxu0 %v6201_v1 }
0x2493   :  { %6000 = vmatpush3.bf16.msra.mxu0 %v6083_v47 }
0x254e   :  { %v4649_v21 = vpop.f32.mrf.mxu0 }
0x254f   :  { %v4650_v54 = vadd.f32 %v5217_v19, %v4649_v21 }
0x2550   :  { %v5975_v22 = vpop.f32.mrf.mxu0 }
0x2551   :  { %v4656_v45 = vmax.f32 %v4650_v54, 0.0 }
0x2552   :  { %v4652_v28 = vpop.f32.mrf.mxu0 }
0x2553   :  { %v4653_v29 = vadd.f32 %v5217_v19, %v4652_v28 }
0x2554   :  { %v5976_v37 = vpop.f32.mrf.mxu0 }
0x2555   :  { %v4657_v18 = vmax.f32 %v4653_v29, 0.0 }
0x2557   :  { %v4658_v32 = vpack.c.bf16 %v4657_v18, %v4656_v45 }
0x2559   :  { %5994 = vmatmul.mubr.bf16.vlgmr.msra.gmra.mxu1 %v4658_v32 }
0x2619   :  { %v4766_v57 = vpop.f32.mrf.mxu1 }
0x261a   :  { %v4767_v8 = vadd.f32 %v5238_v63, %v4766_v57 }
0x261b   :  { %v5995_v41 = vpop.f32.mrf.mxu1 }
0x261c   :  { %v4773_v14 = vadd.f32 %v4767_v8, %v4584_v46 }
0x261d   :  { %v4769_v53 = vpop.f32.mrf.mxu1 }
0x261e   :  { %v4770_v33 = vadd.f32 %v5238_v63, %v4769_v53  ;;  %v4775_v35 = vsel %vm88_vm1, %v4773_v14, 0.0  ;;  %v4783_v4 = vmul.f32 %v4773_v14, %v4773_v14 }
0x261f   :  { %4776 = vadd.xlane.f32.xlu0 %v4775_v35  ;;  %v5996_v30 = vpop.f32.mrf.mxu1 }
0x2620   :  { %v4774_v25 = vadd.f32 %v4770_v33, %v4585_v55  ;;  %v4785_v38 = vsel %vm88_vm1, %v4783_v4, 0.0 }
0x2622   :  { %v4778_v49 = vsel %vm88_vm1, %v4774_v25, 0.0  ;;  %v4784_v10 = vmul.f32 %v4774_v25, %v4774_v25 }
0x2623   :  { %4786 = vadd.xlane.f32.xlu0 %v4785_v38  ;;  %4779 = vadd.xlane.f32.xlu1 %v4778_v49 }
0x2624   :  { %v4788_v39 = vsel %vm88_vm1, %v4784_v10, 0.0 }
0x2627   :  { %4789 = vadd.xlane.f32.xlu1 %v4788_v39 }
0x26a8   :  { %v4777_v59 = vpop.xlane.xlu0 %4776 }
0x26a9   :  { %v4781_v51 = vmul.f32 0.03125, %v4777_v59 }
0x26ab   :  { %v4795_v34 = vmul.f32 %v4781_v51, %v4781_v51  ;;  %v4793_v5 = vsub.f32 %v4773_v14, %v4781_v51 }
0x26ac   :  { %v4787_v3 = vpop.xlane.xlu0 %4786  ;;  %v4780_v40 = vpop.xlane.xlu1 %4779 }
0x26ad   :  { %v4791_v44 = vmul.f32 0.03125, %v4787_v3  ;;  %v4782_v52 = vmul.f32 0.03125, %v4780_v40 }
0x26af   :  { %v4797_v27 = vsub.f32 %v4791_v44, %v4795_v34  ;;  %v4796_v48 = vmul.f32 %v4782_v52, %v4782_v52  ;;  %v4794_v26 = vsub.f32 %v4774_v25, %v4782_v52 }
0x26b0   :  { %v4790_v23 = vpop.xlane.xlu1 %4789 }
0x26b1   :  { %v4799_v43 = vadd.f32 1e-05, %v4797_v27  ;;  %v4792_v61 = vmul.f32 0.03125, %v4790_v23 }
0x26b3   :  { %6160 = vrsqrt.f32 %v4799_v43  ;;  %v4798_v2 = vsub.f32 %v4792_v61, %v4796_v48 }
0x26b5   :  { %v4800_v6 = vadd.f32 1e-05, %v4798_v2 }
0x26b7   :  { %6162 = vrsqrt.f32 %v4800_v6 }
0x26c0   :  { %v6161_v20 = vpop.eup %6160 }
0x26c1   :  { %v4803_v1 = vmul.f32 %v6161_v20, %v4793_v5 }
0x26c3   :  { %v4813_v24 = vmul.f32 %v5248_v56, %v4803_v1 }
0x26c4   :  { %v6163_v62 = vpop.eup %6162 }
0x26c5   :  { %v4804_v42 = vmul.f32 %v6163_v62, %v4794_v26  ;;  %v4823_v7 = vadd.f32 %v5250_v0, %v4813_v24 }
0x26c7   :  { %v4814_v58 = vmul.f32 %v5248_v56, %v4804_v42 }
0x26c9   :  { %v4824_v60 = vadd.f32 %v5250_v0, %v4814_v58 }
0x26cb   :  { %v4825_v36 = vpack.c.bf16 %v4824_v60, %v4823_v7 }
0x26cd   :  { %6002 = vmatmul.mubr.msk.bf16.vlgmr.msra.gmra.mxu0 %vm88_vm1, %v4825_v36 }
0x278d   :  { %v4886_v31 = vpop.f32.mrf.mxu0 }
0x278e   :  { %v4887_v13 = vadd.f32 %v5251_v50, %v4886_v31 }
0x278f   :  { %v6003_v12 = vpop.f32.mrf.mxu0 }
0x2790   :  { %4893 = vst [vmem:[#allocation5] sm:$0xff] %v4887_v13 }
0x2791   :  { %v4889_v46 = vpop.f32.mrf.mxu0 }
0x2792   :  { %v4890_v55 = vadd.f32 %v5251_v50, %v4889_v46 }
0x2793   :  { %v6004_v15 = vpop.f32.mrf.mxu0 }
0x2794   :  { %4894 = vst [vmem:[#allocation5 + $0x8] sm:$0xff] %v4890_v55 }
0x2795   :  { %6187 = shalt.err (!%p6184_p9)
}
0x2796   :  { %s6204_s23 = smov 128   ;;  %s6205_s13 = smov 8  }
0x2797   :  { %4906 = dma.vmem_to_hbm [thread:$0]  %s4901_s3, 256, %s7409_s14, [#allocation3], %s6204_s23, %s6204_s23, %s6205_s13  }
0x2798   :  { %6198 = dma.done.wait [#allocation3], 256  }
0x2799   :  { %6199 = vsyncadd [#allocation3], 4294967040 }
0x279a   :  { %4910 = vsyncpa [#allocation3], 1 }
0x279b   :  { %4911 = vsyncpa [#allocation4], 1 }

</bundles_post_ra>
